<compile_context>
chip_gen: v7x
topology: tpu7x:2x2x1
jax: 0.10.0
libtpu: 0.0.40
codegen_flags: <defaults>
</compile_context>

<pallas_src>
import functools
import math

import jax
import jax.numpy as jnp
from jax.experimental import pallas as pl
from jax.experimental.pallas import tpu as pltpu


def _bottleneck_fc_kernel(H, W,
                          x_ref, row_ref, col_ref, pool_ref,
                          w1_ref, s1_ref, b1_ref,
                          w2_ref, s2_ref, b2_ref,
                          w3_ref, s3_ref, b3_ref,
                          wfc_ref, bfc_ref,
                          out_ref, x2_ref):
    """One batch block (Nb whole images) per grid step.

    Layout: channels on sublanes, positions on lanes.
      x_ref   : (Cin, M)        bf16, M = Nb*H*W
      x2_ref  : (9*width, M)    f32 VMEM scratch (assembled conv2 operand)
      out_ref : (1, Nb, c_pad)  f32
    """
    width = w1_ref.shape[0]
    M = x_ref.shape[1]
    w = width

    # ---- conv1 (1x1) + bn1 + relu -------------------------------------------
    y1 = jnp.dot(w1_ref[...], x_ref[...], preferred_element_type=jnp.float32)
    y1 = jnp.maximum(y1 * s1_ref[...] + b1_ref[...], 0.0)            # (width, M) f32

    # ---- conv2 (3x3, stride 1, pad 1): separable tap build + ONE matmul -----
    col = col_ref[...]                                               # (1, M) int32
    row = row_ref[...]
    col_ok_l = col >= 1          # reading position p-1 stays inside the row
    col_ok_r = col <= (W - 2)    # reading position p+1 stays inside the row
    row_ok_u = row >= 1          # reading position p-W stays inside the image
    row_ok_d = row <= (H - 2)    # reading position p+W stays inside the image

    # Column taps (dw = -1, 0, +1) -> the dh = 0 block of the operand.
    c_l = jnp.where(col_ok_l, pltpu.roll(y1, shift=1, axis=1), 0.0)
    c_r = jnp.where(col_ok_r, pltpu.roll(y1, shift=M - 1, axis=1), 0.0)
    x2_ref[3 * w:4 * w, :] = c_l
    x2_ref[4 * w:5 * w, :] = y1
    x2_ref[5 * w:6 * w, :] = c_r

    # Row taps (dh = -1, +1): roll the whole 3*width block by one image row.
    # Rolling by multiples of W preserves the column index (M % W == 0), so the
    # column masks baked into c_l / c_r stay valid; the row mask zeroes every
    # wrapped position, including wraps across image boundaries in the block.
    c3 = x2_ref[3 * w:6 * w, :]                                      # (3*width, M)
    x2_ref[0:3 * w, :] = jnp.where(row_ok_u, pltpu.roll(c3, shift=W, axis=1), 0.0)
    x2_ref[6 * w:9 * w, :] = jnp.where(row_ok_d, pltpu.roll(c3, shift=M - W, axis=1), 0.0)

    y2 = jnp.dot(w2_ref[...], x2_ref[...].astype(jnp.bfloat16),       # K = 9*width
                 preferred_element_type=jnp.float32)
    y2 = jnp.maximum(y2 * s2_ref[...] + b2_ref[...], 0.0)             # (width, M)

    # ---- conv3 (1x1) + bn3 + residual + relu ---------------------------------
    y3 = jnp.dot(w3_ref[...], y2.astype(jnp.bfloat16),
                 preferred_element_type=jnp.float32)
    y3 = y3 * s3_ref[...] + b3_ref[...]
    y3 = jnp.maximum(y3 + x_ref[...].astype(jnp.float32), 0.0)        # (Cout, M)

    # ---- AdaptiveAvgPool2d((1,1)) as an MXU contraction -----------------------
    # pool_ref is (Nb, M) with 1/HW on each image's own positions (NT contraction).
    pooled = jax.lax.dot_general(pool_ref[...], y3,
                                 dimension_numbers=(((1,), (1,)), ((), ())),
                                 preferred_element_type=jnp.float32)  # (Nb, Cout)

    # ---- fc (lane-padded to a multiple of 128) --------------------------------
    out = jnp.dot(pooled.astype(jnp.bfloat16), wfc_ref[...],
                  preferred_element_type=jnp.float32) + bfc_ref[...]
    out_ref[0] = out.astype(out_ref.dtype)


def _tpu_int_attr(names, default):
    try:
        info = pltpu.get_tpu_info()
    except Exception:
        return default
    for name in names:
        v = getattr(info, name, None)
        if isinstance(v, int) and v > 0:
            return v
    return default


def _num_tensorcores():
    n = _tpu_int_attr(("num_cores", "core_count", "num_tensorcores",
                       "tensorcore_count"), 0)
    if n:
        return n
    try:
        kind = jax.devices()[0].device_kind.lower()
        if "v7" in kind or "7x" in kind:
            return 2
    except Exception:
        pass
    return 1


def _vmem_capacity_bytes():
    return _tpu_int_attr(("vmem_capacity_bytes",), 64 * 1024 * 1024)


def _pick_batch_block(N, HW, num_cores, vmem_cap, row_bytes):
    """Images per grid step.  Nb*HW is kept a multiple of 128 (lane-dense blocks);
    single-core chips (v5e/v6e) get one big block, multi-core chips (v7x) get
    >= 2 grid steps per TensorCore so DMA and compute overlap on each core."""
    base = 128 // math.gcd(HW, 128)                       # min whole images per block
    budget_rows = max(base * HW, int(0.35 * vmem_cap) // max(row_bytes, 1))
    nb = max(base, (budget_rows // HW) // base * base)
    nb = min(nb, base * pl.cdiv(N, base))                 # no point exceeding padded N
    if num_cores > 1:
        while nb > base and pl.cdiv(N, nb) < 2 * num_cores:
            nb = max(base, (nb // (2 * base)) * base)
    return nb


def resnet50_fclb_forward(x_nchw, params, H, W, batch_block=None):
    (w1, s1, b1, w2, s2, b2, w3, s3, b3, wfc, bfc) = params
    N, Cin, Hx, Wx = x_nchw.shape
    assert (Hx, Wx) == (H, W)
    width = w1.shape[1]
    Cout = w3.shape[1]
    num_classes = wfc.shape[1]
    HW = H * W
    # Identity shortcut requires inplanes == planes*expansion; stride=1/pad=1 3x3.
    assert Cin == Cout and HW == H * W

    num_cores = _num_tensorcores()
    vmem_cap = _vmem_capacity_bytes()

    # Rough resident bytes per M-column (activation slabs + scratch + bf16 x block).
    row_bytes = 4 * (3 * width + 2 * 9 * width + 2 * Cout) + 2 * 2 * Cin
    Nb = batch_block if batch_block is not None else _pick_batch_block(
        N, HW, num_cores, vmem_cap, row_bytes)
    M_blk = Nb * HW
    assert M_blk % 128 == 0, "block positions must be lane-aligned (pick Nb accordingly)"
    n_blocks = pl.cdiv(N, Nb)
    N_pad = n_blocks * Nb

    # Lane-dense fc output: pad num_classes up to a multiple of 128 (sliced after).
    c_pad = pl.cdiv(num_classes, 128) * 128
    wfc_p = jnp.zeros((Cout, c_pad), jnp.float32).at[:, :num_classes].set(wfc)
    bfc_p = jnp.zeros((1, c_pad), jnp.float32).at[:, :num_classes].set(bfc)

    # Weights in kernel layout (channels-out on sublanes), bf16 for the MXU.
    bf = jnp.bfloat16
    w1t = jnp.transpose(w1).astype(bf)                                  # (width, Cin)
    w2t = jnp.transpose(w2, (2, 0, 1)).reshape(width, 9 * width).astype(bf)
    w3t = jnp.transpose(w3).astype(bf)                                  # (Cout, width)
    wfct = wfc_p.astype(bf)                                             # (Cout, c_pad)
    s1t, b1t = s1.reshape(width, 1), b1.reshape(width, 1)
    s2t, b2t = s2.reshape(width, 1), b2.reshape(width, 1)
    s3t, b3t = s3.reshape(Cout, 1), b3.reshape(Cout, 1)

    # NCHW -> (Cin, N*H*W): channels on sublanes, positions on lanes.
    x_t = jnp.transpose(x_nchw, (1, 0, 2, 3)).reshape(Cin, N * HW).astype(bf)
    if N_pad != N:
        x_t = jnp.pad(x_t, ((0, 0), (0, (N_pad - N) * HW)))

    # Per-block constants: position row/col indices and the avg-pool matrix.
    row_ids = jnp.tile(jnp.repeat(jnp.arange(H, dtype=jnp.int32), W), Nb).reshape(1, M_blk)
    col_ids = jnp.tile(jnp.arange(W, dtype=jnp.int32), H * Nb).reshape(1, M_blk)
    pool_t = jnp.repeat(jnp.eye(Nb, dtype=jnp.float32), HW, axis=1) * (1.0 / HW)

    operands = (x_t, row_ids, col_ids, pool_t, w1t, s1t, b1t, w2t, s2t, b2t,
                w3t, s3t, b3t, wfct, bfc_p)

    # VMEM budget from the actual working set, clamped to chip capacity.
    const_bytes = sum(int(a.size) * a.dtype.itemsize for a in operands[1:])
    work_bytes = (2 * Cin * M_blk * 2                      # x block, double buffered
                  + 2 * Nb * c_pad * 4                     # out block, double buffered
                  + 2 * const_bytes                        # worst case: consts x2
                  + 9 * width * M_blk * 4                  # conv2 scratch
                  + M_blk * 4 * (3 * width + 9 * width + 2 * Cout))   # live slabs
    vmem_limit = int(min(max(work_bytes + (8 << 20), 32 << 20), int(vmem_cap * 0.9)))

    kernel = functools.partial(_bottleneck_fc_kernel, H, W)

    def run(single_buffer_consts):
        def const_spec(shape):
            if single_buffer_consts:
                return pl.BlockSpec(shape, lambda n: (0, 0),
                                    pipeline_mode=pl.Buffered(1))
            return pl.BlockSpec(shape, lambda n: (0, 0))

        in_specs = [pl.BlockSpec((Cin, M_blk), lambda n: (0, n))] + [
            const_spec(a.shape) for a in operands[1:]]
        out3 = pl.pallas_call(
            kernel,
            out_shape=jax.ShapeDtypeStruct((n_blocks, Nb, c_pad), jnp.float32),
            grid_spec=pltpu.PrefetchScalarGridSpec(
                num_scalar_prefetch=0,
                grid=(n_blocks,),
                in_specs=in_specs,
                out_specs=pl.BlockSpec((1, Nb, c_pad), lambda n: (n, 0, 0)),
                scratch_shapes=[pltpu.VMEM((9 * width, M_blk), jnp.float32)],
            ),
            compiler_params=pltpu.CompilerParams(
                dimension_semantics=("parallel",),
                vmem_limit_bytes=vmem_limit),
        )(*operands)
        return jax.block_until_ready(out3)

    try:
        out3 = run(True)
    except Exception:
        # Fallback if single-buffered (Buffered(1)) constant specs are rejected.
        out3 = run(False)

    out = out3.reshape(N_pad, c_pad)
    return out[:N, :num_classes]


def _reference(x_nchw, params, H, W):
    """Plain-JAX reference of the same bf16-matmul / f32-epilogue forward."""
    (w1, s1, b1, w2, s2, b2, w3, s3, b3, wfc, bfc) = params
    bf = jnp.bfloat16
    x = jnp.transpose(x_nchw, (0, 2, 3, 1)).astype(bf)                 # NHWC bf16
    y1 = jnp.einsum('nhwc,cd->nhwd', x, w1.astype(bf),
                    preferred_element_type=jnp.float32)
    y1 = jnp.maximum(y1 * s1[0] + b1[0], 0.0)
    w2_hwio = w2.astype(bf).reshape(3, 3, w2.shape[1], w2.shape[2])
    y2 = jax.lax.conv_general_dilated(
        y1.astype(bf), w2_hwio, window_strides=(1, 1), padding='SAME',
        dimension_numbers=('NHWC', 'HWIO', 'NHWC'),
        preferred_element_type=jnp.float32)
    y2 = jnp.maximum(y2 * s2[0] + b2[0], 0.0)
    y3 = jnp.einsum('nhwd,de->nhwe', y2.astype(bf), w3.astype(bf),
                    preferred_element_type=jnp.float32) * s3[0] + b3[0]
    y3 = jnp.maximum(y3 + x.astype(jnp.float32), 0.0)
    pooled = jnp.mean(y3, axis=(1, 2))
    return jnp.dot(pooled.astype(bf), wfc.astype(bf),
                   preferred_element_type=jnp.float32) + bfc[0]


def _make_params(key, Cin, width, Cout, num_classes, eps=1e-5):
    ks = jax.random.split(key, 20)

    def bn_fold(kg, kb, km, kv, c):
        gamma = 1.0 + 0.1 * jax.random.normal(kg, (c,), jnp.float32)
        beta = 0.1 * jax.random.normal(kb, (c,), jnp.float32)
        mean = 0.1 * jax.random.normal(km, (c,), jnp.float32)
        var = jnp.abs(jax.random.normal(kv, (c,), jnp.float32)) + 0.5
        scale = gamma / jnp.sqrt(var + eps)
        bias = beta - mean * scale
        return scale[None, :], bias[None, :]

    # conv weights stored kernel-friendly: (Cin, Cout) / (kh*kw, Cin, Cout)
    w1 = 0.10 * jax.random.normal(ks[0], (Cin, width), jnp.float32)
    w2 = 0.05 * jax.random.normal(ks[1], (9, width, width), jnp.float32)
    w3 = 0.10 * jax.random.normal(ks[2], (width, Cout), jnp.float32)
    s1, b1 = bn_fold(ks[3], ks[4], ks[5], ks[6], width)
    s2, b2 = bn_fold(ks[7], ks[8], ks[9], ks[10], width)
    s3, b3 = bn_fold(ks[11], ks[12], ks[13], ks[14], Cout)
    wfc = 0.05 * jax.random.normal(ks[15], (Cout, num_classes), jnp.float32)
    bfc = 0.01 * jax.random.normal(ks[16], (1, num_classes), jnp.float32)
    return (w1, s1, b1, w2, s2, b2, w3, s3, b3, wfc, bfc)


if __name__ == "__main__":
    # Small-shape instantiation of ResNet50FCLB(planes=8, num_classes=16):
    #   inplanes = planes * expansion = 32, bottleneck width = 8, Cout = 32.
    planes = 8
    expansion = 4
    width = planes              # base_width=64, groups=1 -> width == planes
    Cin = planes * expansion    # 32
    Cout = planes * expansion   # 32
    num_classes = 16
    N, H, W = 16, 8, 8          # HW=64 -> block positions stay multiples of 128

    key = jax.random.PRNGKey(0)
    kx, kp = jax.random.split(key)
    x = jax.random.normal(kx, (N, Cin, H, W), jnp.float32)   # NCHW, like PyTorch
    params = _make_params(kp, Cin, width, Cout, num_classes)

    out = jax.block_until_ready(resnet50_fclb_forward(x, params, H, W))
    assert out.shape == (N, num_classes)

    ref = jax.block_until_ready(_reference(x, params, H, W))
    assert jnp.allclose(out, ref, rtol=1e-2, atol=1e-2), (
        f"max abs err {jnp.max(jnp.abs(out - ref))}")

    print("KERNEL_OK")
</pallas_src>

<mosaic_0001>
module attributes {stable_mosaic.version = 11 : i64} {
  func.func @_bottleneck_fc_kernel(%arg0: i32, %arg1: memref<32x1024xbf16, #tpu.memory_space<vmem>>, %arg2: memref<1x1024xi32, #tpu.memory_space<vmem>>, %arg3: memref<1x1024xi32, #tpu.memory_space<vmem>>, %arg4: memref<16x1024xf32, #tpu.memory_space<vmem>>, %arg5: memref<8x32xbf16, #tpu.memory_space<vmem>>, %arg6: memref<8x1xf32, #tpu.memory_space<vmem>>, %arg7: memref<8x1xf32, #tpu.memory_space<vmem>>, %arg8: memref<8x72xbf16, #tpu.memory_space<vmem>>, %arg9: memref<8x1xf32, #tpu.memory_space<vmem>>, %arg10: memref<8x1xf32, #tpu.memory_space<vmem>>, %arg11: memref<32x8xbf16, #tpu.memory_space<vmem>>, %arg12: memref<32x1xf32, #tpu.memory_space<vmem>>, %arg13: memref<32x1xf32, #tpu.memory_space<vmem>>, %arg14: memref<32x128xbf16, #tpu.memory_space<vmem>>, %arg15: memref<1x128xf32, #tpu.memory_space<vmem>>, %arg16: memref<1x16x128xf32, #tpu.memory_space<vmem>>, %arg17: memref<72x1024xf32, #tpu.memory_space<vmem>>) attributes {dimension_semantics = [#tpu.dimension_semantics<parallel>], iteration_bounds = array<i64: 1>, scalar_prefetch = 0 : i64, scratch_operands = 1 : i64, tpu.core_type = #tpu.core_type<tc>, window_params = [{transform_indices = @transform_0, window_bounds = array<i64: 32, 1024>}, {pipeline_mode = #tpu.pipeline_mode<synchronous>, transform_indices = @transform_1, window_bounds = array<i64: 1, 1024>}, {pipeline_mode = #tpu.pipeline_mode<synchronous>, transform_indices = @transform_2, window_bounds = array<i64: 1, 1024>}, {pipeline_mode = #tpu.pipeline_mode<synchronous>, transform_indices = @transform_3, window_bounds = array<i64: 16, 1024>}, {pipeline_mode = #tpu.pipeline_mode<synchronous>, transform_indices = @transform_4, window_bounds = array<i64: 8, 32>}, {pipeline_mode = #tpu.pipeline_mode<synchronous>, transform_indices = @transform_5, window_bounds = array<i64: 8, 1>}, {pipeline_mode = #tpu.pipeline_mode<synchronous>, transform_indices = @transform_6, window_bounds = array<i64: 8, 1>}, {pipeline_mode = #tpu.pipeline_mode<synchronous>, transform_indices = @transform_7, window_bounds = array<i64: 8, 72>}, {pipeline_mode = #tpu.pipeline_mode<synchronous>, transform_indices = @transform_8, window_bounds = array<i64: 8, 1>}, {pipeline_mode = #tpu.pipeline_mode<synchronous>, transform_indices = @transform_9, window_bounds = array<i64: 8, 1>}, {pipeline_mode = #tpu.pipeline_mode<synchronous>, transform_indices = @transform_10, window_bounds = array<i64: 32, 8>}, {pipeline_mode = #tpu.pipeline_mode<synchronous>, transform_indices = @transform_11, window_bounds = array<i64: 32, 1>}, {pipeline_mode = #tpu.pipeline_mode<synchronous>, transform_indices = @transform_12, window_bounds = array<i64: 32, 1>}, {pipeline_mode = #tpu.pipeline_mode<synchronous>, transform_indices = @transform_13, window_bounds = array<i64: 32, 128>}, {pipeline_mode = #tpu.pipeline_mode<synchronous>, transform_indices = @transform_14, window_bounds = array<i64: 1, 128>}, {transform_indices = @transform_15, window_bounds = array<i64: 1, 16, 128>}]} {
    %c0 = arith.constant 0 : index
    %c0_0 = arith.constant 0 : index
    %0 = vector.load %arg5[%c0, %c0_0] : memref<8x32xbf16, #tpu.memory_space<vmem>>, vector<8x32xbf16>
    %c0_1 = arith.constant 0 : index
    %c0_2 = arith.constant 0 : index
    %1 = vector.load %arg1[%c0_1, %c0_2] : memref<32x1024xbf16, #tpu.memory_space<vmem>>, vector<32x1024xbf16>
    %cst = arith.constant dense<0.000000e+00> : vector<8x1024xf32>
    %2 = tpu.matmul %0, %1, %cst {dimension_numbers = #tpu.dot_dimension_numbers<[1], [0], [0], [1], [0, 0, 1, 1], [], []>} : vector<8x32xbf16>, vector<32x1024xbf16>, vector<8x1024xf32> -> vector<8x1024xf32>
    %c0_3 = arith.constant 0 : index
    %c0_4 = arith.constant 0 : index
    %3 = vector.load %arg6[%c0_3, %c0_4] : memref<8x1xf32, #tpu.memory_space<vmem>>, vector<8x1xf32>
    %4 = vector.broadcast %3 : vector<8x1xf32> to vector<8x1024xf32>
    %5 = arith.mulf %2, %4 : vector<8x1024xf32>
    %c0_5 = arith.constant 0 : index
    %c0_6 = arith.constant 0 : index
    %6 = vector.load %arg7[%c0_5, %c0_6] : memref<8x1xf32, #tpu.memory_space<vmem>>, vector<8x1xf32>
    %7 = vector.broadcast %6 : vector<8x1xf32> to vector<8x1024xf32>
    %8 = arith.addf %5, %7 : vector<8x1024xf32>
    %cst_7 = arith.constant 0.000000e+00 : f32
    %9 = vector.broadcast %cst_7 : f32 to vector<8x1024xf32>
    %10 = arith.maximumf %8, %9 : vector<8x1024xf32>
    %c0_8 = arith.constant 0 : index
    %c0_9 = arith.constant 0 : index
    %11 = vector.load %arg3[%c0_8, %c0_9] : memref<1x1024xi32, #tpu.memory_space<vmem>>, vector<1x1024xi32>
    %c0_10 = arith.constant 0 : index
    %c0_11 = arith.constant 0 : index
    %12 = vector.load %arg2[%c0_10, %c0_11] : memref<1x1024xi32, #tpu.memory_space<vmem>>, vector<1x1024xi32>
    %c1_i32 = arith.constant 1 : i32
    %13 = vector.broadcast %c1_i32 : i32 to vector<1x1024xi32>
    %14 = arith.cmpi sge, %11, %13 : vector<1x1024xi32>
    %c6_i32 = arith.constant 6 : i32
    %15 = vector.broadcast %c6_i32 : i32 to vector<1x1024xi32>
    %16 = arith.cmpi sle, %11, %15 : vector<1x1024xi32>
    %c1_i32_12 = arith.constant 1 : i32
    %17 = vector.broadcast %c1_i32_12 : i32 to vector<1x1024xi32>
    %18 = arith.cmpi sge, %12, %17 : vector<1x1024xi32>
    %c6_i32_13 = arith.constant 6 : i32
    %19 = vector.broadcast %c6_i32_13 : i32 to vector<1x1024xi32>
    %20 = arith.cmpi sle, %12, %19 : vector<1x1024xi32>
    %c1_i32_14 = arith.constant 1 : i32
    %21 = tpu.dynamic_rotate %10 by %c1_i32_14 dim 1 : vector<8x1024xf32>, i32 -> vector<8x1024xf32>
    %cst_15 = arith.constant 0.000000e+00 : f32
    %22 = vector.shape_cast %14 : vector<1x1024xi1> to vector<1x1024xi1>
    %23 = vector.broadcast %22 : vector<1x1024xi1> to vector<8x1024xi1>
    %24 = vector.broadcast %cst_15 : f32 to vector<8x1024xf32>
    %25 = arith.select %23, %21, %24 : vector<8x1024xi1>, vector<8x1024xf32>
    %c1023_i32 = arith.constant 1023 : i32
    %26 = tpu.dynamic_rotate %10 by %c1023_i32 dim 1 : vector<8x1024xf32>, i32 -> vector<8x1024xf32>
    %cst_16 = arith.constant 0.000000e+00 : f32
    %27 = vector.shape_cast %16 : vector<1x1024xi1> to vector<1x1024xi1>
    %28 = vector.broadcast %27 : vector<1x1024xi1> to vector<8x1024xi1>
    %29 = vector.broadcast %cst_16 : f32 to vector<8x1024xf32>
    %30 = arith.select %28, %26, %29 : vector<8x1024xi1>, vector<8x1024xf32>
    %c24 = arith.constant 24 : index
    %c0_17 = arith.constant 0 : index
    %31 = vector.load %arg17[%c24, %c0_17] : memref<72x1024xf32, #tpu.memory_space<vmem>>, vector<8x1024xf32>
    tpu.vector_store %arg17[%c24, %c0_17], %25 {strides = array<i32>} : memref<72x1024xf32, #tpu.memory_space<vmem>>, vector<8x1024xf32>,
    %c32 = arith.constant 32 : index
    %c0_18 = arith.constant 0 : index
    %32 = vector.load %arg17[%c32, %c0_18] : memref<72x1024xf32, #tpu.memory_space<vmem>>, vector<8x1024xf32>
    tpu.vector_store %arg17[%c32, %c0_18], %10 {strides = array<i32>} : memref<72x1024xf32, #tpu.memory_space<vmem>>, vector<8x1024xf32>,
    %c40 = arith.constant 40 : index
    %c0_19 = arith.constant 0 : index
    %33 = vector.load %arg17[%c40, %c0_19] : memref<72x1024xf32, #tpu.memory_space<vmem>>, vector<8x1024xf32>
    tpu.vector_store %arg17[%c40, %c0_19], %30 {strides = array<i32>} : memref<72x1024xf32, #tpu.memory_space<vmem>>, vector<8x1024xf32>,
    %c24_20 = arith.constant 24 : index
    %c0_21 = arith.constant 0 : index
    %34 = vector.load %arg17[%c24_20, %c0_21] : memref<72x1024xf32, #tpu.memory_space<vmem>>, vector<24x1024xf32>
    %c8_i32 = arith.constant 8 : i32
    %35 = tpu.dynamic_rotate %34 by %c8_i32 dim 1 : vector<24x1024xf32>, i32 -> vector<24x1024xf32>
    %cst_22 = arith.constant 0.000000e+00 : f32
    %36 = vector.shape_cast %18 : vector<1x1024xi1> to vector<1x1024xi1>
    %37 = vector.broadcast %36 : vector<1x1024xi1> to vector<24x1024xi1>
    %38 = vector.broadcast %cst_22 : f32 to vector<24x1024xf32>
    %39 = arith.select %37, %35, %38 : vector<24x1024xi1>, vector<24x1024xf32>
    %c0_23 = arith.constant 0 : index
    %c0_24 = arith.constant 0 : index
    %40 = vector.load %arg17[%c0_23, %c0_24] : memref<72x1024xf32, #tpu.memory_space<vmem>>, vector<24x1024xf32>
    tpu.vector_store %arg17[%c0_23, %c0_24], %39 {strides = array<i32>} : memref<72x1024xf32, #tpu.memory_space<vmem>>, vector<24x1024xf32>,
    %c1016_i32 = arith.constant 1016 : i32
    %41 = tpu.dynamic_rotate %34 by %c1016_i32 dim 1 : vector<24x1024xf32>, i32 -> vector<24x1024xf32>
    %cst_25 = arith.constant 0.000000e+00 : f32
    %42 = vector.shape_cast %20 : vector<1x1024xi1> to vector<1x1024xi1>
    %43 = vector.broadcast %42 : vector<1x1024xi1> to vector<24x1024xi1>
    %44 = vector.broadcast %cst_25 : f32 to vector<24x1024xf32>
    %45 = arith.select %43, %41, %44 : vector<24x1024xi1>, vector<24x1024xf32>
    %c48 = arith.constant 48 : index
    %c0_26 = arith.constant 0 : index
    %46 = vector.load %arg17[%c48, %c0_26] : memref<72x1024xf32, #tpu.memory_space<vmem>>, vector<24x1024xf32>
    tpu.vector_store %arg17[%c48, %c0_26], %45 {strides = array<i32>} : memref<72x1024xf32, #tpu.memory_space<vmem>>, vector<24x1024xf32>,
    %c0_27 = arith.constant 0 : index
    %c0_28 = arith.constant 0 : index
    %47 = vector.load %arg8[%c0_27, %c0_28] : memref<8x72xbf16, #tpu.memory_space<vmem>>, vector<8x72xbf16>
    %c0_29 = arith.constant 0 : index
    %c0_30 = arith.constant 0 : index
    %48 = vector.load %arg17[%c0_29, %c0_30] : memref<72x1024xf32, #tpu.memory_space<vmem>>, vector<72x1024xf32>
    %49 = arith.truncf %48 : vector<72x1024xf32> to vector<72x1024xbf16>
    %cst_31 = arith.constant dense<0.000000e+00> : vector<8x1024xf32>
    %50 = tpu.matmul %47, %49, %cst_31 {dimension_numbers = #tpu.dot_dimension_numbers<[1], [0], [0], [1], [0, 0, 1, 1], [], []>} : vector<8x72xbf16>, vector<72x1024xbf16>, vector<8x1024xf32> -> vector<8x1024xf32>
    %c0_32 = arith.constant 0 : index
    %c0_33 = arith.constant 0 : index
    %51 = vector.load %arg9[%c0_32, %c0_33] : memref<8x1xf32, #tpu.memory_space<vmem>>, vector<8x1xf32>
    %52 = vector.broadcast %51 : vector<8x1xf32> to vector<8x1024xf32>
    %53 = arith.mulf %50, %52 : vector<8x1024xf32>
    %c0_34 = arith.constant 0 : index
    %c0_35 = arith.constant 0 : index
    %54 = vector.load %arg10[%c0_34, %c0_35] : memref<8x1xf32, #tpu.memory_space<vmem>>, vector<8x1xf32>
    %55 = vector.broadcast %54 : vector<8x1xf32> to vector<8x1024xf32>
    %56 = arith.addf %53, %55 : vector<8x1024xf32>
    %cst_36 = arith.constant 0.000000e+00 : f32
    %57 = vector.broadcast %cst_36 : f32 to vector<8x1024xf32>
    %58 = arith.maximumf %56, %57 : vector<8x1024xf32>
    %c0_37 = arith.constant 0 : index
    %c0_38 = arith.constant 0 : index
    %59 = vector.load %arg11[%c0_37, %c0_38] : memref<32x8xbf16, #tpu.memory_space<vmem>>, vector<32x8xbf16>
    %60 = arith.truncf %58 : vector<8x1024xf32> to vector<8x1024xbf16>
    %cst_39 = arith.constant dense<0.000000e+00> : vector<32x1024xf32>
    %61 = tpu.matmul %59, %60, %cst_39 {dimension_numbers = #tpu.dot_dimension_numbers<[1], [0], [0], [1], [0, 0, 1, 1], [], []>} : vector<32x8xbf16>, vector<8x1024xbf16>, vector<32x1024xf32> -> vector<32x1024xf32>
    %c0_40 = arith.constant 0 : index
    %c0_41 = arith.constant 0 : index
    %62 = vector.load %arg12[%c0_40, %c0_41] : memref<32x1xf32, #tpu.memory_space<vmem>>, vector<32x1xf32>
    %63 = vector.broadcast %62 : vector<32x1xf32> to vector<32x1024xf32>
    %64 = arith.mulf %61, %63 : vector<32x1024xf32>
    %c0_42 = arith.constant 0 : index
    %c0_43 = arith.constant 0 : index
    %65 = vector.load %arg13[%c0_42, %c0_43] : memref<32x1xf32, #tpu.memory_space<vmem>>, vector<32x1xf32>
    %66 = vector.broadcast %65 : vector<32x1xf32> to vector<32x1024xf32>
    %67 = arith.addf %64, %66 : vector<32x1024xf32>
    %c0_44 = arith.constant 0 : index
    %c0_45 = arith.constant 0 : index
    %68 = vector.load %arg1[%c0_44, %c0_45] : memref<32x1024xbf16, #tpu.memory_space<vmem>>, vector<32x1024xbf16>
    %69 = arith.extf %68 : vector<32x1024xbf16> to vector<32x1024xf32>
    %70 = arith.addf %67, %69 : vector<32x1024xf32>
    %cst_46 = arith.constant 0.000000e+00 : f32
    %71 = vector.broadcast %cst_46 : f32 to vector<32x1024xf32>
    %72 = arith.maximumf %70, %71 : vector<32x1024xf32>
    %c0_47 = arith.constant 0 : index
    %c0_48 = arith.constant 0 : index
    %73 = vector.load %arg4[%c0_47, %c0_48] : memref<16x1024xf32, #tpu.memory_space<vmem>>, vector<16x1024xf32>
    %cst_49 = arith.constant dense<0.000000e+00> : vector<16x32xf32>
    %74 = tpu.matmul %73, %72, %cst_49 {dimension_numbers = #tpu.dot_dimension_numbers<[1], [1], [0], [0], [0, 0, 1, 0], [], []>} : vector<16x1024xf32>, vector<32x1024xf32>, vector<16x32xf32> -> vector<16x32xf32>
    %75 = arith.truncf %74 : vector<16x32xf32> to vector<16x32xbf16>
    %c0_50 = arith.constant 0 : index
    %c0_51 = arith.constant 0 : index
    %76 = vector.load %arg14[%c0_50, %c0_51] : memref<32x128xbf16, #tpu.memory_space<vmem>>, vector<32x128xbf16>
    %cst_52 = arith.constant dense<0.000000e+00> : vector<16x128xf32>
    %77 = tpu.matmul %75, %76, %cst_52 {dimension_numbers = #tpu.dot_dimension_numbers<[1], [0], [0], [1], [0, 0, 1, 1], [], []>} : vector<16x32xbf16>, vector<32x128xbf16>, vector<16x128xf32> -> vector<16x128xf32>
    %c0_53 = arith.constant 0 : index
    %c0_54 = arith.constant 0 : index
    %78 = vector.load %arg15[%c0_53, %c0_54] : memref<1x128xf32, #tpu.memory_space<vmem>>, vector<1x128xf32>
    %79 = vector.broadcast %78 : vector<1x128xf32> to vector<16x128xf32>
    %80 = arith.addf %77, %79 : vector<16x128xf32>
    %c0_55 = arith.constant 0 : index
    %c0_56 = arith.constant 0 : index
    %c0_57 = arith.constant 0 : index
    %81 = vector.load %arg16[%c0_55, %c0_56, %c0_57] : memref<1x16x128xf32, #tpu.memory_space<vmem>>, vector<1x16x128xf32>
    %82 = vector.shape_cast %81 : vector<1x16x128xf32> to vector<16x128xf32>
    %83 = vector.shape_cast %80 : vector<16x128xf32> to vector<1x16x128xf32>
    tpu.vector_store %arg16[%c0_55, %c0_56, %c0_57], %83 {strides = array<i32>} : memref<1x16x128xf32, #tpu.memory_space<vmem>>, vector<1x16x128xf32>,
    return
  }
  func.func @transform_0(%arg0: i32) -> (i32, i32) {
    %c0_i32 = arith.constant 0 : i32
    %c0_i32_0 = arith.constant 0 : i32
    return %c0_i32, %arg0 : i32, i32
  }
  func.func @transform_1(%arg0: i32) -> (i32, i32) {
    %c0_i32 = arith.constant 0 : i32
    %c0_i32_0 = arith.constant 0 : i32
    %c0_i32_1 = arith.constant 0 : i32
    return %c0_i32, %c0_i32_0 : i32, i32
  }
  func.func @transform_2(%arg0: i32) -> (i32, i32) {
    %c0_i32 = arith.constant 0 : i32
    %c0_i32_0 = arith.constant 0 : i32
    %c0_i32_1 = arith.constant 0 : i32
    return %c0_i32, %c0_i32_0 : i32, i32
  }
  func.func @transform_3(%arg0: i32) -> (i32, i32) {
    %c0_i32 = arith.constant 0 : i32
    %c0_i32_0 = arith.constant 0 : i32
    %c0_i32_1 = arith.constant 0 : i32
    return %c0_i32, %c0_i32_0 : i32, i32
  }
  func.func @transform_4(%arg0: i32) -> (i32, i32) {
    %c0_i32 = arith.constant 0 : i32
    %c0_i32_0 = arith.constant 0 : i32
    %c0_i32_1 = arith.constant 0 : i32
    return %c0_i32, %c0_i32_0 : i32, i32
  }
  func.func @transform_5(%arg0: i32) -> (i32, i32) {
    %c0_i32 = arith.constant 0 : i32
    %c0_i32_0 = arith.constant 0 : i32
    %c0_i32_1 = arith.constant 0 : i32
    return %c0_i32, %c0_i32_0 : i32, i32
  }
  func.func @transform_6(%arg0: i32) -> (i32, i32) {
    %c0_i32 = arith.constant 0 : i32
    %c0_i32_0 = arith.constant 0 : i32
    %c0_i32_1 = arith.constant 0 : i32
    return %c0_i32, %c0_i32_0 : i32, i32
  }
  func.func @transform_7(%arg0: i32) -> (i32, i32) {
    %c0_i32 = arith.constant 0 : i32
    %c0_i32_0 = arith.constant 0 : i32
    %c0_i32_1 = arith.constant 0 : i32
    return %c0_i32, %c0_i32_0 : i32, i32
  }
  func.func @transform_8(%arg0: i32) -> (i32, i32) {
    %c0_i32 = arith.constant 0 : i32
    %c0_i32_0 = arith.constant 0 : i32
    %c0_i32_1 = arith.constant 0 : i32
    return %c0_i32, %c0_i32_0 : i32, i32
  }
  func.func @transform_9(%arg0: i32) -> (i32, i32) {
    %c0_i32 = arith.constant 0 : i32
    %c0_i32_0 = arith.constant 0 : i32
    %c0_i32_1 = arith.constant 0 : i32
    return %c0_i32, %c0_i32_0 : i32, i32
  }
  func.func @transform_10(%arg0: i32) -> (i32, i32) {
    %c0_i32 = arith.constant 0 : i32
    %c0_i32_0 = arith.constant 0 : i32
    %c0_i32_1 = arith.constant 0 : i32
    return %c0_i32, %c0_i32_0 : i32, i32
  }
  func.func @transform_11(%arg0: i32) -> (i32, i32) {
    %c0_i32 = arith.constant 0 : i32
    %c0_i32_0 = arith.constant 0 : i32
    %c0_i32_1 = arith.constant 0 : i32
    return %c0_i32, %c0_i32_0 : i32, i32
  }
  func.func @transform_12(%arg0: i32) -> (i32, i32) {
    %c0_i32 = arith.constant 0 : i32
    %c0_i32_0 = arith.constant 0 : i32
    %c0_i32_1 = arith.constant 0 : i32
    return %c0_i32, %c0_i32_0 : i32, i32
  }
  func.func @transform_13(%arg0: i32) -> (i32, i32) {
    %c0_i32 = arith.constant 0 : i32
    %c0_i32_0 = arith.constant 0 : i32
    %c0_i32_1 = arith.constant 0 : i32
    return %c0_i32, %c0_i32_0 : i32, i32
  }
  func.func @transform_14(%arg0: i32) -> (i32, i32) {
    %c0_i32 = arith.constant 0 : i32
    %c0_i32_0 = arith.constant 0 : i32
    %c0_i32_1 = arith.constant 0 : i32
    return %c0_i32, %c0_i32_0 : i32, i32
  }
  func.func @transform_15(%arg0: i32) -> (i32, i32, i32) {
    %c0_i32 = arith.constant 0 : i32
    %c0_i32_0 = arith.constant 0 : i32
    %c0_i32_1 = arith.constant 0 : i32
    return %arg0, %c0_i32, %c0_i32_0 : i32, i32, i32
  }
}

module attributes {stable_mosaic.version = 11 : i64} {
  func.func @_bottleneck_fc_kernel(%arg0: i32, %arg1: memref<32x1024xbf16, #tpu.memory_space<vmem>>, %arg2: memref<1x1024xi32, #tpu.memory_space<vmem>>, %arg3: memref<1x1024xi32, #tpu.memory_space<vmem>>, %arg4: memref<16x1024xf32, #tpu.memory_space<vmem>>, %arg5: memref<8x32xbf16, #tpu.memory_space<vmem>>, %arg6: memref<8x1xf32, #tpu.memory_space<vmem>>, %arg7: memref<8x1xf32, #tpu.memory_space<vmem>>, %arg8: memref<8x72xbf16, #tpu.memory_space<vmem>>, %arg9: memref<8x1xf32, #tpu.memory_space<vmem>>, %arg10: memref<8x1xf32, #tpu.memory_space<vmem>>, %arg11: memref<32x8xbf16, #tpu.memory_space<vmem>>, %arg12: memref<32x1xf32, #tpu.memory_space<vmem>>, %arg13: memref<32x1xf32, #tpu.memory_space<vmem>>, %arg14: memref<32x128xbf16, #tpu.memory_space<vmem>>, %arg15: memref<1x128xf32, #tpu.memory_space<vmem>>, %arg16: memref<1x16x128xf32, #tpu.memory_space<vmem>>, %arg17: memref<72x1024xf32, #tpu.memory_space<vmem>>) attributes {dimension_semantics = [#tpu.dimension_semantics<parallel>], iteration_bounds = array<i64: 1>, scalar_prefetch = 0 : i64, scratch_operands = 1 : i64, tpu.core_type = #tpu.core_type<tc>, window_params = [{transform_indices = @transform_0, window_bounds = array<i64: 32, 1024>}, {pipeline_mode = #tpu.pipeline_mode<synchronous>, transform_indices = @transform_1, window_bounds = array<i64: 1, 1024>}, {pipeline_mode = #tpu.pipeline_mode<synchronous>, transform_indices = @transform_2, window_bounds = array<i64: 1, 1024>}, {pipeline_mode = #tpu.pipeline_mode<synchronous>, transform_indices = @transform_3, window_bounds = array<i64: 16, 1024>}, {pipeline_mode = #tpu.pipeline_mode<synchronous>, transform_indices = @transform_4, window_bounds = array<i64: 8, 32>}, {pipeline_mode = #tpu.pipeline_mode<synchronous>, transform_indices = @transform_5, window_bounds = array<i64: 8, 1>}, {pipeline_mode = #tpu.pipeline_mode<synchronous>, transform_indices = @transform_6, window_bounds = array<i64: 8, 1>}, {pipeline_mode = #tpu.pipeline_mode<synchronous>, transform_indices = @transform_7, window_bounds = array<i64: 8, 72>}, {pipeline_mode = #tpu.pipeline_mode<synchronous>, transform_indices = @transform_8, window_bounds = array<i64: 8, 1>}, {pipeline_mode = #tpu.pipeline_mode<synchronous>, transform_indices = @transform_9, window_bounds = array<i64: 8, 1>}, {pipeline_mode = #tpu.pipeline_mode<synchronous>, transform_indices = @transform_10, window_bounds = array<i64: 32, 8>}, {pipeline_mode = #tpu.pipeline_mode<synchronous>, transform_indices = @transform_11, window_bounds = array<i64: 32, 1>}, {pipeline_mode = #tpu.pipeline_mode<synchronous>, transform_indices = @transform_12, window_bounds = array<i64: 32, 1>}, {pipeline_mode = #tpu.pipeline_mode<synchronous>, transform_indices = @transform_13, window_bounds = array<i64: 32, 128>}, {pipeline_mode = #tpu.pipeline_mode<synchronous>, transform_indices = @transform_14, window_bounds = array<i64: 1, 128>}, {transform_indices = @transform_15, window_bounds = array<i64: 1, 16, 128>}]} {
    %c0 = arith.constant 0 : index
    %c0_0 = arith.constant 0 : index
    %0 = vector.load %arg5[%c0, %c0_0] : memref<8x32xbf16, #tpu.memory_space<vmem>>, vector<8x32xbf16>
    %c0_1 = arith.constant 0 : index
    %c0_2 = arith.constant 0 : index
    %1 = vector.load %arg1[%c0_1, %c0_2] : memref<32x1024xbf16, #tpu.memory_space<vmem>>, vector<32x1024xbf16>
    %cst = arith.constant dense<0.000000e+00> : vector<8x1024xf32>
    %2 = tpu.matmul %0, %1, %cst {dimension_numbers = #tpu.dot_dimension_numbers<[1], [0], [0], [1], [0, 0, 1, 1], [], []>} : vector<8x32xbf16>, vector<32x1024xbf16>, vector<8x1024xf32> -> vector<8x1024xf32>
    %c0_3 = arith.constant 0 : index
    %c0_4 = arith.constant 0 : index
    %3 = vector.load %arg6[%c0_3, %c0_4] : memref<8x1xf32, #tpu.memory_space<vmem>>, vector<8x1xf32>
    %4 = vector.broadcast %3 : vector<8x1xf32> to vector<8x1024xf32>
    %5 = arith.mulf %2, %4 : vector<8x1024xf32>
    %c0_5 = arith.constant 0 : index
    %c0_6 = arith.constant 0 : index
    %6 = vector.load %arg7[%c0_5, %c0_6] : memref<8x1xf32, #tpu.memory_space<vmem>>, vector<8x1xf32>
    %7 = vector.broadcast %6 : vector<8x1xf32> to vector<8x1024xf32>
    %8 = arith.addf %5, %7 : vector<8x1024xf32>
    %cst_7 = arith.constant 0.000000e+00 : f32
    %9 = vector.broadcast %cst_7 : f32 to vector<8x1024xf32>
    %10 = arith.maximumf %8, %9 : vector<8x1024xf32>
    %c0_8 = arith.constant 0 : index
    %c0_9 = arith.constant 0 : index
    %11 = vector.load %arg3[%c0_8, %c0_9] : memref<1x1024xi32, #tpu.memory_space<vmem>>, vector<1x1024xi32>
    %c0_10 = arith.constant 0 : index
    %c0_11 = arith.constant 0 : index
    %12 = vector.load %arg2[%c0_10, %c0_11] : memref<1x1024xi32, #tpu.memory_space<vmem>>, vector<1x1024xi32>
    %c1_i32 = arith.constant 1 : i32
    %13 = vector.broadcast %c1_i32 : i32 to vector<1x1024xi32>
    %14 = arith.cmpi sge, %11, %13 : vector<1x1024xi32>
    %c6_i32 = arith.constant 6 : i32
    %15 = vector.broadcast %c6_i32 : i32 to vector<1x1024xi32>
    %16 = arith.cmpi sle, %11, %15 : vector<1x1024xi32>
    %c1_i32_12 = arith.constant 1 : i32
    %17 = vector.broadcast %c1_i32_12 : i32 to vector<1x1024xi32>
    %18 = arith.cmpi sge, %12, %17 : vector<1x1024xi32>
    %c6_i32_13 = arith.constant 6 : i32
    %19 = vector.broadcast %c6_i32_13 : i32 to vector<1x1024xi32>
    %20 = arith.cmpi sle, %12, %19 : vector<1x1024xi32>
    %c1_i32_14 = arith.constant 1 : i32
    %21 = tpu.dynamic_rotate %10 by %c1_i32_14 dim 1 : vector<8x1024xf32>, i32 -> vector<8x1024xf32>
    %cst_15 = arith.constant 0.000000e+00 : f32
    %22 = vector.shape_cast %14 : vector<1x1024xi1> to vector<1x1024xi1>
    %23 = vector.broadcast %22 : vector<1x1024xi1> to vector<8x1024xi1>
    %24 = vector.broadcast %cst_15 : f32 to vector<8x1024xf32>
    %25 = arith.select %23, %21, %24 : vector<8x1024xi1>, vector<8x1024xf32>
    %c1023_i32 = arith.constant 1023 : i32
    %26 = tpu.dynamic_rotate %10 by %c1023_i32 dim 1 : vector<8x1024xf32>, i32 -> vector<8x1024xf32>
    %cst_16 = arith.constant 0.000000e+00 : f32
    %27 = vector.shape_cast %16 : vector<1x1024xi1> to vector<1x1024xi1>
    %28 = vector.broadcast %27 : vector<1x1024xi1> to vector<8x1024xi1>
    %29 = vector.broadcast %cst_16 : f32 to vector<8x1024xf32>
    %30 = arith.select %28, %26, %29 : vector<8x1024xi1>, vector<8x1024xf32>
    %c24 = arith.constant 24 : index
    %c0_17 = arith.constant 0 : index
    %31 = vector.load %arg17[%c24, %c0_17] : memref<72x1024xf32, #tpu.memory_space<vmem>>, vector<8x1024xf32>
    tpu.vector_store %arg17[%c24, %c0_17], %25 {strides = array<i32>} : memref<72x1024xf32, #tpu.memory_space<vmem>>, vector<8x1024xf32>,
    %c32 = arith.constant 32 : index
    %c0_18 = arith.constant 0 : index
    %32 = vector.load %arg17[%c32, %c0_18] : memref<72x1024xf32, #tpu.memory_space<vmem>>, vector<8x1024xf32>
    tpu.vector_store %arg17[%c32, %c0_18], %10 {strides = array<i32>} : memref<72x1024xf32, #tpu.memory_space<vmem>>, vector<8x1024xf32>,
    %c40 = arith.constant 40 : index
    %c0_19 = arith.constant 0 : index
    %33 = vector.load %arg17[%c40, %c0_19] : memref<72x1024xf32, #tpu.memory_space<vmem>>, vector<8x1024xf32>
    tpu.vector_store %arg17[%c40, %c0_19], %30 {strides = array<i32>} : memref<72x1024xf32, #tpu.memory_space<vmem>>, vector<8x1024xf32>,
    %c24_20 = arith.constant 24 : index
    %c0_21 = arith.constant 0 : index
    %34 = vector.load %arg17[%c24_20, %c0_21] : memref<72x1024xf32, #tpu.memory_space<vmem>>, vector<24x1024xf32>
    %c8_i32 = arith.constant 8 : i32
    %35 = tpu.dynamic_rotate %34 by %c8_i32 dim 1 : vector<24x1024xf32>, i32 -> vector<24x1024xf32>
    %cst_22 = arith.constant 0.000000e+00 : f32
    %36 = vector.shape_cast %18 : vector<1x1024xi1> to vector<1x1024xi1>
    %37 = vector.broadcast %36 : vector<1x1024xi1> to vector<24x1024xi1>
    %38 = vector.broadcast %cst_22 : f32 to vector<24x1024xf32>
    %39 = arith.select %37, %35, %38 : vector<24x1024xi1>, vector<24x1024xf32>
    %c0_23 = arith.constant 0 : index
    %c0_24 = arith.constant 0 : index
    %40 = vector.load %arg17[%c0_23, %c0_24] : memref<72x1024xf32, #tpu.memory_space<vmem>>, vector<24x1024xf32>
    tpu.vector_store %arg17[%c0_23, %c0_24], %39 {strides = array<i32>} : memref<72x1024xf32, #tpu.memory_space<vmem>>, vector<24x1024xf32>,
    %c1016_i32 = arith.constant 1016 : i32
    %41 = tpu.dynamic_rotate %34 by %c1016_i32 dim 1 : vector<24x1024xf32>, i32 -> vector<24x1024xf32>
    %cst_25 = arith.constant 0.000000e+00 : f32
    %42 = vector.shape_cast %20 : vector<1x1024xi1> to vector<1x1024xi1>
    %43 = vector.broadcast %42 : vector<1x1024xi1> to vector<24x1024xi1>
    %44 = vector.broadcast %cst_25 : f32 to vector<24x1024xf32>
    %45 = arith.select %43, %41, %44 : vector<24x1024xi1>, vector<24x1024xf32>
    %c48 = arith.constant 48 : index
    %c0_26 = arith.constant 0 : index
    %46 = vector.load %arg17[%c48, %c0_26] : memref<72x1024xf32, #tpu.memory_space<vmem>>, vector<24x1024xf32>
    tpu.vector_store %arg17[%c48, %c0_26], %45 {strides = array<i32>} : memref<72x1024xf32, #tpu.memory_space<vmem>>, vector<24x1024xf32>,
    %c0_27 = arith.constant 0 : index
    %c0_28 = arith.constant 0 : index
    %47 = vector.load %arg8[%c0_27, %c0_28] : memref<8x72xbf16, #tpu.memory_space<vmem>>, vector<8x72xbf16>
    %c0_29 = arith.constant 0 : index
    %c0_30 = arith.constant 0 : index
    %48 = vector.load %arg17[%c0_29, %c0_30] : memref<72x1024xf32, #tpu.memory_space<vmem>>, vector<72x1024xf32>
    %49 = arith.truncf %48 : vector<72x1024xf32> to vector<72x1024xbf16>
    %cst_31 = arith.constant dense<0.000000e+00> : vector<8x1024xf32>
    %50 = tpu.matmul %47, %49, %cst_31 {dimension_numbers = #tpu.dot_dimension_numbers<[1], [0], [0], [1], [0, 0, 1, 1], [], []>} : vector<8x72xbf16>, vector<72x1024xbf16>, vector<8x1024xf32> -> vector<8x1024xf32>
    %c0_32 = arith.constant 0 : index
    %c0_33 = arith.constant 0 : index
    %51 = vector.load %arg9[%c0_32, %c0_33] : memref<8x1xf32, #tpu.memory_space<vmem>>, vector<8x1xf32>
    %52 = vector.broadcast %51 : vector<8x1xf32> to vector<8x1024xf32>
    %53 = arith.mulf %50, %52 : vector<8x1024xf32>
    %c0_34 = arith.constant 0 : index
    %c0_35 = arith.constant 0 : index
    %54 = vector.load %arg10[%c0_34, %c0_35] : memref<8x1xf32, #tpu.memory_space<vmem>>, vector<8x1xf32>
    %55 = vector.broadcast %54 : vector<8x1xf32> to vector<8x1024xf32>
    %56 = arith.addf %53, %55 : vector<8x1024xf32>
    %cst_36 = arith.constant 0.000000e+00 : f32
    %57 = vector.broadcast %cst_36 : f32 to vector<8x1024xf32>
    %58 = arith.maximumf %56, %57 : vector<8x1024xf32>
    %c0_37 = arith.constant 0 : index
    %c0_38 = arith.constant 0 : index
    %59 = vector.load %arg11[%c0_37, %c0_38] : memref<32x8xbf16, #tpu.memory_space<vmem>>, vector<32x8xbf16>
    %60 = arith.truncf %58 : vector<8x1024xf32> to vector<8x1024xbf16>
    %cst_39 = arith.constant dense<0.000000e+00> : vector<32x1024xf32>
    %61 = tpu.matmul %59, %60, %cst_39 {dimension_numbers = #tpu.dot_dimension_numbers<[1], [0], [0], [1], [0, 0, 1, 1], [], []>} : vector<32x8xbf16>, vector<8x1024xbf16>, vector<32x1024xf32> -> vector<32x1024xf32>
    %c0_40 = arith.constant 0 : index
    %c0_41 = arith.constant 0 : index
    %62 = vector.load %arg12[%c0_40, %c0_41] : memref<32x1xf32, #tpu.memory_space<vmem>>, vector<32x1xf32>
    %63 = vector.broadcast %62 : vector<32x1xf32> to vector<32x1024xf32>
    %64 = arith.mulf %61, %63 : vector<32x1024xf32>
    %c0_42 = arith.constant 0 : index
    %c0_43 = arith.constant 0 : index
    %65 = vector.load %arg13[%c0_42, %c0_43] : memref<32x1xf32, #tpu.memory_space<vmem>>, vector<32x1xf32>
    %66 = vector.broadcast %65 : vector<32x1xf32> to vector<32x1024xf32>
    %67 = arith.addf %64, %66 : vector<32x1024xf32>
    %c0_44 = arith.constant 0 : index
    %c0_45 = arith.constant 0 : index
    %68 = vector.load %arg1[%c0_44, %c0_45] : memref<32x1024xbf16, #tpu.memory_space<vmem>>, vector<32x1024xbf16>
    %69 = arith.extf %68 : vector<32x1024xbf16> to vector<32x1024xf32>
    %70 = arith.addf %67, %69 : vector<32x1024xf32>
    %cst_46 = arith.constant 0.000000e+00 : f32
    %71 = vector.broadcast %cst_46 : f32 to vector<32x1024xf32>
    %72 = arith.maximumf %70, %71 : vector<32x1024xf32>
    %c0_47 = arith.constant 0 : index
    %c0_48 = arith.constant 0 : index
    %73 = vector.load %arg4[%c0_47, %c0_48] : memref<16x1024xf32, #tpu.memory_space<vmem>>, vector<16x1024xf32>
    %cst_49 = arith.constant dense<0.000000e+00> : vector<16x32xf32>
    %74 = tpu.matmul %73, %72, %cst_49 {dimension_numbers = #tpu.dot_dimension_numbers<[1], [1], [0], [0], [0, 0, 1, 0], [], []>} : vector<16x1024xf32>, vector<32x1024xf32>, vector<16x32xf32> -> vector<16x32xf32>
    %75 = arith.truncf %74 : vector<16x32xf32> to vector<16x32xbf16>
    %c0_50 = arith.constant 0 : index
    %c0_51 = arith.constant 0 : index
    %76 = vector.load %arg14[%c0_50, %c0_51] : memref<32x128xbf16, #tpu.memory_space<vmem>>, vector<32x128xbf16>
    %cst_52 = arith.constant dense<0.000000e+00> : vector<16x128xf32>
    %77 = tpu.matmul %75, %76, %cst_52 {dimension_numbers = #tpu.dot_dimension_numbers<[1], [0], [0], [1], [0, 0, 1, 1], [], []>} : vector<16x32xbf16>, vector<32x128xbf16>, vector<16x128xf32> -> vector<16x128xf32>
    %c0_53 = arith.constant 0 : index
    %c0_54 = arith.constant 0 : index
    %78 = vector.load %arg15[%c0_53, %c0_54] : memref<1x128xf32, #tpu.memory_space<vmem>>, vector<1x128xf32>
    %79 = vector.broadcast %78 : vector<1x128xf32> to vector<16x128xf32>
    %80 = arith.addf %77, %79 : vector<16x128xf32>
    %c0_55 = arith.constant 0 : index
    %c0_56 = arith.constant 0 : index
    %c0_57 = arith.constant 0 : index
    %81 = vector.load %arg16[%c0_55, %c0_56, %c0_57] : memref<1x16x128xf32, #tpu.memory_space<vmem>>, vector<1x16x128xf32>
    %82 = vector.shape_cast %81 : vector<1x16x128xf32> to vector<16x128xf32>
    %83 = vector.shape_cast %80 : vector<16x128xf32> to vector<1x16x128xf32>
    tpu.vector_store %arg16[%c0_55, %c0_56, %c0_57], %83 {strides = array<i32>} : memref<1x16x128xf32, #tpu.memory_space<vmem>>, vector<1x16x128xf32>,
    return
  }
  func.func @transform_0(%arg0: i32) -> (i32, i32) {
    %c0_i32 = arith.constant 0 : i32
    %c0_i32_0 = arith.constant 0 : i32
    return %c0_i32, %arg0 : i32, i32
  }
  func.func @transform_1(%arg0: i32) -> (i32, i32) {
    %c0_i32 = arith.constant 0 : i32
    %c0_i32_0 = arith.constant 0 : i32
    %c0_i32_1 = arith.constant 0 : i32
    return %c0_i32, %c0_i32_0 : i32, i32
  }
  func.func @transform_2(%arg0: i32) -> (i32, i32) {
    %c0_i32 = arith.constant 0 : i32
    %c0_i32_0 = arith.constant 0 : i32
    %c0_i32_1 = arith.constant 0 : i32
    return %c0_i32, %c0_i32_0 : i32, i32
  }
  func.func @transform_3(%arg0: i32) -> (i32, i32) {
    %c0_i32 = arith.constant 0 : i32
    %c0_i32_0 = arith.constant 0 : i32
    %c0_i32_1 = arith.constant 0 : i32
    return %c0_i32, %c0_i32_0 : i32, i32
  }
  func.func @transform_4(%arg0: i32) -> (i32, i32) {
    %c0_i32 = arith.constant 0 : i32
    %c0_i32_0 = arith.constant 0 : i32
    %c0_i32_1 = arith.constant 0 : i32
    return %c0_i32, %c0_i32_0 : i32, i32
  }
  func.func @transform_5(%arg0: i32) -> (i32, i32) {
    %c0_i32 = arith.constant 0 : i32
    %c0_i32_0 = arith.constant 0 : i32
    %c0_i32_1 = arith.constant 0 : i32
    return %c0_i32, %c0_i32_0 : i32, i32
  }
  func.func @transform_6(%arg0: i32) -> (i32, i32) {
    %c0_i32 = arith.constant 0 : i32
    %c0_i32_0 = arith.constant 0 : i32
    %c0_i32_1 = arith.constant 0 : i32
    return %c0_i32, %c0_i32_0 : i32, i32
  }
  func.func @transform_7(%arg0: i32) -> (i32, i32) {
    %c0_i32 = arith.constant 0 : i32
    %c0_i32_0 = arith.constant 0 : i32
    %c0_i32_1 = arith.constant 0 : i32
    return %c0_i32, %c0_i32_0 : i32, i32
  }
  func.func @transform_8(%arg0: i32) -> (i32, i32) {
    %c0_i32 = arith.constant 0 : i32
    %c0_i32_0 = arith.constant 0 : i32
    %c0_i32_1 = arith.constant 0 : i32
    return %c0_i32, %c0_i32_0 : i32, i32
  }
  func.func @transform_9(%arg0: i32) -> (i32, i32) {
    %c0_i32 = arith.constant 0 : i32
    %c0_i32_0 = arith.constant 0 : i32
    %c0_i32_1 = arith.constant 0 : i32
    return %c0_i32, %c0_i32_0 : i32, i32
  }
  func.func @transform_10(%arg0: i32) -> (i32, i32) {
    %c0_i32 = arith.constant 0 : i32
    %c0_i32_0 = arith.constant 0 : i32
    %c0_i32_1 = arith.constant 0 : i32
    return %c0_i32, %c0_i32_0 : i32, i32
  }
  func.func @transform_11(%arg0: i32) -> (i32, i32) {
    %c0_i32 = arith.constant 0 : i32
    %c0_i32_0 = arith.constant 0 : i32
    %c0_i32_1 = arith.constant 0 : i32
    return %c0_i32, %c0_i32_0 : i32, i32
  }
  func.func @transform_12(%arg0: i32) -> (i32, i32) {
    %c0_i32 = arith.constant 0 : i32
    %c0_i32_0 = arith.constant 0 : i32
    %c0_i32_1 = arith.constant 0 : i32
    return %c0_i32, %c0_i32_0 : i32, i32
  }
  func.func @transform_13(%arg0: i32) -> (i32, i32) {
    %c0_i32 = arith.constant 0 : i32
    %c0_i32_0 = arith.constant 0 : i32
    %c0_i32_1 = arith.constant 0 : i32
    return %c0_i32, %c0_i32_0 : i32, i32
  }
  func.func @transform_14(%arg0: i32) -> (i32, i32) {
    %c0_i32 = arith.constant 0 : i32
    %c0_i32_0 = arith.constant 0 : i32
    %c0_i32_1 = arith.constant 0 : i32
    return %c0_i32, %c0_i32_0 : i32, i32
  }
  func.func @transform_15(%arg0: i32) -> (i32, i32, i32) {
    %c0_i32 = arith.constant 0 : i32
    %c0_i32_0 = arith.constant 0 : i32
    %c0_i32_1 = arith.constant 0 : i32
    return %arg0, %c0_i32, %c0_i32_0 : i32, i32, i32
  }
}

</mosaic_0001>

<bundles_post_ra>
// kernel: tpu_custom_call.1
= control target key start
LH: loop header
LB: loop body
LE: loop exit
PB: predicated region body
PF: predicated region fallthrough
CT: control target
= control target key end

     0   :  { %20 = vsyncpa [#allocation4], 0  ;;  %s4003_s0 = inlined_call_operand.hbm [shape: bf16[32,1024], index: 0, kind: input, shape index: {}]   ;;  %s4004_s1 = inlined_call_operand.hbm [shape: s32[1,1024], index: 1, kind: input, shape index: {}]   ;;  %s4005_s2 = inlined_call_operand.hbm [shape: s32[1,1024], index: 2, kind: input, shape index: {}]   ;;  %s4006_s3 = inlined_call_operand.vmem [shape: f32[16,1024], index: 3, kind: input, shape index: {}]   ;;  %s4007_s4 = inlined_call_operand.hbm [shape: bf16[8,32], index: 4, kind: input, shape index: {}]   ;;  %s4008_s5 = inlined_call_operand.vmem [shape: f32[8,1], index: 5, kind: input, shape index: {}]   ;;  %s4009_s6 = inlined_call_operand.vmem [shape: f32[8,1], index: 6, kind: input, shape index: {}]   ;;  %s4010_s7 = inlined_call_operand.vmem [shape: bf16[8,72], index: 7, kind: input, shape index: {}]   ;;  %s4011_s8 = inlined_call_operand.vmem [shape: f32[8,1], index: 8, kind: input, shape index: {}]   ;;  %s4012_s9 = inlined_call_operand.vmem [shape: f32[8,1], index: 9, kind: input, shape index: {}]   ;;  %s4013_s10 = inlined_call_operand.vmem [shape: bf16[32,8], index: 10, kind: input, shape index: {}]   ;;  %s4014_s11 = inlined_call_operand.vmem [shape: f32[32,1], index: 11, kind: input, shape index: {}]   ;;  %s4015_s12 = inlined_call_operand.vmem [shape: f32[32,1], index: 12, kind: input, shape index: {}]   ;;  %s4016_s13 = inlined_call_operand.vmem [shape: bf16[32,128], index: 13, kind: input, shape index: {}]   ;;  %s4017_s14 = inlined_call_operand.vmem [shape: f32[1,128], index: 14, kind: input, shape index: {}]   ;;  %s4018_s15 = inlined_call_operand.hbm [shape: f32[1,16,128], index: 15, kind: output, shape index: {}]  }
   0x1   :  { %21 = vsyncpa [#allocation7], 0 }
   0x2   :  { %22 = vsyncpa [#allocation10], 0 }
   0x3   :  { %23 = vsyncpa [#allocation5], 0  ;;  %s2648_s18 = smov [#allocation6]   ;;  %s2649_s20 = smov [#allocation3]  }
   0x4   :  { %s42_s19 = sshll.u32 %s2648_s18, 4  ;;  %s29_s21 = sshll.u32 %s2649_s20, 4  ;;  %s43_s19 = int_to_ptr.vmem [resolvable:$true] %s42_s19  ;;  %s2744_s21 = int_to_ptr.vmem [resolvable:$true] %s29_s21 }
   0x5   :  { %s2530_s24 = scalar_lea.hbm %s4004_s1, 128 }
   0x6   :  { %p2531_p0 = scmp.ne.s32.totalorder %s4004_s1, %s2530_s24  ;;  %p2534_p1 = scmp.lt.u32.totalorder %s2530_s24, %s4004_s1 }
   0x8   :  { %p2536_p2 = pnand %p2534_p1, %p2531_p0 }
   0xa   :  { %2539 = shalt.err (!%p2536_p2)
}
   0xb   :  { %s2540_s29 = scalar_lea.vmem %s43_s19, 128  ;;  %p2545_p4 = scmp.lt.s32.totalorder %s43_s19, %s43_s19 }
   0xc   :  { %p2541_p3 = scmp.ne.s32.totalorder %s43_s19, %s2540_s29  ;;  %p2546_p5 = scmp.lt.s32.totalorder %s2540_s29, %s2540_s29 }
   0xe   :  { %p2547_p6 = por %p2546_p5, %p2545_p4 }
  0x10   :  { %p2548_p7 = pnand %p2547_p6, %p2541_p3 }
  0x12   :  { %2551 = shalt.err (!%p2548_p7)
}
  0x13   :  { %45 = dma.hbm_to_vmem [thread:$0]  %s4004_s1, 128, %s43_s19, [#allocation7]  }
  0x14   :  { %s2552_s20 = scalar_lea.hbm %s4003_s0, 2048 }
  0x15   :  { %p2553_p8 = scmp.ne.s32.totalorder %s4003_s0, %s2552_s20  ;;  %p2556_p9 = scmp.lt.u32.totalorder %s2552_s20, %s4003_s0 }
  0x17   :  { %p2558_p10 = pnand %p2556_p9, %p2553_p8 }
  0x19   :  { %2561 = shalt.err (!%p2558_p10)
}
  0x1a   :  { %s2562_s26 = scalar_lea.vmem %s2744_s21, 2048  ;;  %p2567_p12 = scmp.lt.s32.totalorder %s2744_s21, %s2744_s21 }
  0x1b   :  { %p2563_p11 = scmp.ne.s32.totalorder %s2744_s21, %s2562_s26  ;;  %p2568_p13 = scmp.lt.s32.totalorder %s2562_s26, %s2562_s26 }
  0x1d   :  { %p2569_p0 = por %p2568_p13, %p2567_p12 }
  0x1f   :  { %p2570_p1 = pnand %p2569_p0, %p2563_p11 }
  0x21   :  { %2573 = shalt.err (!%p2570_p1)
}
  0x22   :  { %s2650_s1 = smov 512   ;;  %s2651_s19 = smov 32  }
  0x23   :  { %35 = dma.hbm_to_vmem [thread:$0]  %s4003_s0, 2048, %s2744_s21, [#allocation4], %s2650_s1, %s2650_s1, %s2651_s19  }
  0x24   :  { %s2652_s29 = smov [#allocation8]   ;;  %s2653_s16 = smov [#allocation9]  }
  0x25   :  { %s52_s30 = sshll.u32 %s2652_s29, 4  ;;  %s64_s17 = sshll.u32 %s2653_s16, 4  ;;  %s53_s30 = int_to_ptr.vmem [resolvable:$true] %s52_s30  ;;  %s65_s17 = int_to_ptr.vmem [resolvable:$true] %s64_s17 }
  0x26   :  { %s2574_s22 = scalar_lea.hbm %s4005_s2, 128 }
  0x27   :  { %p2575_p2 = scmp.ne.s32.totalorder %s4005_s2, %s2574_s22  ;;  %p2578_p3 = scmp.lt.u32.totalorder %s2574_s22, %s4005_s2 }
  0x29   :  { %p2580_p4 = pnand %p2578_p3, %p2575_p2 }
  0x2b   :  { %2583 = shalt.err (!%p2580_p4)
}
  0x2c   :  { %s2584_s0 = scalar_lea.vmem %s53_s30, 128  ;;  %p2589_p6 = scmp.lt.s32.totalorder %s53_s30, %s53_s30 }
  0x2d   :  { %p2585_p5 = scmp.ne.s32.totalorder %s53_s30, %s2584_s0  ;;  %p2590_p7 = scmp.lt.s32.totalorder %s2584_s0, %s2584_s0 }
  0x2f   :  { %p2591_p8 = por %p2590_p7, %p2589_p6 }
  0x31   :  { %p2592_p9 = pnand %p2591_p8, %p2585_p5 }
  0x33   :  { %2595 = shalt.err (!%p2592_p9)
}
  0x34   :  { %55 = dma.hbm_to_vmem [thread:$0]  %s4005_s2, 128, %s53_s30, [#allocation7]  }
  0x35   :  { %s2596_s28 = scalar_lea.hbm %s4007_s4, 64 }
  0x36   :  { %p2597_p10 = scmp.ne.s32.totalorder %s4007_s4, %s2596_s28  ;;  %p2600_p11 = scmp.lt.u32.totalorder %s2596_s28, %s4007_s4 }
  0x38   :  { %p2602_p12 = pnand %p2600_p11, %p2597_p10 }
  0x3a   :  { %2605 = shalt.err (!%p2602_p12)
}
  0x3b   :  { %s2606_s22 = scalar_lea.vmem %s65_s17, 64  ;;  %p2611_p0 = scmp.lt.s32.totalorder %s65_s17, %s65_s17 }
  0x3c   :  { %p2607_p13 = scmp.ne.s32.totalorder %s65_s17, %s2606_s22  ;;  %p2612_p1 = scmp.lt.s32.totalorder %s2606_s22, %s2606_s22 }
  0x3e   :  { %p2613_p2 = por %p2612_p1, %p2611_p0 }
  0x40   :  { %p2614_p3 = pnand %p2613_p2, %p2607_p13 }
  0x42   :  { %2617 = shalt.err (!%p2614_p3)
}
  0x43   :  { %67 = dma.hbm_to_vmem [thread:$0]  %s4007_s4, 64, %s65_s17, [#allocation10]  }
  0x44   :  { %2640 = dma.done.wait [#allocation4], 2048  }
  0x45   :  { %2641 = vsyncadd [#allocation4], 4294965248 }
  0x46   :  { %2642 = dma.done.wait [#allocation7], 256  }
  0x47   :  { %2643 = vsyncadd [#allocation7], 4294967040 }
  0x48   :  { %2644 = dma.done.wait [#allocation10], 64  }
  0x49   :  { %2645 = vsyncadd [#allocation10], 4294967232  ;;  %v4020_v0 = vmov 0   ;;  %v102_v1 = vld [vmem:[#allocation3] sm:$0xff]  ;;  %v103_v3 = vld [vmem:[#allocation3 + $0x8] sm:$0xff]  ;;  %vm4019_vm0 = vcmask 261120  }
  0x4a   :  { %234 = vmatprep.mubr.bf16.mxu0 %v4020_v0  ;;  %275 = vmatprep.mubr.bf16.mxu1 %v4020_v0  ;;  %v106_v2 = vld [vmem:[#allocation3 + $0x20] sm:$0xff]  ;;  %v107_v5 = vld [vmem:[#allocation3 + $0x28] sm:$0xff]  ;;  %v104_v15 = vld [vmem:[#allocation3 + $0x10] sm:$0xff]  ;;  %s2657_s25 = smov 8   ;;  %s2658_s26 = smov 120  }
  0x4b   :  { %2379 = vset.pattern.permute.xlu0 %v4020_v0  ;;  %2525 = vset.pattern.permute.xlu1 %v4020_v0  ;;  %v2167_v4 = vcombine.high %v102_v1, %v106_v2  ;;  %v2166_v6 = vcombine.low %v102_v1, %v106_v2  ;;  %v110_v7 = vld [vmem:[#allocation3 + $0x40] sm:$0xff]  ;;  %v2169_v9 = vcombine.high %v103_v3, %v107_v5  ;;  %v111_v12 = vld [vmem:[#allocation3 + $0x48] sm:$0xff]  ;;  %v108_v16 = vld [vmem:[#allocation3 + $0x30] sm:$0xff] }
  0x4c   :  { %v114_v8 = vld [vmem:[#allocation3 + $0x60] sm:$0xff]  ;;  %v2168_v10 = vcombine.low %v103_v3, %v107_v5  ;;  %v115_v13 = vld [vmem:[#allocation3 + $0x68] sm:$0xff]  ;;  %v105_v17 = vld [vmem:[#allocation3 + $0x18] sm:$0xff]  ;;  %v2171_v23 = vcombine.high %v104_v15, %v108_v16  ;;  %v2170_v30 = vcombine.low %v104_v15, %v108_v16 }
  0x4d   :  { %v2175_v11 = vcombine.high %v110_v7, %v114_v8  ;;  %202 = vmatprep.subr.bf16.mxu0 %v2167_v4  ;;  %v2177_v14 = vcombine.high %v111_v12, %v115_v13  ;;  %243 = vmatprep.subr.bf16.mxu1 %v2169_v9  ;;  %v2174_v18 = vcombine.low %v110_v7, %v114_v8  ;;  %v109_v19 = vld [vmem:[#allocation3 + $0x38] sm:$0xff]  ;;  %v112_v20 = vld [vmem:[#allocation3 + $0x50] sm:$0xff]  ;;  %v366_v26 = vld [vmem:[%s4008_s5] sm:$0xff]  ;;  %s2655_s5 = smov 127  }
  0x4e   :  { %203 = vmatpush1.bf16.msra.mxu0 %v2166_v6  ;;  %v116_v21 = vld [vmem:[#allocation3 + $0x70] sm:$0xff]  ;;  %244 = vmatpush1.bf16.msra.mxu1 %v2168_v10  ;;  %v2176_v22 = vcombine.low %v111_v12, %v115_v13  ;;  %v113_v24 = vld [vmem:[#allocation3 + $0x58] sm:$0xff]  ;;  %v2173_v28 = vcombine.high %v105_v17, %v109_v19  ;;  %v380_v29 = vld [vmem:[%s4009_s6] sm:$0xff]  ;;  %v2172_v31 = vcombine.low %v105_v17, %v109_v19  ;;  %s2656_s6 = smov 1  }
  0x4f   :  { %204 = vmatprep.subr.bf16.mxu0 %v2175_v11  ;;  %v117_v25 = vld [vmem:[#allocation3 + $0x78] sm:$0xff]  ;;  %245 = vmatprep.subr.bf16.mxu1 %v2177_v14  ;;  %v101_v27 = vld [vmem:[#allocation9] sm:$0xf]  ;;  %v2179_v32 = vcombine.high %v112_v20, %v116_v21  ;;  %v2178_v34 = vcombine.low %v112_v20, %v116_v21  ;;  %v424_v20 = vlaneseq  ;;  %v402_v21 = vld [vmem:[#allocation8] sm:$0xff] }
  0x50   :  { %369 = vperm.xlu0 %2379, %v366_v26   ;;  %v2181_v33 = vcombine.high %v113_v24, %v117_v25  ;;  %v2180_v35 = vcombine.low %v113_v24, %v117_v25  ;;  %vm404_vm1 = vcmp.ge.s32.totalorder %v402_v21, 1  ;;  %vm405_vm4 = vcmp.le.s32.totalorder %v402_v21, 6 }
  0x51   :  { %v2851_v24 = vsel %vm404_vm1, 1, %v4020_v0  ;;  %v2853_v25 = vand.u32 127, %v424_v20 }
  0x52   :  { %205 = vmatpush1.bf16.msra.mxu0 %v2174_v18  ;;  %246 = vmatpush1.bf16.msra.mxu1 %v2176_v22  ;;  %v2845_v22 = vshrl.u32 %v424_v20, 7 }
  0x53   :  { %284 = vmatprep.subr.bf16.mxu0 %v2171_v23  ;;  %325 = vmatprep.subr.bf16.mxu1 %v2173_v28  ;;  %vm4023_vm2 = vcmp.lt.s32.totalorder %v2853_v25, 1  ;;  %vm500_vm6 = vcmp.lt.s32.totalorder %v2853_v25, 127 }
  0x54   :  { %383 = vperm.xlu0 %2379, %v380_v29   ;;  %v2848_v23 = vsub.s32 1, %v2845_v22 }
  0x55   :  { %2182 = vmatmul.mubr.msk.bf16.vlgmr.msra.gmra.mrb[0].mxu0 %vm4019_vm0, %v101_v27  ;;  %2183 = vmatmul.mubr.msk.bf16.vlgmr.msra.gmra.mrb[0].mxu1 %vm4019_vm0, %v101_v27 }
  0x56   :  { %285 = vmatpush1.bf16.msra.mxu0 %v2170_v30  ;;  %326 = vmatpush1.bf16.msra.mxu1 %v2172_v31  ;;  %v443_v26 = vrot.slane %v2851_v24, %v2848_v23 }
  0x57   :  { %286 = vmatprep.subr.bf16.mxu0 %v2179_v32  ;;  %327 = vmatprep.subr.bf16.mxu1 %v2181_v33  ;;  %v2867_v32 = vsub.s32 0, %v2845_v22 }
  0x58   :  { %316 = vmatprep.mubr.bf16.mxu0 %v4020_v0  ;;  %357 = vmatprep.mubr.bf16.mxu1 %v4020_v0  ;;  %vm2858_vm3 = vcmp.eq.s32.totalorder %v443_v26, 1 }
  0x5a   :  { %287 = vmatpush1.bf16.msra.mxu0 %v2178_v34  ;;  %328 = vmatpush1.bf16.msra.mxu1 %v2180_v35  ;;  %v439_v35 = vrot.slane %v2851_v24, %v2867_v32 }
  0x5c   :  { %vm2886_vm5 = vcmp.eq.s32.totalorder %v439_v35, 1 }
  0x5d   :  { %2184 = vmatmul.mubr.msk.bf16.vlgmr.msra.gmra.mrb[4].mxu0 %vm4019_vm0, %v101_v27  ;;  %2185 = vmatmul.mubr.msk.bf16.vlgmr.msra.gmra.mrb[4].mxu1 %vm4019_vm0, %v101_v27 }
  0x5e   :  { %1186 = vmatprep.mubr.bf16.mxu0 %v4020_v0  ;;  %1104 = vmatprep.mubr.bf16.mxu1 %v4020_v0 }
  0xcf   :  { %v370_v36 = vpop.permute.xlu0 %369 }
  0xd3   :  { %v384_v38 = vpop.permute.xlu0 %383 }
 0x128   :  { %v236_v37 = vpop.f32.mrb[0].mxu0  ;;  %v277_v40 = vpop.f32.mrb[0].mxu1 }
 0x129   :  { %v372_v39 = vmul.f32 %v370_v36, %v236_v37  ;;  %v238_v41 = vpop.f32.mrb[1].mxu0  ;;  %v279_v43 = vpop.f32.mrb[1].mxu1  ;;  %v374_v48 = vmul.f32 %v370_v36, %v277_v40  ;;  %v2879_v37 = vsub.s32 7, %v2845_v22 }
 0x12a   :  { %v373_v42 = vmul.f32 %v370_v36, %v238_v41  ;;  %v240_v44 = vpop.f32.mrb[2].mxu0  ;;  %v281_v45 = vpop.f32.mrb[2].mxu1  ;;  %v375_v51 = vmul.f32 %v370_v36, %v279_v43 }
 0x12b   :  { %v241_v46 = vpop.f32.mrb[3].mxu0  ;;  %v386_v47 = vadd.f32 %v384_v38, %v372_v39  ;;  %v282_v49 = vpop.f32.mrb[3].mxu1  ;;  %v388_v56 = vadd.f32 %v384_v38, %v374_v48  ;;  %v467_v43 = vrot.slane %v2851_v24, %v2879_v37  ;;  %v2897_v48 = vsub.s32 2, %v2845_v22 }
 0x12c   :  { %v387_v50 = vadd.f32 %v384_v38, %v373_v42  ;;  %v389_v60 = vadd.f32 %v384_v38, %v375_v51 }
 0x12d   :  { %v2817_v52 = vmax.f32 %v386_v47, 0.0  ;;  %v2823_v8 = vmax.f32 %v388_v56, 0.0  ;;  %vm2917_vm9 = vcmp.eq.s32.totalorder %v467_v43, 1 }
 0x12e   :  { %v2819_v53 = vmax.f32 %v387_v50, 0.0  ;;  %v2827_v11 = vmax.f32 %v389_v60, 0.0 }
 0x130   :  { %v318_v54 = vpop.f32.mrb[4].mxu0  ;;  %v2385_v55 = vpack.i.bf16 %v2819_v53, %v2817_v52  ;;  %v359_v58 = vpop.f32.mrb[4].mxu1 }
 0x131   :  { %v376_v57 = vmul.f32 %v370_v36, %v318_v54  ;;  %v320_v59 = vpop.f32.mrb[5].mxu0  ;;  %v378_v61 = vmul.f32 %v370_v36, %v359_v58  ;;  %v361_v62 = vpop.f32.mrb[5].mxu1 }
 0x132   :  { %2386 = vrot.lane.b32.xlu0 %v2385_v55, %s2655_s5  ;;  %2381 = vrot.lane.b32.xlu1 %v2385_v55, %s2656_s6  ;;  %v322_v63 = vpop.f32.mrb[6].mxu0  ;;  %v379_v2 = vmul.f32 %v370_v36, %v361_v62  ;;  %v363_v3 = vpop.f32.mrb[6].mxu1  ;;  %v377_v6 = vmul.f32 %v370_v36, %v320_v59  ;;  %v2876_v36 = vsel %vm405_vm4, 1, %v4020_v0  ;;  %v4081_v0 = vmov 0 }
 0x133   :  { %v390_v1 = vadd.f32 %v384_v38, %v376_v57  ;;  %v323_v4 = vpop.f32.mrb[7].mxu0  ;;  %v392_v5 = vadd.f32 %v384_v38, %v378_v61  ;;  %v364_v7 = vpop.f32.mrb[7].mxu1  ;;  %v513_v39 = vrot.slane %v2876_v36, %v2867_v32  ;;  %v517_v42 = vrot.slane %v2876_v36, %v2848_v23 }
 0x134   :  { %v393_v10 = vadd.f32 %v384_v38, %v379_v2  ;;  %v391_v15 = vadd.f32 %v384_v38, %v377_v6  ;;  %v4061_v57 = vmov 0  ;;  %v541_v58 = vrot.slane %v2876_v36, %v2879_v37 }
 0x135   :  { %v2825_v9 = vmax.f32 %v390_v1, 0.0  ;;  %v2829_v12 = vmax.f32 %v392_v5, 0.0  ;;  %vm2904_vm7 = vcmp.eq.s32.totalorder %v513_v39, 1  ;;  %vm2913_vm8 = vcmp.eq.s32.totalorder %v517_v42, 1 }
 0x136   :  { %412 = vrot.lane.b32.xlu0 %v2823_v8, %s2656_s6  ;;  %v2832_v13 = vmax.f32 %v393_v10, 0.0  ;;  %v2838_v17 = vmax.f32 %v391_v15, 0.0  ;;  %v4062_v57 = vsel %vm2917_vm9, 4294967295, %v4061_v57  ;;  %v447_v63 = vrot.slane %v2851_v24, %v2897_v48 }
 0x137   :  { %4051 = vst [vmem:[#allocation16_spill] sm:$0xff] %v2829_v12  ;;  %v2405_v14 = vpack.i.bf16 %v2825_v9, %v2827_v11  ;;  %vm2960_vm10 = vcmp.eq.s32.totalorder %v541_v58, 1  ;;  %v2965_v15 = vsub.s32 3, %v2845_v22  ;;  %v521_v26 = vrot.slane %v2876_v36, %v2897_v48 }
 0x138   :  { %4052 = vst [vmem:[#allocation17_spill] sm:$0xff] %v2832_v13  ;;  %v2390_v16 = vpack.i.bf16 %v2829_v12, %v2832_v13  ;;  %v2395_v18 = vpack.i.bf16 %v2832_v13, %v2823_v8  ;;  %v2410_v19 = vpack.i.bf16 %v2829_v12, %v2838_v17  ;;  %vm2967_vm11 = vcmp.eq.s32.totalorder %v447_v63, 1 }
 0x139   :  { %vm3000_vm12 = vcmp.eq.s32.totalorder %v521_v26, 1  ;;  %v3005_v42 = vsub.s32 4, %v2845_v22 }
 0x13a   :  { %2406 = vrot.lane.b32.xlu0 %v2405_v14, %s2656_s6  ;;  %2391 = vrot.lane.b32.xlu1 %v2390_v16, %s2656_s6 }
 0x13e   :  { %418 = vrot.lane.b32.xlu0 %v2838_v17, %s2656_s6  ;;  %2396 = vrot.lane.b32.xlu1 %v2395_v18, %s2655_s5 }
 0x142   :  { %2401 = vrot.lane.b32.xlu1 %v2405_v14, %s2655_s5  ;;  %v4064_v14 = vmov 0 }
 0x143   :  { %v4065_v14 = vsel %vm2960_vm10, 4294967295, %v4064_v14 }
 0x144   :  { %4066 = vst [vmem:[#allocation19_spill] sm:$0xff] %v4065_v14 }
 0x146   :  { %2411 = vrot.lane.b32.xlu1 %v2410_v19, %s2655_s5 }
 0x1a4   :  { %v2382_v27 = vpop.permute.xlu1 %2381  ;;  %v2387_v38 = vpop.permute.xlu0 %2386 }
 0x1a5   :  { %v2384_v28 = vunpack.i.h.bf16 %v2382_v27  ;;  %v2383_v29 = vunpack.i.l.bf16 %v2382_v27  ;;  %v2389_v44 = vunpack.i.h.bf16 %v2387_v38  ;;  %v2388_v45 = vunpack.i.l.bf16 %v2387_v38 }
 0x1a7   :  { %v2864_v31 = vsel %vm4023_vm2, %v2383_v29, %v2384_v28  ;;  %v2927_v61 = vsel %vm500_vm6, %v2388_v45, %v2389_v44 }
 0x1a8   :  { %v477_v33 = vsel %vm2858_vm3, %v2864_v31, 0.0  ;;  %v413_v51 = vpop.permute.xlu0 %412  ;;  %v550_v4 = vsel %vm2904_vm7, %v2927_v61, 0.0 }
 0x1a9   :  { %v2415_v34 = vpack.i.bf16 %v2819_v53, %v477_v33  ;;  %v2973_v19 = vsel %vm4023_vm2, %v2384_v28, %v413_v51  ;;  %v451_v28 = vrot.slane %v2851_v24, %v2965_v15 }
 0x1aa   :  { %v478_v33 = vsel %vm2967_vm11, %v2973_v19, 0.0 }
 0x1ab   :  { %2416 = vrot.lane.b32.xlu0 %v2415_v34, %s2657_s25  ;;  %vm3012_vm13 = vcmp.eq.s32.totalorder %v451_v28, 1 }
 0x1ac   :  { %v2884_v40 = vpop.permute.xlu1 %2391  ;;  %v2407_v18 = vpop.permute.xlu0 %2406 }
 0x1ad   :  { %v4022_v46 = vunpack.i.h.bf16 %v2884_v40  ;;  %v2393_v47 = vunpack.i.l.bf16 %v2884_v40 }
 0x1af   :  { %v2902_v49 = vsel %vm4023_vm2, %v2393_v47, %v2383_v29  ;;  %v2933_v62 = vsel %vm4023_vm2, %v4022_v46, %v2393_v47  ;;  %v2408_v29 = vunpack.i.l.bf16 %v2407_v18  ;;  %v2409_v47 = vunpack.i.h.bf16 %v2407_v18 }
 0x1b0   :  { %v2908_v54 = vpop.permute.xlu1 %2396  ;;  %v476_v55 = vsel %vm2886_vm5, %v2902_v49, 0.0  ;;  %v483_v6 = vsel %vm2917_vm9, %v2933_v62, 0.0  ;;  %v525_v18 = vrot.slane %v2876_v36, %v2965_v15  ;;  %vm4090_vm9 = vcmp.lt.s32.totalorder %v2853_v25, 1 }
 0x1b1   :  { %v2399_v59 = vunpack.i.h.bf16 %v2908_v54  ;;  %v2398_v60 = vunpack.i.l.bf16 %v2908_v54  ;;  %v2425_v1 = vpack.i.bf16 %v2817_v52, %v476_v55  ;;  %v2978_v21 = vpack.i.bf16 %v2832_v13, %v483_v6 }
 0x1b2   :  { %v3010_v43 = vsel %vm4023_vm2, %v413_v51, %v2408_v29  ;;  %v455_v55 = vrot.slane %v2851_v24, %v3005_v42  ;;  %v3033_v63 = vsel %vm4023_vm2, %v2408_v29, %v2409_v47  ;;  %vm3059_vm15 = vcmp.eq.s32.totalorder %v525_v18, 1 }
 0x1b3   :  { %v2940_v2 = vsel %vm500_vm6, %v2389_v44, %v2398_v60  ;;  %2426 = vrot.lane.b32.xlu1 %v2425_v1, %s2657_s25  ;;  %v2958_v10 = vsel %vm500_vm6, %v2399_v59, %v2388_v45  ;;  %v2445_v45 = vpack.i.bf16 %v2823_v8, %v478_v33  ;;  %v479_v51 = vsel %vm3012_vm13, %v3010_v43, 0.0 }
 0x1b4   :  { %v2942_v3 = vpop.permute.xlu1 %2401  ;;  %v551_v5 = vsel %vm2913_vm8, %v2940_v2, 0.0  ;;  %4063 = vst [vmem:[#allocation18_spill] sm:$0xff] %v2958_v10  ;;  %v2985_v27 = vsel %vm2960_vm10, %v2958_v10, 0.0  ;;  %vm3035_vm14 = vcmp.eq.s32.totalorder %v455_v55, 1  ;;  %v3084_v18 = vsub.s32 6, %v2845_v22 }
 0x1b5   :  { %v2420_v7 = vpack.i.bf16 %v551_v5, %v550_v4  ;;  %v2403_v20 = vunpack.i.l.bf16 %v2942_v3  ;;  %v2435_v35 = vpack.i.bf16 %v478_v33, %v2985_v27  ;;  %v2404_v5 = vunpack.i.h.bf16 %v2942_v3 }
 0x1b6   :  { %v480_v26 = vsel %vm3035_vm14, %v3033_v63, 0.0  ;;  %v2465_v33 = vpack.i.bf16 %v479_v51, %v2823_v8  ;;  %v529_v3 = vrot.slane %v2876_v36, %v3005_v42 }
 0x1b7   :  { %2421 = vrot.lane.b32.xlu0 %v2420_v7, %s2657_s25  ;;  %2431 = vrot.lane.b32.xlu1 %v2978_v21, %s2657_s25  ;;  %v2998_v38 = vsel %vm500_vm6, %v2398_v60, %v2403_v20  ;;  %v3028_v60 = vsub.s32 5, %v2845_v22  ;;  %v537_v22 = vrot.slane %v2876_v36, %v3084_v18 }
 0x1b8   :  { %v552_v44 = vsel %vm3000_vm12, %v2998_v38, 0.0  ;;  %v2412_v4 = vpop.permute.xlu1 %2411  ;;  %vm3076_vm4 = vcmp.eq.s32.totalorder %v529_v3, 1 }
 0x1b9   :  { %v2460_v58 = vpack.i.bf16 %v479_v51, %v552_v44  ;;  %v2470_v6 = vpack.i.bf16 %v552_v44, %v2827_v11  ;;  %v459_v29 = vrot.slane %v2851_v24, %v3028_v60  ;;  %v2413_v28 = vunpack.i.l.bf16 %v2412_v4 }
 0x1ba   :  { %v3057_v44 = vsel %vm500_vm6, %v2403_v20, %v2404_v5  ;;  %v4079_v20 = vmov 0 }
 0x1bb   :  { %2441 = vrot.lane.b32.xlu0 %v2415_v34, %s2658_s26  ;;  %2436 = vrot.lane.b32.xlu1 %v2435_v35, %s2657_s25  ;;  %v2475_v35 = vpack.i.bf16 %v480_v26, %v2827_v11  ;;  %vm3063_vm1 = vcmp.eq.s32.totalorder %v459_v29, 1  ;;  %v4080_v20 = vsel %vm3076_vm4, 4294967295, %v4079_v20  ;;  %v2414_v29 = vunpack.i.h.bf16 %v2412_v4 }
 0x1bc   :  { %v463_v4 = vrot.slane %v2851_v24, %v3084_v18 }
 0x1bd   :  { %v3109_v46 = vsel %vm500_vm6, %v2413_v28, %v2414_v29  ;;  %v3117_v24 = vsel %vm500_vm6, %v2414_v29, %v2399_v59 }
 0x1be   :  { %4083 = vst [vmem:[#allocation20_spill] sm:$0xff] %v3117_v24  ;;  %vm3126_vm10 = vcmp.eq.s32.totalorder %v463_v4, 1  ;;  %v1236_v4 = vld [vmem:[%s4011_s8] sm:$0xff] }
 0x1bf   :  { %2456 = vrot.lane.b32.xlu0 %v2425_v1, %s2658_s26  ;;  %2446 = vrot.lane.b32.xlu1 %v2445_v45, %s2658_s26 }
 0x1c3   :  { %2461 = vrot.lane.b32.xlu0 %v2460_v58, %s2658_s26  ;;  %2451 = vrot.lane.b32.xlu1 %v2420_v7, %s2658_s26  ;;  %v419_v7 = vpop.permute.xlu0 %418  ;;  %v3074_v58 = vsel %vm500_vm6, %v2404_v5, %v2413_v28  ;;  %v4087_v28 = vmov 0 }
 0x1c4   :  { %v3069_v51 = vsel %vm4023_vm2, %v2409_v47, %v419_v7  ;;  %v533_v47 = vrot.slane %v2876_v36, %v3028_v60  ;;  %vm3119_vm2 = vcmp.eq.s32.totalorder %v537_v22, 1  ;;  %v4084_v36 = vmov 0  ;;  %v1594_v22 = vld [vmem:[%s4015_s12 + $0x8] sm:$0xff] }
 0x1c5   :  { %v481_v5 = vsel %vm3063_vm1, %v3069_v51, 0.0  ;;  %v4085_v36 = vsel %vm3119_vm2, 4294967295, %v4084_v36  ;;  %v4088_v28 = vsel %vm3126_vm10, 4294967295, %v4087_v28  ;;  %v556_v59 = vsel %vm3119_vm2, %v3117_v24, 0.0 }
 0x1c6   :  { %vm3103_vm0 = vcmp.eq.s32.totalorder %v533_v47, 1  ;;  %4086 = vst [vmem:[#allocation21_spill] sm:$0xff] %v4085_v36 }
 0x1c7   :  { %2471 = vrot.lane.b32.xlu0 %v2470_v6, %s2657_s25  ;;  %2466 = vrot.lane.b32.xlu1 %v2465_v33, %s2657_s25  ;;  %v553_v6 = vsel %vm3059_vm15, %v3057_v44, 0.0  ;;  %v554_v33 = vsel %vm3076_vm4, %v3074_v58, 0.0  ;;  %v4082_v0 = vsel %vm3103_vm0, 4294967295, %v4081_v0  ;;  %v555_v47 = vsel %vm3103_vm0, %v3109_v46, 0.0 }
 0x1c8   :  { %v2480_v3 = vpack.i.bf16 %v553_v6, %v2825_v9  ;;  %v2495_v29 = vpack.i.bf16 %v555_v47, %v554_v33 }
 0x1cb   :  { %2476 = vrot.lane.b32.xlu0 %v2475_v35, %s2658_s26  ;;  %628 = vrot.lane.b32.xlu1 %v553_v6, %s2657_s25  ;;  %v2490_v35 = vpack.i.bf16 %v2838_v17, %v481_v5  ;;  %v2485_v6 = vpack.i.bf16 %v2825_v9, %v480_v26  ;;  %v4089_v26 = vunpack.i.h.bf16 %v2884_v40  ;;  %v2510_v40 = vpack.i.bf16 %v556_v59, %v555_v47  ;;  %v1539_v47 = vld [vmem:[%s4014_s11 + $0x10] sm:$0xff] }
 0x1cd   :  { %v3134_v54 = vsel %vm4090_vm9, %v419_v7, %v4089_v26  ;;  %v1250_v7 = vld [vmem:[%s4012_s9] sm:$0xff]  ;;  %v1595_v26 = vld [vmem:[%s4015_s12 + $0x10] sm:$0xff]  ;;  %vm654_vm9 = vcmp.lt.s32.totalorder %v2853_v25, 8 }
 0x1ce   :  { %v482_v5 = vsel %vm3126_vm10, %v3134_v54, 0.0 }
 0x1cf   :  { %796 = vrot.lane.b32.xlu0 %v554_v33, %s2658_s26  ;;  %2481 = vrot.lane.b32.xlu1 %v2480_v3, %s2658_s26  ;;  %v2505_v3 = vpack.i.bf16 %v2829_v12, %v482_v5  ;;  %v1538_v33 = vld [vmem:[%s4014_s11 + $0x8] sm:$0xff] }
 0x1d3   :  { %2491 = vrot.lane.b32.xlu0 %v2490_v35, %s2657_s25  ;;  %2486 = vrot.lane.b32.xlu1 %v2485_v6, %s2657_s25  ;;  %v1593_v6 = vld [vmem:[%s4015_s12] sm:$0xff] }
 0x1d7   :  { %2501 = vrot.lane.b32.xlu0 %v2490_v35, %s2658_s26  ;;  %2496 = vrot.lane.b32.xlu1 %v2495_v29, %s2657_s25  ;;  %v1537_v35 = vld [vmem:[%s4014_s11] sm:$0xff]  ;;  %v4091_v29 = vmov 0  }
 0x1db   :  { %2511 = vrot.lane.b32.xlu0 %v2510_v40, %s2658_s26  ;;  %2506 = vrot.lane.b32.xlu1 %v2505_v3, %s2658_s26 }
 0x1df   :  { %646 = vrot.lane.b32.xlu0 %v556_v59, %s2657_s25  ;;  %2516 = vrot.lane.b32.xlu1 %v2505_v3, %s2657_s25  ;;  %v403_v59 = vld [vmem:[#allocation6] sm:$0xff] }
 0x1e0   :  { %vm406_vm6 = vcmp.ge.s32.totalorder %v403_v59, 1 }
 0x1e1   :  { %v3185_v5 = vsel %vm406_vm6, 1, %v4091_v29  ;;  %vm407_vm6 = vcmp.le.s32.totalorder %v403_v59, 6 }
 0x1e2   :  { %v687_v40 = vrot.slane %v3185_v5, %v2848_v23  ;;  %v3228_v10 = vsel %vm407_vm6, 1, %v4091_v29  ;;  %vm816_vm6 = vcmp.lt.s32.totalorder %v2853_v25, 120 }
 0x1e3   :  { %814 = vrot.lane.b32.xlu0 %v2985_v27, %s2658_s26  ;;  %2521 = vrot.lane.b32.xlu1 %v2978_v21, %s2658_s26  ;;  %v1540_v27 = vld [vmem:[%s4014_s11 + $0x18] sm:$0xff]  ;;  %v865_v45 = vrot.slane %v3228_v10, %v3028_v60 }
 0x1e4   :  { %v1596_v21 = vld [vmem:[%s4015_s12 + $0x18] sm:$0xff]  ;;  %vm3192_vm2 = vcmp.eq.s32.totalorder %v687_v40, 1 }
 0x1e5   :  { %vm2212_vm10 = vmpackc.low %vm3192_vm2, %vm3192_vm2 }
 0x1e7   :  { %1253 = vperm.xlu0 %2379, %v1250_v7   ;;  %1239 = vperm.xlu1 %2525, %v1236_v4  }
 0x1eb   :  { %1548 = vperm.xlu0 %2379, %v1538_v33   ;;  %1543 = vperm.xlu1 %2525, %v1537_v35  }
 0x1ef   :  { %1604 = vperm.xlu0 %2379, %v1594_v22   ;;  %1599 = vperm.xlu1 %2525, %v1593_v6   ;;  %v683_v22 = vrot.slane %v3185_v5, %v2867_v32 }
 0x1f1   :  { %vm3217_vm4 = vcmp.eq.s32.totalorder %v683_v22, 1 }
 0x1f2   :  { %vm2215_vm0 = vmpackc.low %vm3217_vm4, %vm3217_vm4 }
 0x1f3   :  { %1558 = vperm.xlu0 %2379, %v1540_v27   ;;  %1553 = vperm.xlu1 %2525, %v1539_v47  }
 0x1f7   :  { %1614 = vperm.xlu0 %2379, %v1596_v21   ;;  %1609 = vperm.xlu1 %2525, %v1595_v26  }
 0x21d   :  { %v3189_v3 = vpop.permute.xlu0 %2416 }
 0x21e   :  { %v4032_v27 = vunpack.i.h.bf16 %v3189_v3  ;;  %v4031_v21 = vunpack.i.l.bf16 %v3189_v3 }
 0x225   :  { %v2427_v7 = vpop.permute.xlu1 %2426 }
 0x226   :  { %v2429_v4 = vunpack.i.h.bf16 %v2427_v7  ;;  %v2428_v35 = vunpack.i.l.bf16 %v2427_v7 }
 0x228   :  { %v674_v47 = vsel %vm654_vm9, %v2429_v4, %v4032_v27  ;;  %v673_v26 = vsel %vm654_vm9, %v2428_v35, %v4031_v21 }
 0x229   :  { %v3200_v6 = vpop.permute.xlu0 %2421  ;;  %v2213_v7 = vpack.c.bf16 %v674_v47, %v673_v26  ;;  %v3215_v59 = vpop.permute.xlu1 %2431 }
 0x22a   :  { %v4035_v40 = vunpack.i.h.bf16 %v3200_v6  ;;  %v2423_v24 = vunpack.i.l.bf16 %v3200_v6  ;;  %v4044_v27 = vunpack.i.h.bf16 %v3215_v59  ;;  %v4042_v36 = vunpack.i.l.bf16 %v3215_v59 }
 0x22b   :  { %2214 = vmatprep.subr.msk.bf16.mxu1 %vm2212_vm10, %v2213_v7  ;;  %vm2218_vm10 = vmpackc.low %vm2858_vm3, %vm3192_vm2 }
 0x22c   :  { %v675_v21 = vsel %vm654_vm9, %v2423_v24, %v4035_v40  ;;  %v676_v22 = vsel %vm654_vm9, %v4042_v36, %v2428_v35  ;;  %v677_v40 = vsel %vm654_vm9, %v4044_v27, %v2429_v4  ;;  %v2225_v4 = vpack.c.bf16 %v2940_v2, %v2819_v53  ;;  %vm2221_vm2 = vmpackc.low %vm2886_vm5, %vm3217_vm4 }
 0x22d   :  { %v2442_v47 = vpop.permute.xlu0 %2441  ;;  %v2219_v26 = vpack.c.bf16 %v2864_v31, %v675_v21  ;;  %v2216_v13 = vpack.c.bf16 %v677_v40, %v676_v22  ;;  %v3242_v14 = vpop.permute.xlu1 %2436  ;;  %v849_v31 = vrot.slane %v3228_v10, %v2848_v23 }
 0x22e   :  { %v4041_v21 = vunpack.i.l.bf16 %v3242_v14  ;;  %v2444_v23 = vunpack.i.h.bf16 %v2442_v47  ;;  %v2443_v30 = vunpack.i.l.bf16 %v2442_v47 }
 0x22f   :  { %2217 = vmatpush1.bf16.msk.msra.mxu1 %vm2215_vm0, %v2216_v13  ;;  %v845_v13 = vrot.slane %v3228_v10, %v2867_v32  ;;  %vm2659_vm0 = vmmov 1  }
 0x230   :  { %v678_v33 = vsel %vm654_vm9, %v4041_v21, %v2423_v24  ;;  %2220 = vmatprep.subr.msk.bf16.mxu1 %vm2218_vm10, %v2219_v26  ;;  %vm2224_vm3 = vmpackc.low %vm2913_vm8, %vm2659_vm0  ;;  %vm3272_vm10 = vcmp.eq.s32.totalorder %v849_v31, 1  ;;  %v2228_v26 = vpack.c.bf16 %v2927_v61, %v2817_v52 }
 0x231   :  { %v3251_v35 = vpop.permute.xlu0 %2456  ;;  %v2222_v40 = vpack.c.bf16 %v2902_v49, %v678_v33  ;;  %v3267_v7 = vpop.permute.xlu1 %2446  ;;  %vm2227_vm5 = vmpackc.low %vm2904_vm7, %vm2659_vm0  ;;  %vm3301_vm4 = vcmp.eq.s32.totalorder %v845_v13, 1 }
 0x232   :  { %v4040_v12 = vunpack.i.h.bf16 %v3251_v35  ;;  %v4039_v41 = vunpack.i.l.bf16 %v3251_v35  ;;  %v4048_v32 = vunpack.i.h.bf16 %v3267_v7  ;;  %v2448_v2 = vunpack.i.l.bf16 %v3267_v7  ;;  %vm2230_vm8 = vmpackc.low %vm3272_vm10, %vm3272_vm10 }
 0x233   :  { %2223 = vmatpush1.bf16.msk.msra.mxu1 %vm2221_vm2, %v2222_v40  ;;  %v691_v40 = vrot.slane %v3185_v5, %v2897_v48  ;;  %vm2233_vm7 = vmpackc.low %vm3301_vm4, %vm3301_vm4  ;;  %vm4050_vm2 = vcmask 1043456  }
 0x234   :  { %v833_v56 = vsel %vm816_vm6, %v2444_v23, %v4048_v32  ;;  %v832_v24 = vsel %vm816_vm6, %v2443_v30, %v2448_v2  ;;  %2226 = vmatprep.subr.msk.bf16.mxu1 %vm2224_vm3, %v2225_v4  ;;  %v695_v4 = vrot.slane %v3185_v5, %v2965_v15  ;;  %v835_v50 = vsel %vm816_vm6, %v4039_v41, %v2443_v30 }
 0x235   :  { %v3280_v49 = vpop.permute.xlu0 %2461  ;;  %v2231_v22 = vpack.c.bf16 %v833_v56, %v832_v24  ;;  %v3296_v31 = vpop.permute.xlu1 %2451  ;;  %v836_v52 = vsel %vm816_vm6, %v4040_v12, %v2444_v23 }
 0x236   :  { %v4047_v47 = vunpack.i.l.bf16 %v3280_v49  ;;  %v2454_v61 = vunpack.i.h.bf16 %v3296_v31  ;;  %v4043_v13 = vunpack.i.l.bf16 %v3296_v31  ;;  %vm3339_vm3 = vcmp.eq.s32.totalorder %v695_v4, 1 }
 0x237   :  { %2229 = vmatpush1.bf16.msk.msra.mxu1 %vm2227_vm5, %v2228_v26  ;;  %v2234_v26 = vpack.c.bf16 %v836_v52, %v835_v50  ;;  %vm2236_vm5 = vmpackc.low %vm3339_vm3, %vm3339_vm3 }
 0x238   :  { %v834_v30 = vsel %vm816_vm6, %v2454_v61, %v4047_v47  ;;  %v837_v23 = vsel %vm816_vm6, %v4043_v13, %v2454_v61  ;;  %2232 = vmatprep.subr.msk.bf16.mxu1 %vm2230_vm8, %v2231_v22  ;;  %v2439_v22 = vunpack.i.h.bf16 %v3242_v14  ;;  %vm4049_vm8 = vcmask 588800  }
 0x239   :  { %v3319_v56 = vpop.permute.xlu0 %2471  ;;  %v899_v41 = vsel %vm3272_vm10, %v834_v30, 0.0  ;;  %v3335_v12 = vpop.permute.xlu1 %2466  ;;  %v898_v21 = vsel %vm3301_vm4, %v837_v23, 0.0  ;;  %vm3357_vm10 = vcmp.eq.s32.totalorder %v691_v40, 1  ;;  %v4104_v23 = vunpack.i.h.bf16 %v3189_v3 }
 0x23a   :  { %v4046_v24 = vunpack.i.l.bf16 %v3319_v56  ;;  %v1036_v61 = vpack.c.bf16 %v899_v41, %v899_v41  ;;  %v4045_v13 = vunpack.i.h.bf16 %v3335_v12  ;;  %v2468_v27 = vunpack.i.l.bf16 %v3335_v12  ;;  %vm2239_vm4 = vmpackc.low %vm3357_vm10, %vm3357_vm10 }
 0x23b   :  { %2235 = vmatpush1.bf16.msk.msra.mxu1 %vm2233_vm7, %v2234_v26  ;;  %v1035_v53 = vpack.c.bf16 %v898_v21, %v898_v21  ;;  %v2474_v52 = vunpack.i.h.bf16 %v3319_v56  ;;  %vm2242_vm7 = vmpackc.low %vm3012_vm13, %vm3339_vm3 }
 0x23c   :  { %v667_v33 = vsel %vm654_vm9, %v2439_v22, %v4045_v13  ;;  %v668_v4 = vsel %vm654_vm9, %v2468_v27, %v4046_v24  ;;  %2186 = vmatprep.subr.msk.bf16.mxu1 %vm4050_vm2, %v1036_v61  ;;  %v671_v26 = vsel %vm654_vm9, %v4104_v23, %v2468_v27  ;;  %v703_v23 = vrot.slane %v3185_v5, %v3028_v60  ;;  %vm3456_vm13 = vmpackc.low %vm3059_vm15, %vm2659_vm0 }
 0x23d   :  { %v3346_v50 = vpop.permute.xlu0 %2476  ;;  %v2237_v30 = vpack.c.bf16 %v668_v4, %v667_v33  ;;  %v3362_v21 = vpop.permute.xlu1 %628  ;;  %v1049_v61 = vsel %vm4050_vm2, %v1035_v53, 0  ;;  %v3380_v33 = vld [vmem:[%s4010_s7] sm:$0xf]  ;;  %v4105_v4 = vunpack.i.l.bf16 %v3189_v3  ;;  %v857_v53 = vrot.slane %v3228_v10, %v2965_v15 }
 0x23e   :  { %v669_v40 = vsel %vm654_vm9, %v2474_v52, %v3362_v21  ;;  %v699_v15 = vrot.slane %v3185_v5, %v3005_v42  ;;  %v2464_v3 = vunpack.i.h.bf16 %v3280_v49  ;;  %v2478_v32 = vunpack.i.l.bf16 %v3346_v50 }
 0x23f   :  { %1081 = vmatpush1.bf16.msra.mxu1 %v1049_v61  ;;  %v670_v27 = vsel %vm654_vm9, %v4105_v4, %v2439_v22  ;;  %v853_v61 = vrot.slane %v3228_v10, %v2897_v48  ;;  %v2252_v22 = vpack.c.bf16 %v2998_v38, %v2823_v8 }
 0x240   :  { %2238 = vmatprep.subr.msk.bf16.mxu1 %vm2236_vm5, %v2237_v30  ;;  %v2240_v24 = vpack.c.bf16 %v671_v26, %v670_v27  ;;  %v4106_v30 = vunpack.i.h.bf16 %v3200_v6  ;;  %v2243_v26 = vpack.c.bf16 %v3010_v43, %v669_v40  ;;  %v2249_v27 = vpack.c.bf16 %v3057_v44, %v2827_v11  ;;  %vm2245_vm5 = vmpackc.low %vm2967_vm11, %vm3357_vm10 }
 0x241   :  { %v3375_v13 = vpop.permute.xlu0 %796  ;;  %v3397_v47 = vpop.permute.xlu1 %2481  ;;  %vm3446_vm2 = vcmp.eq.s32.totalorder %v853_v61, 1  ;;  %vm3460_vm3 = vcmp.eq.s32.totalorder %v699_v15, 1  ;;  %v829_v15 = vsel %vm816_vm6, %v2448_v2, %v2464_v3  ;;  %v4121_v2 = vunpack.i.l.bf16 %v3319_v56 }
 0x242   :  { %v672_v48 = vsel %vm654_vm9, %v4106_v30, %v2474_v52  ;;  %v2484_v4 = vunpack.i.h.bf16 %v3397_v47  ;;  %2187 = vmatmul.mubr.msk.bf16.vlgmr.msra.gmra.mrb[8].mxu1 %vm4049_vm8, %v3380_v33  ;;  %v2483_v8 = vunpack.i.l.bf16 %v3397_v47  ;;  %vm3432_vm8 = vcmp.eq.s32.totalorder %v857_v53, 1  ;;  %vm2263_vm15 = vmpackc.low %vm3460_vm3, %vm3460_vm3 }
 0x243   :  { %2241 = vmatpush1.bf16.msk.msra.mxu1 %vm2239_vm4, %v2240_v24  ;;  %1145 = vmatprep.mubr.bf16.mxu1 %v4091_v29  ;;  %vm3442_vm4 = vcmp.eq.s32.totalorder %v703_v23, 1  ;;  %v2246_v24 = vpack.c.bf16 %v2973_v19, %v672_v48  ;;  %v2479_v52 = vunpack.i.h.bf16 %v3346_v50  ;;  %v4119_v48 = vunpack.i.h.bf16 %v3267_v7  ;;  %vm2254_vm11 = vmpackc.low %vm3432_vm8, %vm3432_vm8 }
 0x244   :  { %2244 = vmatprep.subr.msk.bf16.mxu1 %vm2242_vm7, %v2243_v26  ;;  %v828_v19 = vsel %vm816_vm6, %v2484_v4, %v3375_v13  ;;  %vm3470_vm7 = vmpackc.low %vm3000_vm12, %vm2659_vm0  ;;  %v827_v60 = vsel %vm816_vm6, %v2478_v32, %v2483_v8  ;;  %v2276_v53 = vpack.c.bf16 %v3074_v58, %v2825_v9 }
 0x245   :  { %v3425_v38 = vpop.permute.xlu0 %2491  ;;  %v2487_v40 = vpop.permute.xlu1 %2486  ;;  %v830_v26 = vsel %vm816_vm6, %v4119_v48, %v2478_v32  ;;  %vm2260_vm12 = vmpackc.low %vm3442_vm4, %vm3442_vm4  ;;  %v901_v56 = vsel %vm3432_vm8, %v828_v19, 0.0 }
 0x246   :  { %v2494_v43 = vunpack.i.h.bf16 %v3425_v38  ;;  %v2493_v34 = vunpack.i.l.bf16 %v3425_v38  ;;  %v2489_v23 = vunpack.i.h.bf16 %v2487_v40  ;;  %v2488_v61 = vunpack.i.l.bf16 %v2487_v40  ;;  %vm2257_vm10 = vmpackc.low %vm3446_vm2, %vm3446_vm2 }
 0x247   :  { %v4120_v40 = vunpack.i.l.bf16 %v3280_v49  ;;  %2247 = vmatpush1.bf16.msk.msra.mxu1 %vm2245_vm5, %v2246_v24  ;;  %v1038_v30 = vpack.c.bf16 %v901_v56, %v901_v56  ;;  %vm2266_vm5 = vmpackc.low %vm3063_vm1, %vm3442_vm4  ;;  %vm4123_vm1 = vnez %v4082_v0  ;;  %v4158_v0 = vunpack.i.l.bf16 %v3296_v31 }
 0x248   :  { %v665_v49 = vsel %vm654_vm9, %v4121_v2, %v2489_v23  ;;  %v662_v32 = vsel %vm654_vm9, %v2489_v23, %v2494_v43  ;;  %v661_v41 = vsel %vm654_vm9, %v2488_v61, %v2493_v34  ;;  %2250 = vmatprep.subr.msk.bf16.mxu1 %vm3456_vm13, %v2249_v27  ;;  %vm2269_vm8 = vmpackc.low %vm3035_vm14, %vm3460_vm3  ;;  %vm3607_vm13 = vcmp.eq.s32.totalorder %v865_v45, 1 }
 0x249   :  { %v831_v39 = vsel %vm816_vm6, %v4120_v40, %v2484_v4  ;;  %v3497_v7 = vpop.permute.xlu0 %2501  ;;  %v4122_v4 = vunpack.i.h.bf16 %v3335_v12  ;;  %v826_v12 = vsel %vm816_vm6, %v2464_v3, %v2479_v52  ;;  %v2261_v23 = vpack.c.bf16 %v662_v32, %v661_v41  ;;  %v3529_v48 = vpop.permute.xlu1 %2496  ;;  %vm3592_vm4 = vmpackc.low %vm4123_vm1, %vm2659_vm0 }
 0x24a   :  { %v2255_v27 = vpack.c.bf16 %v827_v60, %v826_v12  ;;  %v2499_v36 = vunpack.i.h.bf16 %v3529_v48  ;;  %v900_v40 = vsel %vm3446_vm2, %v831_v39, 0.0  ;;  %v2258_v3 = vpack.c.bf16 %v830_v26, %v829_v15 }
 0x24b   :  { %v664_v16 = vsel %vm654_vm9, %v4122_v4, %v2488_v61  ;;  %v2498_v61 = vunpack.i.l.bf16 %v3529_v48  ;;  %2253 = vmatpush1.bf16.msk.msra.mxu1 %vm3470_vm7, %v2252_v22  ;;  %2262 = vmatprep.subr.msk.bf16.mxu0 %vm2260_vm12, %v2261_v23  ;;  %v711_v60 = vrot.slane %v3185_v5, %v2879_v37  ;;  %v861_v15 = vrot.slane %v3228_v10, %v3005_v42 }
 0x24c   :  { %v2264_v24 = vpack.c.bf16 %v665_v49, %v664_v16  ;;  %2256 = vmatprep.subr.msk.bf16.mxu1 %vm2254_vm11, %v2255_v27  ;;  %v1037_v49 = vpack.c.bf16 %v900_v40, %v900_v40  ;;  %v2504_v4 = vunpack.i.h.bf16 %v3497_v7  ;;  %v2503_v44 = vunpack.i.l.bf16 %v3497_v7 }
 0x24d   :  { %v3545_v19 = vpop.permute.xlu0 %2511  ;;  %v663_v22 = vsel %vm654_vm9, %v2498_v61, %v2499_v36  ;;  %v666_v26 = vsel %vm654_vm9, %v3362_v21, %v2498_v61  ;;  %v3579_v2 = vpop.permute.xlu1 %2506  ;;  %v2273_v16 = vpack.c.bf16 %v3109_v46, %v2838_v17  ;;  %vm4128_vm2 = vcmask 1043456  }
 0x24e   :  { %2265 = vmatpush1.bf16.msk.msra.mxu0 %vm2263_vm15, %v2264_v24  ;;  %v2514_v42 = vunpack.i.h.bf16 %v3545_v19  ;;  %v2267_v21 = vpack.c.bf16 %v3069_v51, %v663_v22  ;;  %v2270_v39 = vpack.c.bf16 %v3033_v63, %v666_v26  ;;  %v2513_v11 = vunpack.i.l.bf16 %v3545_v19  ;;  %vm4139_vm3 = vmmov %vm4128_vm2 }
 0x24f   :  { %v2509_v55 = vunpack.i.h.bf16 %v3579_v2  ;;  %v2508_v51 = vunpack.i.l.bf16 %v3579_v2  ;;  %2259 = vmatpush1.bf16.msk.msra.mxu1 %vm2257_vm10, %v2258_v3  ;;  %vm3628_vm7 = vcmp.eq.s32.totalorder %v861_v15, 1  ;;  %v4131_v45 = vrot.slane %v3185_v5, %v3084_v18  ;;  %vm2278_vm10 = vmpackc.low %vm3607_vm13, %vm3607_vm13 }
 0x250   :  { %v822_v32 = vsel %vm816_vm6, %v2513_v11, %v2514_v42  ;;  %2268 = vmatprep.subr.msk.bf16.mxu0 %vm2266_vm5, %v2267_v21  ;;  %v825_v17 = vsel %vm816_vm6, %v3375_v13, %v2513_v11  ;;  %2188 = vmatprep.subr.msk.bf16.mxu1 %vm4128_vm2, %v1038_v30  ;;  %vm4134_vm11 = vnez %v4080_v20  ;;  %vm3650_vm14 = vcmp.eq.s32.totalorder %v711_v60, 1 }
 0x251   :  { %v821_v46 = vsel %vm816_vm6, %v2504_v4, %v2509_v55  ;;  %v820_v6 = vsel %vm816_vm6, %v2503_v44, %v2508_v51  ;;  %vm3635_vm12 = vcmp.eq.s32.totalorder %v4131_v45, 1  ;;  %vm3642_vm15 = vmpackc.low %vm4134_vm11, %vm2659_vm0  ;;  %v2517_v41 = vpop.permute.xlu1 %2516  ;;  %v824_v20 = vsel %vm816_vm6, %v2483_v8, %v2504_v4  ;;  %v647_v12 = vpop.permute.xlu0 %646  ;;  %v4150_v4 = vld [vmem:[#allocation17_spill] sm:$0xff] }
 0x252   :  { %2271 = vmatpush1.bf16.msk.msra.mxu0 %vm2269_vm8, %v2270_v39  ;;  %v2519_v56 = vunpack.i.h.bf16 %v2517_v41  ;;  %v2518_v24 = vunpack.i.l.bf16 %v2517_v41  ;;  %v1055_v23 = vsel %vm4139_vm3, %v1037_v49, 0  ;;  %v823_v9 = vsel %vm816_vm6, %v2479_v52, %v2503_v44  ;;  %vm2284_vm5 = vmpackc.low %vm3650_vm14, %vm3650_vm14  ;;  %v4148_v49 = vld [vmem:[#allocation19_spill] sm:$0xff]  ;;  %v4151_v44 = vld [vmem:[#allocation18_spill] sm:$0xff] }
 0x253   :  { %2274 = vmatprep.subr.msk.bf16.mxu0 %vm3592_vm4, %v2273_v16  ;;  %v2279_v58 = vpack.c.bf16 %v821_v46, %v820_v6  ;;  %1122 = vmatpush1.bf16.msra.mxu1 %v1055_v23  ;;  %v903_v47 = vsel %vm3607_vm13, %v822_v32, 0.0  ;;  %v902_v8 = vsel %vm3628_vm7, %v825_v17, 0.0  ;;  %v4140_v27 = vunpack.i.h.bf16 %v3215_v59  ;;  %vm2281_vm8 = vmpackc.low %vm3628_vm7, %vm3628_vm7  ;;  %v4159_v17 = vld [vmem:[#allocation21_spill] sm:$0xff]  ;;  %v4161_v46 = vld [vmem:[#allocation16_spill] sm:$0xff] }
 0x254   :  { %v659_v50 = vsel %vm654_vm9, %v2494_v43, %v2519_v56  ;;  %v4141_v52 = vunpack.i.l.bf16 %v3215_v59  ;;  %v658_v3 = vsel %vm654_vm9, %v2493_v34, %v2518_v24  ;;  %v4142_v60 = vunpack.i.l.bf16 %v3242_v14  ;;  %vm2287_vm4 = vmpackc.low %vm3635_vm12, %vm3635_vm12  ;;  %v4162_v6 = vld [vmem:[#allocation20_spill] sm:$0xff] }
 0x255   :  { %v656_v61 = vsel %vm654_vm9, %v2519_v56, %v4140_v27  ;;  %v2288_v15 = vpack.c.bf16 %v659_v50, %v658_v3  ;;  %v2282_v38 = vpack.c.bf16 %v824_v20, %v823_v9  ;;  %v2522_v34 = vpop.permute.xlu1 %2521  ;;  %vm4143_vm1 = vcmask 588800   ;;  %vm4145_vm7 = vmmov %vm4139_vm3  ;;  %v2527_v50 = vld [vmem:[%s4013_s10 + $0x8] sm:$0xff]  }
 0x256   :  { %v655_v40 = vsel %vm654_vm9, %v2518_v24, %v4141_v52  ;;  %2277 = vmatpush1.bf16.msk.msra.mxu0 %vm3642_vm15, %v2276_v53  ;;  %v657_v59 = vsel %vm654_vm9, %v647_v12, %v4142_v60  ;;  %2189 = vmatmul.mubr.msk.bf16.vlgmr.msra.gmra.mrb[12].mxu1 %vm4143_vm1, %v3380_v33  ;;  %v1040_v14 = vpack.c.bf16 %v903_v47, %v903_v47  ;;  %v2524_v21 = vunpack.i.h.bf16 %v2522_v34 }
 0x257   :  { %v2285_v43 = vpack.c.bf16 %v656_v61, %v655_v40  ;;  %2280 = vmatprep.subr.msk.bf16.mxu0 %vm2278_vm10, %v2279_v58  ;;  %vm4144_vm13 = vnez %v4062_v57  ;;  %v1039_v30 = vpack.c.bf16 %v902_v8, %v902_v8  ;;  %1227 = vmatprep.mubr.bf16.mxu1 %v4091_v29  ;;  %v660_v22 = vsel %vm654_vm9, %v2499_v36, %v647_v12  ;;  %v815_v36 = vpop.permute.xlu0 %814  ;;  %vm4147_vm9 = vmmov %vm4139_vm3  ;;  %v2526_v61 = vld [vmem:[%s4013_s10] sm:$0xff]  }
 0x258   :  { %vm2290_vm2 = vmpackc.low %vm4144_vm13, %vm3650_vm14  ;;  %v2291_v26 = vpack.c.bf16 %v2933_v62, %v657_v59  ;;  %v2523_v39 = vunpack.i.l.bf16 %v2522_v34  ;;  %vm4146_vm11 = vnez %v4088_v28  ;;  %v869_v57 = vrot.slane %v3228_v10, %v3084_v18 }
 0x259   :  { %2286 = vmatprep.subr.msk.bf16.mxu1 %vm2284_vm5, %v2285_v43  ;;  %vm2293_vm15 = vmpackc.low %vm4146_vm11, %vm3635_vm12  ;;  %v873_v48 = vrot.slane %v3228_v10, %v2879_v37  ;;  %v2294_v62 = vpack.c.bf16 %v3134_v54, %v660_v22  ;;  %v1061_v11 = vsel %vm4147_vm9, %v1039_v30, 0  ;;  %vm4149_vm14 = vnez %v4148_v49 }
 0x25a   :  { %2283 = vmatpush1.bf16.msk.msra.mxu0 %vm2281_vm8, %v2282_v38  ;;  %2289 = vmatpush1.bf16.msk.msra.mxu1 %vm2287_vm4, %v2288_v15  ;;  %vm2296_vm3 = vmpackc.low %vm4149_vm14, %vm2659_vm0  ;;  %v2297_v28 = vpack.c.bf16 %v4151_v44, %v4150_v4  ;;  %v4152_v63 = vunpack.i.h.bf16 %v3251_v35  ;;  %v4153_v37 = vunpack.i.l.bf16 %v3251_v35  ;;  %vm3737_vm12 = vcmp.eq.s32.totalorder %v869_v57, 1 }
 0x25b   :  { %2190 = vmatprep.subr.msk.bf16.mxu0 %vm4145_vm7, %v1040_v14  ;;  %2292 = vmatprep.subr.msk.bf16.mxu1 %vm2290_vm2, %v2291_v26  ;;  %vm3741_vm10 = vcmp.eq.s32.totalorder %v873_v48, 1  ;;  %v819_v32 = vsel %vm816_vm6, %v2514_v42, %v815_v36  ;;  %v840_v35 = vsel %vm816_vm6, %v815_v36, %v4158_v0  ;;  %vm4160_vm5 = vnez %v4159_v17  ;;  %vm4165_vm2 = vmmov %vm4143_vm1 }
 0x25c   :  { %v839_v18 = vsel %vm816_vm6, %v2524_v21, %v4152_v63  ;;  %v838_v10 = vsel %vm816_vm6, %v2523_v39, %v4153_v37  ;;  %vm2299_vm8 = vmpackc.low %vm4160_vm5, %vm2659_vm0  ;;  %v2300_v13 = vpack.c.bf16 %v4162_v6, %v4161_v46  ;;  %v817_v31 = vsel %vm816_vm6, %v2508_v51, %v2523_v39 }
 0x25d   :  { %vm2302_vm4 = vmpackc.low %vm3741_vm10, %vm3741_vm10  ;;  %v818_v19 = vsel %vm816_vm6, %v2509_v55, %v2524_v21  ;;  %v2303_v42 = vpack.c.bf16 %v839_v18, %v838_v10  ;;  %v904_v45 = vsel %vm3737_vm12, %v819_v32, 0.0  ;;  %v905_v7 = vsel %vm3741_vm10, %v840_v35, 0.0 }
 0x25e   :  { %1163 = vmatpush1.bf16.msra.mxu0 %v1061_v11  ;;  %2295 = vmatpush1.bf16.msk.msra.mxu1 %vm2293_vm15, %v2294_v62  ;;  %vm2305_vm0 = vmpackc.low %vm3737_vm12, %vm3737_vm12  ;;  %v2306_v51 = vpack.c.bf16 %v818_v19, %v817_v31  ;;  %v1041_v2 = vpack.c.bf16 %v904_v45, %v904_v45  ;;  %v1042_v1 = vpack.c.bf16 %v905_v7, %v905_v7  ;;  %vm1294_vm15 = vcmask 64512   ;;  %v2528_v45 = vld [vmem:[%s4016_s13] sm:$0xff]  }
 0x25f   :  { %2298 = vmatprep.subr.msk.bf16.mxu1 %vm2296_vm3, %v2297_v28  ;;  %vm4163_vm6 = vmmov %vm4145_vm7  ;;  %v2660_v7 = vmov 0.0  }
 0x260   :  { %vm4164_vm13 = vmmov %vm4163_vm6 }
 0x261   :  { %2191 = vmatmul.mubr.msk.bf16.vlgmr.msra.gmra.mrb[8].mxu0 %vm4143_vm1, %v3380_v33  ;;  %v1067_v25 = vsel %vm4164_vm13, %v1041_v2, 0  ;;  %vm4166_vm7 = vmmov %vm4163_vm6  ;;  %vm4174_vm1 = vcmask 261120  }
 0x262   :  { %1357 = vmatprep.mubr.bf16.mxu0 %v4091_v29  ;;  %2301 = vmatpush1.bf16.msk.msra.mxu1 %vm2299_vm8, %v2300_v13  ;;  %vm4167_vm11 = vmmov %vm4163_vm6  ;;  %vm2661_vm8 = vmmov 0  }
 0x263   :  { %2304 = vmatprep.subr.msk.bf16.mxu1 %vm2302_vm4, %v2303_v42  ;;  %vm4168_vm9 = vmmov %vm4163_vm6  ;;  %v1762_v42 = vld [vmem:[%s4006_s3 + $0x8] sm:$0xff] }
 0x264   :  { %vm4169_vm14 = vmmov %vm4163_vm6 }
 0x265   :  { %vm4170_vm3 = vmmov %vm4163_vm6 }
 0x266   :  { %2307 = vmatpush1.bf16.msk.msra.mxu1 %vm2305_vm0, %v2306_v51  ;;  %v1240_v55 = vpop.permute.xlu1 %1239  ;;  %v3784_v20 = vpop.permute.xlu0 %1253  ;;  %vm4171_vm12 = vmmov %vm4170_vm3 }
 0x267   :  { %2192 = vmatprep.subr.msk.bf16.mxu1 %vm4163_vm6, %v1042_v1  ;;  %vm4172_vm10 = vmmov %vm4170_vm3  ;;  %v1649_v1 = vld [vmem:[#allocation3] sm:$0xff] }
 0x268   :  { %vm4173_vm5 = vmmov %vm4170_vm3 }
 0x26a   :  { %1204 = vmatpush1.bf16.msra.mxu1 %v1067_v25  ;;  %v3830_v51 = vpop.permute.xlu1 %1543 }
 0x26d   :  { %2193 = vmatmul.mubr.msk.bf16.vlgmr.msra.gmra.mrb[16].mxu1 %vm4165_vm2, %v3380_v33 }
 0x26e   :  { %1410 = vmatprep.mubr.bf16.mxu1 %v4091_v29  ;;  %v3834_v2 = vpop.permute.xlu1 %1599 }
 0x315   :  { %v1106_v53 = vpop.f32.mrb[8].mxu1 }
 0x316   :  { %v1242_v41 = vmul.f32 %v1240_v55, %v1106_v53  ;;  %v1108_v5 = vpop.f32.mrb[9].mxu1  ;;  %v1653_v53 = vld [vmem:[#allocation3 + $0x20] sm:$0xff] }
 0x317   :  { %v1243_v12 = vmul.f32 %v1240_v55, %v1108_v5  ;;  %v1110_v56 = vpop.f32.mrb[10].mxu1  ;;  %v1665_v5 = vunpack.c.l.bf16 %v1649_v1 }
 0x318   :  { %v1256_v24 = vadd.f32 %v3784_v20, %v1242_v41  ;;  %v1111_v23 = vpop.f32.mrb[11].mxu1  ;;  %v1666_v56 = vunpack.c.h.bf16 %v1649_v1 }
 0x319   :  { %v1257_v9 = vadd.f32 %v3784_v20, %v1243_v12 }
 0x31a   :  { %v1264_v58 = vmax.f32 %v1256_v24, 0.0 }
 0x31b   :  { %v1265_v47 = vmax.f32 %v1257_v9, 0.0 }
 0x31c   :  { %v1276_v8 = vpack.c.bf16 %v1264_v58, %v1264_v58  ;;  %v1673_v58 = vunpack.c.l.bf16 %v1653_v53 }
 0x31d   :  { %v1277_v27 = vpack.c.bf16 %v1265_v47, %v1265_v47 }
 0x31e   :  { %v1302_v33 = vsel %vm4166_vm7, %v1276_v8, 0  ;;  %v3842_v8 = vpop.permute.xlu1 %1553 }
 0x31f   :  { %2196 = vmatprep.subr.msk.bf16.mxu0 %vm4167_vm11, %v1277_v27 }
 0x320   :  { %1326 = vmatpush1.bf16.msra.mxu0 %v1302_v33 }
 0x323   :  { %2197 = vmatmul.mubr.msk.bf16.vlgmr.msra.gmra.mrb[12].mxu0 %vm1294_vm15, %v2526_v61 }
 0x324   :  { %1367 = vmatprep.mubr.bf16.mxu0 %v4091_v29 }
 0x329   :  { %v1147_v52 = vpop.f32.mrb[12].mxu1 }
 0x32a   :  { %v1244_v40 = vmul.f32 %v1240_v55, %v1147_v52  ;;  %v1149_v3 = vpop.f32.mrb[13].mxu1 }
 0x32b   :  { %v1245_v60 = vmul.f32 %v1240_v55, %v1149_v3  ;;  %v1151_v59 = vpop.f32.mrb[14].mxu1  ;;  %2198 = vmatmul.mubr.msk.bf16.gmra.mrb[16].mxu0 %vm1294_vm15, %v2527_v50 }
 0x32c   :  { %v1258_v43 = vadd.f32 %v3784_v20, %v1244_v40  ;;  %v1152_v15 = vpop.f32.mrb[15].mxu1  ;;  %1463 = vmatprep.mubr.bf16.mxu0 %v4091_v29  ;;  %v1657_v59 = vld [vmem:[#allocation3 + $0x40] sm:$0xff] }
 0x32d   :  { %v1259_v38 = vadd.f32 %v3784_v20, %v1245_v60 }
 0x32e   :  { %v1266_v34 = vmax.f32 %v1258_v43, 0.0 }
 0x32f   :  { %v1267_v14 = vmax.f32 %v1259_v38, 0.0 }
 0x330   :  { %v1278_v30 = vpack.c.bf16 %v1266_v34, %v1266_v34  ;;  %v1661_v34 = vld [vmem:[#allocation3 + $0x60] sm:$0xff] }
 0x331   :  { %v1279_v22 = vpack.c.bf16 %v1267_v14, %v1267_v14 }
 0x332   :  { %v1308_v21 = vsel %vm4168_vm9, %v1278_v30, 0 }
 0x333   :  { %2199 = vmatprep.subr.msk.bf16.mxu1 %vm4169_vm14, %v1279_v22 }
 0x334   :  { %v1188_v26 = vpop.f32.mrb[8].mxu0  ;;  %1379 = vmatpush1.bf16.msra.mxu1 %v1308_v21 }
 0x335   :  { %v1246_v39 = vmul.f32 %v1240_v55, %v1188_v26  ;;  %v1190_v57 = vpop.f32.mrb[9].mxu0  ;;  %v1681_v26 = vunpack.c.l.bf16 %v1657_v59 }
 0x336   :  { %v1247_v48 = vmul.f32 %v1240_v55, %v1190_v57  ;;  %v1192_v62 = vpop.f32.mrb[10].mxu0 }
 0x337   :  { %v1260_v36 = vadd.f32 %v3784_v20, %v1246_v39  ;;  %v1193_v11 = vpop.f32.mrb[11].mxu0  ;;  %2200 = vmatmul.mubr.msk.bf16.vlgmr.msra.gmra.mrb[20].mxu1 %vm1294_vm15, %v2526_v61  ;;  %v3851_v39 = vpop.permute.xlu1 %1609 }
 0x338   :  { %v1261_v49 = vadd.f32 %v3784_v20, %v1247_v48  ;;  %1420 = vmatprep.mubr.bf16.mxu1 %v4091_v29 }
 0x339   :  { %v1268_v4 = vmax.f32 %v1260_v36, 0.0  ;;  %v1682_v36 = vunpack.c.h.bf16 %v1657_v59 }
 0x33a   :  { %v1269_v44 = vmax.f32 %v1261_v49, 0.0 }
 0x33b   :  { %v1280_v28 = vpack.c.bf16 %v1268_v4, %v1268_v4 }
 0x33c   :  { %v1281_v63 = vpack.c.bf16 %v1269_v44, %v1269_v44 }
 0x33d   :  { %v1314_v18 = vsel %vm4170_vm3, %v1280_v28, 0  ;;  %v1689_v28 = vunpack.c.l.bf16 %v1661_v34 }
 0x33e   :  { %2202 = vmatprep.subr.msk.bf16.mxu0 %vm4171_vm12, %v1281_v63 }
 0x33f   :  { %1432 = vmatpush1.bf16.msra.mxu0 %v1314_v18  ;;  %2201 = vmatmul.mubr.msk.bf16.gmra.mrb[24].mxu1 %vm1294_vm15, %v2527_v50 }
 0x340   :  { %v1229_v37 = vpop.f32.mrb[16].mxu1  ;;  %1516 = vmatprep.mubr.bf16.mxu1 %v4091_v29 }
 0x341   :  { %v1248_v10 = vmul.f32 %v1240_v55, %v1229_v37  ;;  %v1231_v54 = vpop.f32.mrb[17].mxu1 }
 0x342   :  { %2203 = vmatmul.mubr.msk.bf16.vlgmr.msra.gmra.mrb[20].mxu0 %vm1294_vm15, %v2526_v61  ;;  %v1249_v16 = vmul.f32 %v1240_v55, %v1231_v54  ;;  %v1233_v32 = vpop.f32.mrb[18].mxu1  ;;  %v1690_v54 = vunpack.c.h.bf16 %v1661_v34 }
 0x343   :  { %1473 = vmatprep.mubr.bf16.mxu0 %v4091_v29  ;;  %v1262_v0 = vadd.f32 %v3784_v20, %v1248_v10  ;;  %v1234_v35 = vpop.f32.mrb[19].mxu1 }
 0x344   :  { %v1263_v17 = vadd.f32 %v3784_v20, %v1249_v16 }
 0x345   :  { %v1270_v46 = vmax.f32 %v1262_v0, 0.0 }
 0x346   :  { %v1271_v6 = vmax.f32 %v1263_v17, 0.0 }
 0x347   :  { %v1282_v13 = vpack.c.bf16 %v1270_v46, %v1270_v46 }
 0x348   :  { %v1283_v31 = vpack.c.bf16 %v1271_v6, %v1271_v6 }
 0x349   :  { %v1320_v19 = vsel %vm4172_vm10, %v1282_v13, 0 }
 0x34a   :  { %2204 = vmatmul.mubr.msk.bf16.gmra.mrb[24].mxu0 %vm1294_vm15, %v2527_v50  ;;  %2205 = vmatprep.subr.msk.bf16.mxu1 %vm4173_vm5, %v1283_v31 }
 0x34b   :  { %1485 = vmatpush1.bf16.msra.mxu1 %v1320_v19  ;;  %1841 = vmatprep.mubr.f32.mxu0 %v1762_v42 }
 0x34c   :  { %2311 = vmatprep.subr.bf16.mxu1 %v2660_v7 }
 0x34e   :  { %2206 = vmatmul.mubr.msk.bf16.vlgmr.msra.gmra.mrb[28].mxu1 %vm1294_vm15, %v2526_v61  ;;  %v1674_v61 = vunpack.c.h.bf16 %v1653_v53  ;;  %v1654_v53 = vld [vmem:[#allocation3 + $0x28] sm:$0xff] }
 0x34f   :  { %1526 = vmatprep.mubr.bf16.mxu1 %v4091_v29  ;;  %2312 = vmatpush3.bf16.msra.mxu1 %v2528_v45  ;;  %v3832_v29 = vpop.permute.xlu0 %1548  ;;  %v1650_v45 = vld [vmem:[#allocation3 + $0x8] sm:$0xff] }
 0x350   :  { %2313 = vmatprep.subr.bf16.mxu1 %v2660_v7 }
 0x353   :  { %v3836_v25 = vpop.permute.xlu0 %1604 }
 0x356   :  { %2207 = vmatmul.mubr.msk.bf16.gmra.mrb[32].mxu1 %vm1294_vm15, %v2527_v50 }
 0x357   :  { %v3847_v40 = vpop.permute.xlu0 %1558  ;;  %2315 = vmatprep.mubr.msk.bf16.mxu1 %vm2661_vm8, %v2660_v7 }
 0x35b   :  { %v3856_v18 = vpop.permute.xlu0 %1614 }
 0x3f6   :  { %v1359_v55 = vpop.f32.mrb[12].mxu0 }
 0x3f7   :  { %v1561_v41 = vmul.f32 %v3830_v51, %v1359_v55  ;;  %v1361_v20 = vpop.f32.mrb[13].mxu0 }
 0x3f8   :  { %v1562_v12 = vmul.f32 %v3830_v51, %v1361_v20  ;;  %v1363_v24 = vpop.f32.mrb[14].mxu0  ;;  %v1667_v20 = vunpack.c.l.bf16 %v1650_v45 }
 0x3f9   :  { %v1617_v23 = vadd.f32 %v3834_v2, %v1561_v41  ;;  %v1569_v9 = vmul.f32 %v3832_v29, %v1363_v24  ;;  %v1365_v47 = vpop.f32.mrb[15].mxu0 }
 0x3fa   :  { %v1618_v27 = vadd.f32 %v3834_v2, %v1562_v12  ;;  %v1570_v33 = vmul.f32 %v3832_v29, %v1365_v47  ;;  %v1675_v47 = vunpack.c.l.bf16 %v1654_v53 }
 0x3fb   :  { %v1697_v50 = vadd.f32 %v1665_v5, %v1617_v23  ;;  %v1625_v52 = vadd.f32 %v3836_v25, %v1569_v9  ;;  %v3864_v23 = vld [vmem:[#allocation3 + $0x48] sm:$0xff] }
 0x3fc   :  { %v1698_v3 = vadd.f32 %v1666_v56, %v1618_v27  ;;  %v1626_v60 = vadd.f32 %v3836_v25, %v1570_v33  ;;  %v3868_v33 = vld [vmem:[#allocation3 + $0x10] sm:$0xff] }
 0x3fd   :  { %v1705_v43 = vadd.f32 %v1673_v58, %v1625_v52  ;;  %v1729_v14 = vmax.f32 %v1697_v50, 0.0  ;;  %v1676_v50 = vunpack.c.h.bf16 %v1654_v53  ;;  %v3871_v52 = vld [vmem:[#allocation3 + $0x68] sm:$0xff]  ;;  %v1769_v53 = vld [vmem:[%s4006_s3 + $0x40] sm:$0xff] }
 0x3fe   :  { %v1706_v15 = vadd.f32 %v1674_v61, %v1626_v60  ;;  %v1369_v38 = vpop.f32.mrb[16].mxu0  ;;  %v1730_v57 = vmax.f32 %v1698_v3, 0.0  ;;  %v1668_v60 = vunpack.c.h.bf16 %v1650_v45 }
 0x3ff   :  { %v1737_v30 = vmax.f32 %v1705_v43, 0.0  ;;  %v1577_v22 = vmul.f32 %v3842_v8, %v1369_v38  ;;  %v1371_v21 = vpop.f32.mrb[17].mxu0  ;;  %v1683_v43 = vunpack.c.l.bf16 %v3864_v23  ;;  %v3877_v38 = vld [vmem:[#allocation3 + $0x50] sm:$0xff] }
 0x400   :  { %v1738_v48 = vmax.f32 %v1706_v15, 0.0  ;;  %v1578_v62 = vmul.f32 %v3842_v8, %v1371_v21  ;;  %v1373_v11 = vpop.f32.mrb[18].mxu0  ;;  %v3875_v15 = vld [vmem:[#allocation3 + $0x30] sm:$0xff]  ;;  %v1691_v21 = vunpack.c.l.bf16 %v3871_v52 }
 0x401   :  { %v2321_v49 = vpack.c.bf16 %v1737_v30, %v1729_v14  ;;  %v1633_v4 = vadd.f32 %v3851_v39, %v1577_v22  ;;  %v1585_v44 = vmul.f32 %v3847_v40, %v1373_v11  ;;  %v1375_v63 = vpop.f32.mrb[19].mxu0  ;;  %v1684_v30 = vunpack.c.h.bf16 %v3864_v23 }
 0x402   :  { %v1634_v37 = vadd.f32 %v3851_v39, %v1578_v62  ;;  %v1586_v10 = vmul.f32 %v3847_v40, %v1375_v63  ;;  %v2319_v16 = vpack.c.bf16 %v1738_v48, %v1730_v57  ;;  %v1669_v22 = vunpack.c.l.bf16 %v3868_v33  ;;  %v1761_v62 = vld [vmem:[%s4006_s3] sm:$0xff] }
 0x403   :  { %v1713_v32 = vadd.f32 %v1681_v26, %v1633_v4  ;;  %v1641_v0 = vadd.f32 %v3856_v18, %v1585_v44  ;;  %v1670_v57 = vunpack.c.h.bf16 %v3868_v33  ;;  %v1692_v48 = vunpack.c.h.bf16 %v3871_v52 }
 0x404   :  { %v1714_v35 = vadd.f32 %v1682_v36, %v1634_v37  ;;  %v1642_v17 = vadd.f32 %v3856_v18, %v1586_v10  ;;  %2320 = vmatprep.subr.bf16.mxu0 %v2319_v16  ;;  %v1678_v4 = vunpack.c.h.bf16 %v3875_v15  ;;  %v1685_v44 = vunpack.c.l.bf16 %v3877_v38 }
 0x405   :  { %v1721_v46 = vadd.f32 %v1689_v28, %v1641_v0  ;;  %2322 = vmatpush1.bf16.xpose.msra.mxu0 %v2321_v49  ;;  %v1745_v13 = vmax.f32 %v1713_v32, 0.0  ;;  %v1677_v49 = vunpack.c.l.bf16 %v3875_v15  ;;  %v1770_v28 = vld [vmem:[%s4006_s3 + $0x48] sm:$0xff]  ;;  %v1686_v32 = vunpack.c.h.bf16 %v3877_v38 }
 0x406   :  { %v1722_v6 = vadd.f32 %v1690_v54, %v1642_v17  ;;  %v1746_v19 = vmax.f32 %v1714_v35, 0.0 }
 0x407   :  { %v1753_v31 = vmax.f32 %v1721_v46, 0.0 }
 0x408   :  { %v1754_v42 = vmax.f32 %v1722_v6, 0.0 }
 0x409   :  { %v2325_v1 = vpack.c.bf16 %v1753_v31, %v1745_v13 }
 0x40a   :  { %v1412_v55 = vpop.f32.mrb[20].mxu1  ;;  %v2323_v41 = vpack.c.bf16 %v1754_v42, %v1746_v19 }
 0x40b   :  { %v1563_v5 = vmul.f32 %v3830_v51, %v1412_v55  ;;  %v1414_v12 = vpop.f32.mrb[21].mxu1 }
 0x40c   :  { %v1564_v56 = vmul.f32 %v3830_v51, %v1414_v12  ;;  %v1416_v24 = vpop.f32.mrb[22].mxu1  ;;  %2324 = vmatprep.subr.bf16.mxu0 %v2323_v41 }
 0x40d   :  { %v1619_v9 = vadd.f32 %v3834_v2, %v1563_v5  ;;  %v1571_v58 = vmul.f32 %v3832_v29, %v1416_v24  ;;  %v1418_v27 = vpop.f32.mrb[23].mxu1  ;;  %2326 = vmatpush1.bf16.xpose.msra.mxu0 %v2325_v1  ;;  %v1764_v24 = vld [vmem:[%s4006_s3 + $0x18] sm:$0xff] }
 0x40e   :  { %v1572_v61 = vmul.f32 %v3832_v29, %v1418_v27  ;;  %v1620_v34 = vadd.f32 %v3834_v2, %v1564_v56  ;;  %v1663_v27 = vld [vmem:[#allocation3 + $0x70] sm:$0xff] }
 0x40f   :  { %v1699_v3 = vadd.f32 %v1667_v20, %v1619_v9  ;;  %v1627_v59 = vadd.f32 %v3836_v25, %v1571_v58 }
 0x410   :  { %v1628_v14 = vadd.f32 %v3836_v25, %v1572_v61  ;;  %v1700_v0 = vadd.f32 %v1668_v60, %v1620_v34 }
 0x411   :  { %v1707_v26 = vadd.f32 %v1675_v47, %v1627_v59  ;;  %v1731_v63 = vmax.f32 %v1699_v3, 0.0 }
 0x412   :  { %v1708_v36 = vadd.f32 %v1676_v50, %v1628_v14  ;;  %v1422_v11 = vpop.f32.mrb[24].mxu1  ;;  %v1732_v3 = vmax.f32 %v1700_v0, 0.0 }
 0x413   :  { %v1739_v37 = vmax.f32 %v1707_v26, 0.0  ;;  %v1579_v10 = vmul.f32 %v3842_v8, %v1422_v11  ;;  %v1424_v54 = vpop.f32.mrb[25].mxu1  ;;  %v1693_v26 = vunpack.c.l.bf16 %v1663_v27 }
 0x414   :  { %v1740_v35 = vmax.f32 %v1708_v36, 0.0  ;;  %v1580_v17 = vmul.f32 %v3842_v8, %v1424_v54  ;;  %v1426_v6 = vpop.f32.mrb[26].mxu1  ;;  %1842 = vmatmul.mubr.f32.vlgmr.msra.gmra.mrb[28].mxu0 %v1761_v62 }
 0x415   :  { %v1465_v16 = vpop.f32.mrb[20].mxu0  ;;  %v2329_v31 = vpack.c.bf16 %v1739_v37, %v1731_v63  ;;  %v1635_v19 = vadd.f32 %v3851_v39, %v1579_v10  ;;  %v1587_v42 = vmul.f32 %v3847_v40, %v1426_v6  ;;  %v1428_v1 = vpop.f32.mrb[27].mxu1  ;;  %1846 = vmatprep.mubr.f32.mxu0 %v1770_v28 }
 0x416   :  { %v1565_v46 = vmul.f32 %v3830_v51, %v1465_v16  ;;  %v1467_v13 = vpop.f32.mrb[21].mxu0  ;;  %v1636_v41 = vadd.f32 %v3851_v39, %v1580_v17  ;;  %v1588_v20 = vmul.f32 %v3847_v40, %v1428_v1 }
 0x417   :  { %v1566_v45 = vmul.f32 %v3830_v51, %v1467_v13  ;;  %v1469_v55 = vpop.f32.mrb[22].mxu0  ;;  %v1715_v23 = vadd.f32 %v1683_v43, %v1635_v19  ;;  %v1643_v9 = vadd.f32 %v3856_v18, %v1587_v42  ;;  %v1694_v42 = vunpack.c.h.bf16 %v1663_v27 }
 0x418   :  { %v1621_v5 = vadd.f32 %v3834_v2, %v1565_v46  ;;  %v1573_v12 = vmul.f32 %v3832_v29, %v1469_v55  ;;  %v1471_v56 = vpop.f32.mrb[23].mxu0  ;;  %v1716_v33 = vadd.f32 %v1684_v30, %v1636_v41  ;;  %v1644_v50 = vadd.f32 %v3856_v18, %v1588_v20  ;;  %1847 = vmatmul.mubr.f32.gmra.mrb[30].mxu0 %v1769_v53  ;;  %v1652_v46 = vld [vmem:[#allocation3 + $0x18] sm:$0xff] }
 0x419   :  { %v1622_v58 = vadd.f32 %v3834_v2, %v1566_v45  ;;  %v1574_v47 = vmul.f32 %v3832_v29, %v1471_v56  ;;  %v1723_v60 = vadd.f32 %v1691_v21, %v1643_v9  ;;  %1916 = vmatprep.mubr.f32.mxu0 %v1764_v24  ;;  %v1747_v43 = vmax.f32 %v1715_v23, 0.0  ;;  %v1656_v45 = vld [vmem:[#allocation3 + $0x38] sm:$0xff] }
 0x41a   :  { %v1701_v61 = vadd.f32 %v1669_v22, %v1621_v5  ;;  %v1629_v52 = vadd.f32 %v3836_v25, %v1573_v12  ;;  %v1724_v34 = vadd.f32 %v1692_v48, %v1644_v50  ;;  %v1748_v62 = vmax.f32 %v1716_v33, 0.0 }
 0x41b   :  { %v1702_v59 = vadd.f32 %v1670_v57, %v1622_v58  ;;  %v1630_v15 = vadd.f32 %v3836_v25, %v1574_v47  ;;  %v1755_v36 = vmax.f32 %v1723_v60, 0.0  ;;  %v2327_v30 = vpack.c.bf16 %v1740_v35, %v1732_v3 }
 0x41c   :  { %v1709_v14 = vadd.f32 %v1677_v49, %v1629_v52  ;;  %v1733_v28 = vmax.f32 %v1701_v61, 0.0  ;;  %v1756_v63 = vmax.f32 %v1724_v34, 0.0  ;;  %v1671_v12 = vunpack.c.l.bf16 %v1652_v46 }
 0x41d   :  { %v1710_v11 = vadd.f32 %v1678_v4, %v1630_v15  ;;  %v1475_v22 = vpop.f32.mrb[24].mxu0  ;;  %v2333_v21 = vpack.c.bf16 %v1755_v36, %v1747_v43  ;;  %v1734_v57 = vmax.f32 %v1702_v59, 0.0  ;;  %2328 = vmatprep.subr.bf16.mxu0 %v2327_v30  ;;  %v1672_v9 = vunpack.c.h.bf16 %v1652_v46  ;;  %v1772_v46 = vld [vmem:[%s4006_s3 + $0x58] sm:$0xff] }
 0x41e   :  { %v1741_v37 = vmax.f32 %v1709_v14, 0.0  ;;  %v1581_v10 = vmul.f32 %v3842_v8, %v1475_v22  ;;  %v1477_v54 = vpop.f32.mrb[25].mxu0  ;;  %2330 = vmatpush1.bf16.xpose.msra.mxu0 %v2329_v31  ;;  %v2331_v6 = vpack.c.bf16 %v1756_v63, %v1748_v62  ;;  %v1679_v47 = vunpack.c.l.bf16 %v1656_v45  ;;  %v1664_v22 = vld [vmem:[#allocation3 + $0x78] sm:$0xff] }
 0x41f   :  { %v1742_v16 = vmax.f32 %v1710_v11, 0.0  ;;  %v1582_v0 = vmul.f32 %v3842_v8, %v1477_v54  ;;  %v1479_v48 = vpop.f32.mrb[26].mxu0  ;;  %v1680_v38 = vunpack.c.h.bf16 %v1656_v45 }
 0x420   :  { %v3920_v49 = vpack.c.bf16 %v1741_v37, %v1733_v28  ;;  %v1637_v4 = vadd.f32 %v3851_v39, %v1581_v10  ;;  %v1589_v35 = vmul.f32 %v3847_v40, %v1479_v48  ;;  %v1481_v17 = vpop.f32.mrb[27].mxu0  ;;  %2332 = vmatprep.subr.bf16.mxu0 %v2331_v6 }
 0x421   :  { %v1638_v13 = vadd.f32 %v3851_v39, %v1582_v0  ;;  %v1590_v19 = vmul.f32 %v3847_v40, %v1481_v17  ;;  %v2335_v1 = vpack.c.bf16 %v1742_v16, %v1734_v57  ;;  %v1518_v31 = vpop.f32.mrb[28].mxu1 }
 0x422   :  { %v1717_v55 = vadd.f32 %v1685_v44, %v1637_v4  ;;  %v1645_v53 = vadd.f32 %v3856_v18, %v1589_v35  ;;  %v1567_v20 = vmul.f32 %v3830_v51, %v1518_v31  ;;  %v1520_v56 = vpop.f32.mrb[29].mxu1  ;;  %v1695_v35 = vunpack.c.l.bf16 %v1664_v22 }
 0x423   :  { %v1718_v41 = vadd.f32 %v1686_v32, %v1638_v13  ;;  %v1646_v5 = vadd.f32 %v3856_v18, %v1590_v19  ;;  %v1568_v23 = vmul.f32 %v3830_v51, %v1520_v56  ;;  %v1522_v58 = vpop.f32.mrb[30].mxu1  ;;  %v1696_v13 = vunpack.c.h.bf16 %v1664_v22  ;;  %v1765_v56 = vld [vmem:[%s4006_s3 + $0x20] sm:$0xff] }
 0x424   :  { %v1725_v24 = vadd.f32 %v1693_v26, %v1645_v53  ;;  %v1623_v27 = vadd.f32 %v3834_v2, %v1567_v20  ;;  %v1575_v33 = vmul.f32 %v3832_v29, %v1522_v58  ;;  %v1524_v61 = vpop.f32.mrb[31].mxu1  ;;  %v1749_v32 = vmax.f32 %v1717_v55, 0.0  ;;  %v1660_v26 = vld [vmem:[#allocation3 + $0x58] sm:$0xff]  ;;  %v1771_v53 = vld [vmem:[%s4006_s3 + $0x50] sm:$0xff] }
 0x425   :  { %v1726_v44 = vadd.f32 %v1694_v42, %v1646_v5  ;;  %v1624_v52 = vadd.f32 %v3834_v2, %v1568_v23  ;;  %v1576_v3 = vmul.f32 %v3832_v29, %v1524_v61  ;;  %v1750_v60 = vmax.f32 %v1718_v41, 0.0  ;;  %v1773_v23 = vld [vmem:[%s4006_s3 + $0x60] sm:$0xff]  ;;  %v1767_v58 = vld [vmem:[%s4006_s3 + $0x30] sm:$0xff] }
 0x426   :  { %v1757_v50 = vmax.f32 %v1725_v24, 0.0  ;;  %v1703_v15 = vadd.f32 %v1671_v12, %v1623_v27  ;;  %v1631_v51 = vadd.f32 %v3836_v25, %v1575_v33  ;;  %2334 = vmatpush1.bf16.xpose.msra.mxu0 %v2333_v21  ;;  %v1687_v63 = vunpack.c.l.bf16 %v1660_v26  ;;  %v1774_v24 = vld [vmem:[%s4006_s3 + $0x68] sm:$0xff] }
 0x427   :  { %v1758_v59 = vmax.f32 %v1726_v44, 0.0  ;;  %v1704_v34 = vadd.f32 %v1672_v9, %v1624_v52  ;;  %v1632_v14 = vadd.f32 %v3836_v25, %v1576_v3  ;;  %2336 = vmatprep.subr.bf16.mxu0 %v2335_v1  ;;  %v1688_v21 = vunpack.c.h.bf16 %v1660_v26  ;;  %v1763_v25 = vld [vmem:[%s4006_s3 + $0x10] sm:$0xff]  ;;  %v1768_v9 = vld [vmem:[%s4006_s3 + $0x38] sm:$0xff]  ;;  %v2529_v27 = vld [vmem:[%s4016_s13 + $0x8] sm:$0xff]  }
 0x428   :  { %v2341_v43 = vpack.c.bf16 %v1757_v50, %v1749_v32  ;;  %v1711_v62 = vadd.f32 %v1679_v47, %v1631_v51  ;;  %v1735_v2 = vmax.f32 %v1703_v15, 0.0  ;;  %v1776_v47 = vld [vmem:[%s4006_s3 + $0x78] sm:$0xff]  ;;  %v1775_v44 = vld [vmem:[%s4006_s3 + $0x70] sm:$0xff]  ;;  %2314 = vmatpush3.bf16.msra.mxu1 %v2529_v27  ;;  %v2208_v52 = vld [vmem:[%s4017_s14] ss:$0 sm:$0xff] }
 0x429   :  { %v2339_v36 = vpack.c.bf16 %v1758_v59, %v1750_v60  ;;  %v1712_v11 = vadd.f32 %v1680_v38, %v1632_v14  ;;  %v1528_v30 = vpop.f32.mrb[32].mxu1  ;;  %v1736_v10 = vmax.f32 %v1704_v34, 0.0 }
 0x42a   :  { %v1743_v28 = vmax.f32 %v1711_v62, 0.0  ;;  %v1583_v29 = vmul.f32 %v3842_v8, %v1528_v30  ;;  %v1530_v37 = vpop.f32.mrb[33].mxu1 }
 0x42b   :  { %v1744_v54 = vmax.f32 %v1712_v11, 0.0  ;;  %v1584_v57 = vmul.f32 %v3842_v8, %v1530_v37  ;;  %v1532_v16 = vpop.f32.mrb[34].mxu1 }
 0x42c   :  { %v2345_v0 = vpack.c.bf16 %v1743_v28, %v1735_v2  ;;  %v1639_v48 = vadd.f32 %v3851_v39, %v1583_v29  ;;  %v1591_v4 = vmul.f32 %v3847_v40, %v1532_v16  ;;  %v1534_v17 = vpop.f32.mrb[35].mxu1 }
 0x42d   :  { %v1640_v6 = vadd.f32 %v3851_v39, %v1584_v57  ;;  %v1592_v8 = vmul.f32 %v3847_v40, %v1534_v17  ;;  %v2343_v19 = vpack.c.bf16 %v1744_v54, %v1736_v10  ;;  %1917 = vmatmul.mubr.f32.vlgmr.msra.gmra.mrb[28].mxu0 %v1763_v25  ;;  %v1766_v40 = vld [vmem:[%s4006_s3 + $0x28] sm:$0xff]  ;;  %s2662_s3 = smov [#allocation11]  }
 0x42e   :  { %v1719_v42 = vadd.f32 %v1687_v63, %v1639_v48  ;;  %v1647_v45 = vadd.f32 %v3856_v18, %v1591_v4  ;;  %2338 = vmatpush1.bf16.xpose.msra.mxu0 %v3920_v49  ;;  %1921 = vmatprep.mubr.f32.mxu0 %v1772_v46  ;;  %s2152_s2 = sshll.u32 %s2662_s3, 4  ;;  %s2153_s2 = int_to_ptr.vmem [resolvable:$true] %s2152_s2 }
 0x42f   :  { %v1720_v1 = vadd.f32 %v1688_v21, %v1640_v6  ;;  %v1648_v55 = vadd.f32 %v3856_v18, %v1592_v8  ;;  %2340 = vmatprep.subr.bf16.mxu0 %v2339_v36  ;;  %s2618_s13 = scalar_lea.vmem %s2153_s2, 256  ;;  %p2623_p5 = scmp.lt.s32.totalorder %s2153_s2, %s2153_s2 }
 0x430   :  { %v1727_v31 = vadd.f32 %v1695_v35, %v1647_v45  ;;  %v1751_v41 = vmax.f32 %v1719_v42, 0.0  ;;  %p2619_p4 = scmp.ne.s32.totalorder %s2153_s2, %s2618_s13  ;;  %p2624_p6 = scmp.lt.s32.totalorder %s2618_s13, %s2618_s13 }
 0x431   :  { %v1728_v39 = vadd.f32 %v1696_v13, %v1648_v55  ;;  %1922 = vmatmul.mubr.f32.gmra.mrb[30].mxu0 %v1771_v53  ;;  %v1752_v20 = vmax.f32 %v1720_v1, 0.0 }
 0x432   :  { %v1759_v5 = vmax.f32 %v1727_v31, 0.0  ;;  %1991 = vmatprep.mubr.f32.mxu0 %v1766_v40  ;;  %p2625_p7 = por %p2624_p6, %p2623_p5 }
 0x433   :  { %v1760_v12 = vmax.f32 %v1728_v39, 0.0 }
 0x434   :  { %v2349_v49 = vpack.c.bf16 %v1759_v5, %v1751_v41  ;;  %p2626_p8 = pnand %p2625_p7, %p2619_p4 }
 0x435   :  { %v2347_v18 = vpack.c.bf16 %v1760_v12, %v1752_v20 }
 0x436   :  { %2342 = vmatpush1.bf16.xpose.msra.mxu0 %v2341_v43 }
 0x437   :  { %2344 = vmatprep.subr.bf16.mxu0 %v2343_v19 }
 0x43d   :  { %1992 = vmatmul.mubr.f32.vlgmr.msra.gmra.mrb[28].mxu0 %v1765_v56 }
 0x43e   :  { %2346 = vmatpush1.bf16.xpose.msra.mxu0 %v2345_v0  ;;  %1996 = vmatprep.mubr.f32.mxu0 %v1774_v24 }
 0x43f   :  { %2348 = vmatprep.subr.bf16.mxu0 %v2347_v18 }
 0x441   :  { %1997 = vmatmul.mubr.f32.gmra.mrb[30].mxu0 %v1773_v23 }
 0x442   :  { %2066 = vmatprep.mubr.f32.mxu0 %v1768_v9 }
 0x446   :  { %2350 = vmatpush1.bf16.xpose.msra.mxu0 %v2349_v49 }
 0x44d   :  { %2067 = vmatmul.mubr.f32.vlgmr.msra.gmra.mrb[28].mxu0 %v1767_v58 }
 0x44e   :  { %2071 = vmatprep.mubr.f32.mxu0 %v1776_v47 }
 0x451   :  { %2072 = vmatmul.mubr.f32.gmra.mrb[30].mxu0 %v1775_v44 }
 0x520   :  { %v2068_v33 = vpop.f32.mrb[28].mxu0 }
 0x521   :  { %v2070_v61 = vpop.f32.mrb[29].mxu0 }
 0x524   :  { %v2073_v38 = vpop.f32.mrb[30].mxu0 }
 0x525   :  { %v2077_v32 = vpack.c.bf16 %v2073_v38, %v2068_v33  ;;  %v2075_v50 = vpop.f32.mrb[31].mxu0 }
 0x527   :  { %2316 = vmatmul.mubr.msk.bf16.vlgmr.msra.gmra.mrb[36].mxu1 %vm4174_vm1, %v2077_v32 }
 0x5fa   :  { %v2138_v3 = vpop.f32.mrb[36].mxu1 }
 0x5fb   :  { %v2139_v60 = vadd.f32 %v2208_v52, %v2138_v3  ;;  %v2317_v59 = vpop.f32.mrb[37].mxu1 }
 0x5fc   :  { %v2141_v15 = vpop.f32.mrb[38].mxu1 }
 0x5fd   :  { %2145 = vst [vmem:[#allocation11] sm:$0xff] %v2139_v60  ;;  %v2142_v51 = vadd.f32 %v2208_v52, %v2141_v15  ;;  %v2318_v7 = vpop.f32.mrb[39].mxu1 }
 0x5ff   :  { %2146 = vst [vmem:[#allocation11 + $0x8] sm:$0xff] %v2142_v51 }
 0x600   :  { %2629 = shalt.err (!%p2626_p8)
}
 0x601   :  { %s2630_s4 = scalar_lea.hbm %s4018_s15, 256 }
 0x602   :  { %p2631_p9 = scmp.ne.s32.totalorder %s4018_s15, %s2630_s4  ;;  %p2634_p10 = scmp.lt.u32.totalorder %s2630_s4, %s4018_s15 }
 0x604   :  { %p2636_p11 = pnand %p2634_p10, %p2631_p9 }
 0x606   :  { %2639 = shalt.err (!%p2636_p11)
}
 0x607   :  { %s2663_s6 = smov 128  }
 0x608   :  { %2158 = dma.vmem_to_hbm [thread:$0]  %s2153_s2, 256, %s4018_s15, [#allocation5], %s2663_s6, %s2663_s6, %s2657_s25  }
 0x609   :  { %2646 = dma.done.wait [#allocation5], 256  }
 0x60a   :  { %2647 = vsyncadd [#allocation5], 4294967040 }
 0x60b   :  { %2162 = vsyncpa [#allocation4], 1 }
 0x60c   :  { %2163 = vsyncpa [#allocation7], 1 }
 0x60d   :  { %2164 = vsyncpa [#allocation10], 1 }
 0x60e   :  { %2165 = vsyncpa [#allocation5], 1 }

// kernel: tpu_custom_call.1
= control target key start
LH: loop header
LB: loop body
LE: loop exit
PB: predicated region body
PF: predicated region fallthrough
CT: control target
= control target key end

     0   :  { %20 = vsyncpa [#allocation4], 0  ;;  %s4003_s0 = inlined_call_operand.hbm [shape: bf16[32,1024], index: 0, kind: input, shape index: {}]   ;;  %s4004_s1 = inlined_call_operand.hbm [shape: s32[1,1024], index: 1, kind: input, shape index: {}]   ;;  %s4005_s2 = inlined_call_operand.hbm [shape: s32[1,1024], index: 2, kind: input, shape index: {}]   ;;  %s4006_s3 = inlined_call_operand.vmem [shape: f32[16,1024], index: 3, kind: input, shape index: {}]   ;;  %s4007_s4 = inlined_call_operand.hbm [shape: bf16[8,32], index: 4, kind: input, shape index: {}]   ;;  %s4008_s5 = inlined_call_operand.vmem [shape: f32[8,1], index: 5, kind: input, shape index: {}]   ;;  %s4009_s6 = inlined_call_operand.vmem [shape: f32[8,1], index: 6, kind: input, shape index: {}]   ;;  %s4010_s7 = inlined_call_operand.vmem [shape: bf16[8,72], index: 7, kind: input, shape index: {}]   ;;  %s4011_s8 = inlined_call_operand.vmem [shape: f32[8,1], index: 8, kind: input, shape index: {}]   ;;  %s4012_s9 = inlined_call_operand.vmem [shape: f32[8,1], index: 9, kind: input, shape index: {}]   ;;  %s4013_s10 = inlined_call_operand.vmem [shape: bf16[32,8], index: 10, kind: input, shape index: {}]   ;;  %s4014_s11 = inlined_call_operand.vmem [shape: f32[32,1], index: 11, kind: input, shape index: {}]   ;;  %s4015_s12 = inlined_call_operand.vmem [shape: f32[32,1], index: 12, kind: input, shape index: {}]   ;;  %s4016_s13 = inlined_call_operand.vmem [shape: bf16[32,128], index: 13, kind: input, shape index: {}]   ;;  %s4017_s14 = inlined_call_operand.vmem [shape: f32[1,128], index: 14, kind: input, shape index: {}]   ;;  %s4018_s15 = inlined_call_operand.hbm [shape: f32[1,16,128], index: 15, kind: output, shape index: {}]  }
   0x1   :  { %21 = vsyncpa [#allocation7], 0 }
   0x2   :  { %22 = vsyncpa [#allocation10], 0 }
   0x3   :  { %23 = vsyncpa [#allocation5], 0  ;;  %s2648_s18 = smov [#allocation6]   ;;  %s2649_s20 = smov [#allocation3]  }
   0x4   :  { %s42_s19 = sshll.u32 %s2648_s18, 4  ;;  %s29_s21 = sshll.u32 %s2649_s20, 4  ;;  %s43_s19 = int_to_ptr.vmem [resolvable:$true] %s42_s19  ;;  %s2744_s21 = int_to_ptr.vmem [resolvable:$true] %s29_s21 }
   0x5   :  { %s2530_s24 = scalar_lea.hbm %s4004_s1, 128 }
   0x6   :  { %p2531_p0 = scmp.ne.s32.totalorder %s4004_s1, %s2530_s24  ;;  %p2534_p1 = scmp.lt.u32.totalorder %s2530_s24, %s4004_s1 }
   0x8   :  { %p2536_p2 = pnand %p2534_p1, %p2531_p0 }
   0xa   :  { %2539 = shalt.err (!%p2536_p2)
}
   0xb   :  { %s2540_s29 = scalar_lea.vmem %s43_s19, 128  ;;  %p2545_p4 = scmp.lt.s32.totalorder %s43_s19, %s43_s19 }
   0xc   :  { %p2541_p3 = scmp.ne.s32.totalorder %s43_s19, %s2540_s29  ;;  %p2546_p5 = scmp.lt.s32.totalorder %s2540_s29, %s2540_s29 }
   0xe   :  { %p2547_p6 = por %p2546_p5, %p2545_p4 }
  0x10   :  { %p2548_p7 = pnand %p2547_p6, %p2541_p3 }
  0x12   :  { %2551 = shalt.err (!%p2548_p7)
}
  0x13   :  { %45 = dma.hbm_to_vmem [thread:$0]  %s4004_s1, 128, %s43_s19, [#allocation7]  }
  0x14   :  { %s2552_s20 = scalar_lea.hbm %s4003_s0, 2048 }
  0x15   :  { %p2553_p8 = scmp.ne.s32.totalorder %s4003_s0, %s2552_s20  ;;  %p2556_p9 = scmp.lt.u32.totalorder %s2552_s20, %s4003_s0 }
  0x17   :  { %p2558_p10 = pnand %p2556_p9, %p2553_p8 }
  0x19   :  { %2561 = shalt.err (!%p2558_p10)
}
  0x1a   :  { %s2562_s26 = scalar_lea.vmem %s2744_s21, 2048  ;;  %p2567_p12 = scmp.lt.s32.totalorder %s2744_s21, %s2744_s21 }
  0x1b   :  { %p2563_p11 = scmp.ne.s32.totalorder %s2744_s21, %s2562_s26  ;;  %p2568_p13 = scmp.lt.s32.totalorder %s2562_s26, %s2562_s26 }
  0x1d   :  { %p2569_p0 = por %p2568_p13, %p2567_p12 }
  0x1f   :  { %p2570_p1 = pnand %p2569_p0, %p2563_p11 }
  0x21   :  { %2573 = shalt.err (!%p2570_p1)
}
  0x22   :  { %s2650_s1 = smov 512   ;;  %s2651_s19 = smov 32  }
  0x23   :  { %35 = dma.hbm_to_vmem [thread:$0]  %s4003_s0, 2048, %s2744_s21, [#allocation4], %s2650_s1, %s2650_s1, %s2651_s19  }
  0x24   :  { %s2652_s29 = smov [#allocation8]   ;;  %s2653_s16 = smov [#allocation9]  }
  0x25   :  { %s52_s30 = sshll.u32 %s2652_s29, 4  ;;  %s64_s17 = sshll.u32 %s2653_s16, 4  ;;  %s53_s30 = int_to_ptr.vmem [resolvable:$true] %s52_s30  ;;  %s65_s17 = int_to_ptr.vmem [resolvable:$true] %s64_s17 }
  0x26   :  { %s2574_s22 = scalar_lea.hbm %s4005_s2, 128 }
  0x27   :  { %p2575_p2 = scmp.ne.s32.totalorder %s4005_s2, %s2574_s22  ;;  %p2578_p3 = scmp.lt.u32.totalorder %s2574_s22, %s4005_s2 }
  0x29   :  { %p2580_p4 = pnand %p2578_p3, %p2575_p2 }
  0x2b   :  { %2583 = shalt.err (!%p2580_p4)
}
  0x2c   :  { %s2584_s0 = scalar_lea.vmem %s53_s30, 128  ;;  %p2589_p6 = scmp.lt.s32.totalorder %s53_s30, %s53_s30 }
  0x2d   :  { %p2585_p5 = scmp.ne.s32.totalorder %s53_s30, %s2584_s0  ;;  %p2590_p7 = scmp.lt.s32.totalorder %s2584_s0, %s2584_s0 }
  0x2f   :  { %p2591_p8 = por %p2590_p7, %p2589_p6 }
  0x31   :  { %p2592_p9 = pnand %p2591_p8, %p2585_p5 }
  0x33   :  { %2595 = shalt.err (!%p2592_p9)
}
  0x34   :  { %55 = dma.hbm_to_vmem [thread:$0]  %s4005_s2, 128, %s53_s30, [#allocation7]  }
  0x35   :  { %s2596_s28 = scalar_lea.hbm %s4007_s4, 64 }
  0x36   :  { %p2597_p10 = scmp.ne.s32.totalorder %s4007_s4, %s2596_s28  ;;  %p2600_p11 = scmp.lt.u32.totalorder %s2596_s28, %s4007_s4 }
  0x38   :  { %p2602_p12 = pnand %p2600_p11, %p2597_p10 }
  0x3a   :  { %2605 = shalt.err (!%p2602_p12)
}
  0x3b   :  { %s2606_s22 = scalar_lea.vmem %s65_s17, 64  ;;  %p2611_p0 = scmp.lt.s32.totalorder %s65_s17, %s65_s17 }
  0x3c   :  { %p2607_p13 = scmp.ne.s32.totalorder %s65_s17, %s2606_s22  ;;  %p2612_p1 = scmp.lt.s32.totalorder %s2606_s22, %s2606_s22 }
  0x3e   :  { %p2613_p2 = por %p2612_p1, %p2611_p0 }
  0x40   :  { %p2614_p3 = pnand %p2613_p2, %p2607_p13 }
  0x42   :  { %2617 = shalt.err (!%p2614_p3)
}
  0x43   :  { %67 = dma.hbm_to_vmem [thread:$0]  %s4007_s4, 64, %s65_s17, [#allocation10]  }
  0x44   :  { %2640 = dma.done.wait [#allocation4], 2048  }
  0x45   :  { %2641 = vsyncadd [#allocation4], 4294965248 }
  0x46   :  { %2642 = dma.done.wait [#allocation7], 256  }
  0x47   :  { %2643 = vsyncadd [#allocation7], 4294967040 }
  0x48   :  { %2644 = dma.done.wait [#allocation10], 64  }
  0x49   :  { %2645 = vsyncadd [#allocation10], 4294967232  ;;  %v4020_v0 = vmov 0   ;;  %v102_v1 = vld [vmem:[#allocation3] sm:$0xff]  ;;  %v103_v3 = vld [vmem:[#allocation3 + $0x8] sm:$0xff]  ;;  %vm4019_vm0 = vcmask 261120  }
  0x4a   :  { %234 = vmatprep.mubr.bf16.mxu0 %v4020_v0  ;;  %275 = vmatprep.mubr.bf16.mxu1 %v4020_v0  ;;  %v106_v2 = vld [vmem:[#allocation3 + $0x20] sm:$0xff]  ;;  %v107_v5 = vld [vmem:[#allocation3 + $0x28] sm:$0xff]  ;;  %v104_v15 = vld [vmem:[#allocation3 + $0x10] sm:$0xff]  ;;  %s2657_s25 = smov 8   ;;  %s2658_s26 = smov 120  }
  0x4b   :  { %2379 = vset.pattern.permute.xlu0 %v4020_v0  ;;  %2525 = vset.pattern.permute.xlu1 %v4020_v0  ;;  %v2167_v4 = vcombine.high %v102_v1, %v106_v2  ;;  %v2166_v6 = vcombine.low %v102_v1, %v106_v2  ;;  %v110_v7 = vld [vmem:[#allocation3 + $0x40] sm:$0xff]  ;;  %v2169_v9 = vcombine.high %v103_v3, %v107_v5  ;;  %v111_v12 = vld [vmem:[#allocation3 + $0x48] sm:$0xff]  ;;  %v108_v16 = vld [vmem:[#allocation3 + $0x30] sm:$0xff] }
  0x4c   :  { %v114_v8 = vld [vmem:[#allocation3 + $0x60] sm:$0xff]  ;;  %v2168_v10 = vcombine.low %v103_v3, %v107_v5  ;;  %v115_v13 = vld [vmem:[#allocation3 + $0x68] sm:$0xff]  ;;  %v105_v17 = vld [vmem:[#allocation3 + $0x18] sm:$0xff]  ;;  %v2171_v23 = vcombine.high %v104_v15, %v108_v16  ;;  %v2170_v30 = vcombine.low %v104_v15, %v108_v16 }
  0x4d   :  { %v2175_v11 = vcombine.high %v110_v7, %v114_v8  ;;  %202 = vmatprep.subr.bf16.mxu0 %v2167_v4  ;;  %v2177_v14 = vcombine.high %v111_v12, %v115_v13  ;;  %243 = vmatprep.subr.bf16.mxu1 %v2169_v9  ;;  %v2174_v18 = vcombine.low %v110_v7, %v114_v8  ;;  %v109_v19 = vld [vmem:[#allocation3 + $0x38] sm:$0xff]  ;;  %v112_v20 = vld [vmem:[#allocation3 + $0x50] sm:$0xff]  ;;  %v366_v26 = vld [vmem:[%s4008_s5] sm:$0xff]  ;;  %s2655_s5 = smov 127  }
  0x4e   :  { %203 = vmatpush1.bf16.msra.mxu0 %v2166_v6  ;;  %v116_v21 = vld [vmem:[#allocation3 + $0x70] sm:$0xff]  ;;  %244 = vmatpush1.bf16.msra.mxu1 %v2168_v10  ;;  %v2176_v22 = vcombine.low %v111_v12, %v115_v13  ;;  %v113_v24 = vld [vmem:[#allocation3 + $0x58] sm:$0xff]  ;;  %v2173_v28 = vcombine.high %v105_v17, %v109_v19  ;;  %v380_v29 = vld [vmem:[%s4009_s6] sm:$0xff]  ;;  %v2172_v31 = vcombine.low %v105_v17, %v109_v19  ;;  %s2656_s6 = smov 1  }
  0x4f   :  { %204 = vmatprep.subr.bf16.mxu0 %v2175_v11  ;;  %v117_v25 = vld [vmem:[#allocation3 + $0x78] sm:$0xff]  ;;  %245 = vmatprep.subr.bf16.mxu1 %v2177_v14  ;;  %v101_v27 = vld [vmem:[#allocation9] sm:$0xf]  ;;  %v2179_v32 = vcombine.high %v112_v20, %v116_v21  ;;  %v2178_v34 = vcombine.low %v112_v20, %v116_v21  ;;  %v424_v20 = vlaneseq  ;;  %v402_v21 = vld [vmem:[#allocation8] sm:$0xff] }
  0x50   :  { %369 = vperm.xlu0 %2379, %v366_v26   ;;  %v2181_v33 = vcombine.high %v113_v24, %v117_v25  ;;  %v2180_v35 = vcombine.low %v113_v24, %v117_v25  ;;  %vm404_vm1 = vcmp.ge.s32.totalorder %v402_v21, 1  ;;  %vm405_vm4 = vcmp.le.s32.totalorder %v402_v21, 6 }
  0x51   :  { %v2851_v24 = vsel %vm404_vm1, 1, %v4020_v0  ;;  %v2853_v25 = vand.u32 127, %v424_v20 }
  0x52   :  { %205 = vmatpush1.bf16.msra.mxu0 %v2174_v18  ;;  %246 = vmatpush1.bf16.msra.mxu1 %v2176_v22  ;;  %v2845_v22 = vshrl.u32 %v424_v20, 7 }
  0x53   :  { %284 = vmatprep.subr.bf16.mxu0 %v2171_v23  ;;  %325 = vmatprep.subr.bf16.mxu1 %v2173_v28  ;;  %vm4023_vm2 = vcmp.lt.s32.totalorder %v2853_v25, 1  ;;  %vm500_vm6 = vcmp.lt.s32.totalorder %v2853_v25, 127 }
  0x54   :  { %383 = vperm.xlu0 %2379, %v380_v29   ;;  %v2848_v23 = vsub.s32 1, %v2845_v22 }
  0x55   :  { %2182 = vmatmul.mubr.msk.bf16.vlgmr.msra.gmra.mrb[0].mxu0 %vm4019_vm0, %v101_v27  ;;  %2183 = vmatmul.mubr.msk.bf16.vlgmr.msra.gmra.mrb[0].mxu1 %vm4019_vm0, %v101_v27 }
  0x56   :  { %285 = vmatpush1.bf16.msra.mxu0 %v2170_v30  ;;  %326 = vmatpush1.bf16.msra.mxu1 %v2172_v31  ;;  %v443_v26 = vrot.slane %v2851_v24, %v2848_v23 }
  0x57   :  { %286 = vmatprep.subr.bf16.mxu0 %v2179_v32  ;;  %327 = vmatprep.subr.bf16.mxu1 %v2181_v33  ;;  %v2867_v32 = vsub.s32 0, %v2845_v22 }
  0x58   :  { %316 = vmatprep.mubr.bf16.mxu0 %v4020_v0  ;;  %357 = vmatprep.mubr.bf16.mxu1 %v4020_v0  ;;  %vm2858_vm3 = vcmp.eq.s32.totalorder %v443_v26, 1 }
  0x5a   :  { %287 = vmatpush1.bf16.msra.mxu0 %v2178_v34  ;;  %328 = vmatpush1.bf16.msra.mxu1 %v2180_v35  ;;  %v439_v35 = vrot.slane %v2851_v24, %v2867_v32 }
  0x5c   :  { %vm2886_vm5 = vcmp.eq.s32.totalorder %v439_v35, 1 }
  0x5d   :  { %2184 = vmatmul.mubr.msk.bf16.vlgmr.msra.gmra.mrb[4].mxu0 %vm4019_vm0, %v101_v27  ;;  %2185 = vmatmul.mubr.msk.bf16.vlgmr.msra.gmra.mrb[4].mxu1 %vm4019_vm0, %v101_v27 }
  0x5e   :  { %1186 = vmatprep.mubr.bf16.mxu0 %v4020_v0  ;;  %1104 = vmatprep.mubr.bf16.mxu1 %v4020_v0 }
  0xcf   :  { %v370_v36 = vpop.permute.xlu0 %369 }
  0xd3   :  { %v384_v38 = vpop.permute.xlu0 %383 }
 0x128   :  { %v236_v37 = vpop.f32.mrb[0].mxu0  ;;  %v277_v40 = vpop.f32.mrb[0].mxu1 }
 0x129   :  { %v372_v39 = vmul.f32 %v370_v36, %v236_v37  ;;  %v238_v41 = vpop.f32.mrb[1].mxu0  ;;  %v279_v43 = vpop.f32.mrb[1].mxu1  ;;  %v374_v48 = vmul.f32 %v370_v36, %v277_v40  ;;  %v2879_v37 = vsub.s32 7, %v2845_v22 }
 0x12a   :  { %v373_v42 = vmul.f32 %v370_v36, %v238_v41  ;;  %v240_v44 = vpop.f32.mrb[2].mxu0  ;;  %v281_v45 = vpop.f32.mrb[2].mxu1  ;;  %v375_v51 = vmul.f32 %v370_v36, %v279_v43 }
 0x12b   :  { %v241_v46 = vpop.f32.mrb[3].mxu0  ;;  %v386_v47 = vadd.f32 %v384_v38, %v372_v39  ;;  %v282_v49 = vpop.f32.mrb[3].mxu1  ;;  %v388_v56 = vadd.f32 %v384_v38, %v374_v48  ;;  %v467_v43 = vrot.slane %v2851_v24, %v2879_v37  ;;  %v2897_v48 = vsub.s32 2, %v2845_v22 }
 0x12c   :  { %v387_v50 = vadd.f32 %v384_v38, %v373_v42  ;;  %v389_v60 = vadd.f32 %v384_v38, %v375_v51 }
 0x12d   :  { %v2817_v52 = vmax.f32 %v386_v47, 0.0  ;;  %v2823_v8 = vmax.f32 %v388_v56, 0.0  ;;  %vm2917_vm9 = vcmp.eq.s32.totalorder %v467_v43, 1 }
 0x12e   :  { %v2819_v53 = vmax.f32 %v387_v50, 0.0  ;;  %v2827_v11 = vmax.f32 %v389_v60, 0.0 }
 0x130   :  { %v318_v54 = vpop.f32.mrb[4].mxu0  ;;  %v2385_v55 = vpack.i.bf16 %v2819_v53, %v2817_v52  ;;  %v359_v58 = vpop.f32.mrb[4].mxu1 }
 0x131   :  { %v376_v57 = vmul.f32 %v370_v36, %v318_v54  ;;  %v320_v59 = vpop.f32.mrb[5].mxu0  ;;  %v378_v61 = vmul.f32 %v370_v36, %v359_v58  ;;  %v361_v62 = vpop.f32.mrb[5].mxu1 }
 0x132   :  { %2386 = vrot.lane.b32.xlu0 %v2385_v55, %s2655_s5  ;;  %2381 = vrot.lane.b32.xlu1 %v2385_v55, %s2656_s6  ;;  %v322_v63 = vpop.f32.mrb[6].mxu0  ;;  %v379_v2 = vmul.f32 %v370_v36, %v361_v62  ;;  %v363_v3 = vpop.f32.mrb[6].mxu1  ;;  %v377_v6 = vmul.f32 %v370_v36, %v320_v59  ;;  %v2876_v36 = vsel %vm405_vm4, 1, %v4020_v0  ;;  %v4081_v0 = vmov 0 }
 0x133   :  { %v390_v1 = vadd.f32 %v384_v38, %v376_v57  ;;  %v323_v4 = vpop.f32.mrb[7].mxu0  ;;  %v392_v5 = vadd.f32 %v384_v38, %v378_v61  ;;  %v364_v7 = vpop.f32.mrb[7].mxu1  ;;  %v513_v39 = vrot.slane %v2876_v36, %v2867_v32  ;;  %v517_v42 = vrot.slane %v2876_v36, %v2848_v23 }
 0x134   :  { %v393_v10 = vadd.f32 %v384_v38, %v379_v2  ;;  %v391_v15 = vadd.f32 %v384_v38, %v377_v6  ;;  %v4061_v57 = vmov 0  ;;  %v541_v58 = vrot.slane %v2876_v36, %v2879_v37 }
 0x135   :  { %v2825_v9 = vmax.f32 %v390_v1, 0.0  ;;  %v2829_v12 = vmax.f32 %v392_v5, 0.0  ;;  %vm2904_vm7 = vcmp.eq.s32.totalorder %v513_v39, 1  ;;  %vm2913_vm8 = vcmp.eq.s32.totalorder %v517_v42, 1 }
 0x136   :  { %412 = vrot.lane.b32.xlu0 %v2823_v8, %s2656_s6  ;;  %v2832_v13 = vmax.f32 %v393_v10, 0.0  ;;  %v2838_v17 = vmax.f32 %v391_v15, 0.0  ;;  %v4062_v57 = vsel %vm2917_vm9, 4294967295, %v4061_v57  ;;  %v447_v63 = vrot.slane %v2851_v24, %v2897_v48 }
 0x137   :  { %4051 = vst [vmem:[#allocation16_spill] sm:$0xff] %v2829_v12  ;;  %v2405_v14 = vpack.i.bf16 %v2825_v9, %v2827_v11  ;;  %vm2960_vm10 = vcmp.eq.s32.totalorder %v541_v58, 1  ;;  %v2965_v15 = vsub.s32 3, %v2845_v22  ;;  %v521_v26 = vrot.slane %v2876_v36, %v2897_v48 }
 0x138   :  { %4052 = vst [vmem:[#allocation17_spill] sm:$0xff] %v2832_v13  ;;  %v2390_v16 = vpack.i.bf16 %v2829_v12, %v2832_v13  ;;  %v2395_v18 = vpack.i.bf16 %v2832_v13, %v2823_v8  ;;  %v2410_v19 = vpack.i.bf16 %v2829_v12, %v2838_v17  ;;  %vm2967_vm11 = vcmp.eq.s32.totalorder %v447_v63, 1 }
 0x139   :  { %vm3000_vm12 = vcmp.eq.s32.totalorder %v521_v26, 1  ;;  %v3005_v42 = vsub.s32 4, %v2845_v22 }
 0x13a   :  { %2406 = vrot.lane.b32.xlu0 %v2405_v14, %s2656_s6  ;;  %2391 = vrot.lane.b32.xlu1 %v2390_v16, %s2656_s6 }
 0x13e   :  { %418 = vrot.lane.b32.xlu0 %v2838_v17, %s2656_s6  ;;  %2396 = vrot.lane.b32.xlu1 %v2395_v18, %s2655_s5 }
 0x142   :  { %2401 = vrot.lane.b32.xlu1 %v2405_v14, %s2655_s5  ;;  %v4064_v14 = vmov 0 }
 0x143   :  { %v4065_v14 = vsel %vm2960_vm10, 4294967295, %v4064_v14 }
 0x144   :  { %4066 = vst [vmem:[#allocation19_spill] sm:$0xff] %v4065_v14 }
 0x146   :  { %2411 = vrot.lane.b32.xlu1 %v2410_v19, %s2655_s5 }
 0x1a4   :  { %v2382_v27 = vpop.permute.xlu1 %2381  ;;  %v2387_v38 = vpop.permute.xlu0 %2386 }
 0x1a5   :  { %v2384_v28 = vunpack.i.h.bf16 %v2382_v27  ;;  %v2383_v29 = vunpack.i.l.bf16 %v2382_v27  ;;  %v2389_v44 = vunpack.i.h.bf16 %v2387_v38  ;;  %v2388_v45 = vunpack.i.l.bf16 %v2387_v38 }
 0x1a7   :  { %v2864_v31 = vsel %vm4023_vm2, %v2383_v29, %v2384_v28  ;;  %v2927_v61 = vsel %vm500_vm6, %v2388_v45, %v2389_v44 }
 0x1a8   :  { %v477_v33 = vsel %vm2858_vm3, %v2864_v31, 0.0  ;;  %v413_v51 = vpop.permute.xlu0 %412  ;;  %v550_v4 = vsel %vm2904_vm7, %v2927_v61, 0.0 }
 0x1a9   :  { %v2415_v34 = vpack.i.bf16 %v2819_v53, %v477_v33  ;;  %v2973_v19 = vsel %vm4023_vm2, %v2384_v28, %v413_v51  ;;  %v451_v28 = vrot.slane %v2851_v24, %v2965_v15 }
 0x1aa   :  { %v478_v33 = vsel %vm2967_vm11, %v2973_v19, 0.0 }
 0x1ab   :  { %2416 = vrot.lane.b32.xlu0 %v2415_v34, %s2657_s25  ;;  %vm3012_vm13 = vcmp.eq.s32.totalorder %v451_v28, 1 }
 0x1ac   :  { %v2884_v40 = vpop.permute.xlu1 %2391  ;;  %v2407_v18 = vpop.permute.xlu0 %2406 }
 0x1ad   :  { %v4022_v46 = vunpack.i.h.bf16 %v2884_v40  ;;  %v2393_v47 = vunpack.i.l.bf16 %v2884_v40 }
 0x1af   :  { %v2902_v49 = vsel %vm4023_vm2, %v2393_v47, %v2383_v29  ;;  %v2933_v62 = vsel %vm4023_vm2, %v4022_v46, %v2393_v47  ;;  %v2408_v29 = vunpack.i.l.bf16 %v2407_v18  ;;  %v2409_v47 = vunpack.i.h.bf16 %v2407_v18 }
 0x1b0   :  { %v2908_v54 = vpop.permute.xlu1 %2396  ;;  %v476_v55 = vsel %vm2886_vm5, %v2902_v49, 0.0  ;;  %v483_v6 = vsel %vm2917_vm9, %v2933_v62, 0.0  ;;  %v525_v18 = vrot.slane %v2876_v36, %v2965_v15  ;;  %vm4090_vm9 = vcmp.lt.s32.totalorder %v2853_v25, 1 }
 0x1b1   :  { %v2399_v59 = vunpack.i.h.bf16 %v2908_v54  ;;  %v2398_v60 = vunpack.i.l.bf16 %v2908_v54  ;;  %v2425_v1 = vpack.i.bf16 %v2817_v52, %v476_v55  ;;  %v2978_v21 = vpack.i.bf16 %v2832_v13, %v483_v6 }
 0x1b2   :  { %v3010_v43 = vsel %vm4023_vm2, %v413_v51, %v2408_v29  ;;  %v455_v55 = vrot.slane %v2851_v24, %v3005_v42  ;;  %v3033_v63 = vsel %vm4023_vm2, %v2408_v29, %v2409_v47  ;;  %vm3059_vm15 = vcmp.eq.s32.totalorder %v525_v18, 1 }
 0x1b3   :  { %v2940_v2 = vsel %vm500_vm6, %v2389_v44, %v2398_v60  ;;  %2426 = vrot.lane.b32.xlu1 %v2425_v1, %s2657_s25  ;;  %v2958_v10 = vsel %vm500_vm6, %v2399_v59, %v2388_v45  ;;  %v2445_v45 = vpack.i.bf16 %v2823_v8, %v478_v33  ;;  %v479_v51 = vsel %vm3012_vm13, %v3010_v43, 0.0 }
 0x1b4   :  { %v2942_v3 = vpop.permute.xlu1 %2401  ;;  %v551_v5 = vsel %vm2913_vm8, %v2940_v2, 0.0  ;;  %4063 = vst [vmem:[#allocation18_spill] sm:$0xff] %v2958_v10  ;;  %v2985_v27 = vsel %vm2960_vm10, %v2958_v10, 0.0  ;;  %vm3035_vm14 = vcmp.eq.s32.totalorder %v455_v55, 1  ;;  %v3084_v18 = vsub.s32 6, %v2845_v22 }
 0x1b5   :  { %v2420_v7 = vpack.i.bf16 %v551_v5, %v550_v4  ;;  %v2403_v20 = vunpack.i.l.bf16 %v2942_v3  ;;  %v2435_v35 = vpack.i.bf16 %v478_v33, %v2985_v27  ;;  %v2404_v5 = vunpack.i.h.bf16 %v2942_v3 }
 0x1b6   :  { %v480_v26 = vsel %vm3035_vm14, %v3033_v63, 0.0  ;;  %v2465_v33 = vpack.i.bf16 %v479_v51, %v2823_v8  ;;  %v529_v3 = vrot.slane %v2876_v36, %v3005_v42 }
 0x1b7   :  { %2421 = vrot.lane.b32.xlu0 %v2420_v7, %s2657_s25  ;;  %2431 = vrot.lane.b32.xlu1 %v2978_v21, %s2657_s25  ;;  %v2998_v38 = vsel %vm500_vm6, %v2398_v60, %v2403_v20  ;;  %v3028_v60 = vsub.s32 5, %v2845_v22  ;;  %v537_v22 = vrot.slane %v2876_v36, %v3084_v18 }
 0x1b8   :  { %v552_v44 = vsel %vm3000_vm12, %v2998_v38, 0.0  ;;  %v2412_v4 = vpop.permute.xlu1 %2411  ;;  %vm3076_vm4 = vcmp.eq.s32.totalorder %v529_v3, 1 }
 0x1b9   :  { %v2460_v58 = vpack.i.bf16 %v479_v51, %v552_v44  ;;  %v2470_v6 = vpack.i.bf16 %v552_v44, %v2827_v11  ;;  %v459_v29 = vrot.slane %v2851_v24, %v3028_v60  ;;  %v2413_v28 = vunpack.i.l.bf16 %v2412_v4 }
 0x1ba   :  { %v3057_v44 = vsel %vm500_vm6, %v2403_v20, %v2404_v5  ;;  %v4079_v20 = vmov 0 }
 0x1bb   :  { %2441 = vrot.lane.b32.xlu0 %v2415_v34, %s2658_s26  ;;  %2436 = vrot.lane.b32.xlu1 %v2435_v35, %s2657_s25  ;;  %v2475_v35 = vpack.i.bf16 %v480_v26, %v2827_v11  ;;  %vm3063_vm1 = vcmp.eq.s32.totalorder %v459_v29, 1  ;;  %v4080_v20 = vsel %vm3076_vm4, 4294967295, %v4079_v20  ;;  %v2414_v29 = vunpack.i.h.bf16 %v2412_v4 }
 0x1bc   :  { %v463_v4 = vrot.slane %v2851_v24, %v3084_v18 }
 0x1bd   :  { %v3109_v46 = vsel %vm500_vm6, %v2413_v28, %v2414_v29  ;;  %v3117_v24 = vsel %vm500_vm6, %v2414_v29, %v2399_v59 }
 0x1be   :  { %4083 = vst [vmem:[#allocation20_spill] sm:$0xff] %v3117_v24  ;;  %vm3126_vm10 = vcmp.eq.s32.totalorder %v463_v4, 1  ;;  %v1236_v4 = vld [vmem:[%s4011_s8] sm:$0xff] }
 0x1bf   :  { %2456 = vrot.lane.b32.xlu0 %v2425_v1, %s2658_s26  ;;  %2446 = vrot.lane.b32.xlu1 %v2445_v45, %s2658_s26 }
 0x1c3   :  { %2461 = vrot.lane.b32.xlu0 %v2460_v58, %s2658_s26  ;;  %2451 = vrot.lane.b32.xlu1 %v2420_v7, %s2658_s26  ;;  %v419_v7 = vpop.permute.xlu0 %418  ;;  %v3074_v58 = vsel %vm500_vm6, %v2404_v5, %v2413_v28  ;;  %v4087_v28 = vmov 0 }
 0x1c4   :  { %v3069_v51 = vsel %vm4023_vm2, %v2409_v47, %v419_v7  ;;  %v533_v47 = vrot.slane %v2876_v36, %v3028_v60  ;;  %vm3119_vm2 = vcmp.eq.s32.totalorder %v537_v22, 1  ;;  %v4084_v36 = vmov 0  ;;  %v1594_v22 = vld [vmem:[%s4015_s12 + $0x8] sm:$0xff] }
 0x1c5   :  { %v481_v5 = vsel %vm3063_vm1, %v3069_v51, 0.0  ;;  %v4085_v36 = vsel %vm3119_vm2, 4294967295, %v4084_v36  ;;  %v4088_v28 = vsel %vm3126_vm10, 4294967295, %v4087_v28  ;;  %v556_v59 = vsel %vm3119_vm2, %v3117_v24, 0.0 }
 0x1c6   :  { %vm3103_vm0 = vcmp.eq.s32.totalorder %v533_v47, 1  ;;  %4086 = vst [vmem:[#allocation21_spill] sm:$0xff] %v4085_v36 }
 0x1c7   :  { %2471 = vrot.lane.b32.xlu0 %v2470_v6, %s2657_s25  ;;  %2466 = vrot.lane.b32.xlu1 %v2465_v33, %s2657_s25  ;;  %v553_v6 = vsel %vm3059_vm15, %v3057_v44, 0.0  ;;  %v554_v33 = vsel %vm3076_vm4, %v3074_v58, 0.0  ;;  %v4082_v0 = vsel %vm3103_vm0, 4294967295, %v4081_v0  ;;  %v555_v47 = vsel %vm3103_vm0, %v3109_v46, 0.0 }
 0x1c8   :  { %v2480_v3 = vpack.i.bf16 %v553_v6, %v2825_v9  ;;  %v2495_v29 = vpack.i.bf16 %v555_v47, %v554_v33 }
 0x1cb   :  { %2476 = vrot.lane.b32.xlu0 %v2475_v35, %s2658_s26  ;;  %628 = vrot.lane.b32.xlu1 %v553_v6, %s2657_s25  ;;  %v2490_v35 = vpack.i.bf16 %v2838_v17, %v481_v5  ;;  %v2485_v6 = vpack.i.bf16 %v2825_v9, %v480_v26  ;;  %v4089_v26 = vunpack.i.h.bf16 %v2884_v40  ;;  %v2510_v40 = vpack.i.bf16 %v556_v59, %v555_v47  ;;  %v1539_v47 = vld [vmem:[%s4014_s11 + $0x10] sm:$0xff] }
 0x1cd   :  { %v3134_v54 = vsel %vm4090_vm9, %v419_v7, %v4089_v26  ;;  %v1250_v7 = vld [vmem:[%s4012_s9] sm:$0xff]  ;;  %v1595_v26 = vld [vmem:[%s4015_s12 + $0x10] sm:$0xff]  ;;  %vm654_vm9 = vcmp.lt.s32.totalorder %v2853_v25, 8 }
 0x1ce   :  { %v482_v5 = vsel %vm3126_vm10, %v3134_v54, 0.0 }
 0x1cf   :  { %796 = vrot.lane.b32.xlu0 %v554_v33, %s2658_s26  ;;  %2481 = vrot.lane.b32.xlu1 %v2480_v3, %s2658_s26  ;;  %v2505_v3 = vpack.i.bf16 %v2829_v12, %v482_v5  ;;  %v1538_v33 = vld [vmem:[%s4014_s11 + $0x8] sm:$0xff] }
 0x1d3   :  { %2491 = vrot.lane.b32.xlu0 %v2490_v35, %s2657_s25  ;;  %2486 = vrot.lane.b32.xlu1 %v2485_v6, %s2657_s25  ;;  %v1593_v6 = vld [vmem:[%s4015_s12] sm:$0xff] }
 0x1d7   :  { %2501 = vrot.lane.b32.xlu0 %v2490_v35, %s2658_s26  ;;  %2496 = vrot.lane.b32.xlu1 %v2495_v29, %s2657_s25  ;;  %v1537_v35 = vld [vmem:[%s4014_s11] sm:$0xff]  ;;  %v4091_v29 = vmov 0  }
 0x1db   :  { %2511 = vrot.lane.b32.xlu0 %v2510_v40, %s2658_s26  ;;  %2506 = vrot.lane.b32.xlu1 %v2505_v3, %s2658_s26 }
 0x1df   :  { %646 = vrot.lane.b32.xlu0 %v556_v59, %s2657_s25  ;;  %2516 = vrot.lane.b32.xlu1 %v2505_v3, %s2657_s25  ;;  %v403_v59 = vld [vmem:[#allocation6] sm:$0xff] }
 0x1e0   :  { %vm406_vm6 = vcmp.ge.s32.totalorder %v403_v59, 1 }
 0x1e1   :  { %v3185_v5 = vsel %vm406_vm6, 1, %v4091_v29  ;;  %vm407_vm6 = vcmp.le.s32.totalorder %v403_v59, 6 }
 0x1e2   :  { %v687_v40 = vrot.slane %v3185_v5, %v2848_v23  ;;  %v3228_v10 = vsel %vm407_vm6, 1, %v4091_v29  ;;  %vm816_vm6 = vcmp.lt.s32.totalorder %v2853_v25, 120 }
 0x1e3   :  { %814 = vrot.lane.b32.xlu0 %v2985_v27, %s2658_s26  ;;  %2521 = vrot.lane.b32.xlu1 %v2978_v21, %s2658_s26  ;;  %v1540_v27 = vld [vmem:[%s4014_s11 + $0x18] sm:$0xff]  ;;  %v865_v45 = vrot.slane %v3228_v10, %v3028_v60 }
 0x1e4   :  { %v1596_v21 = vld [vmem:[%s4015_s12 + $0x18] sm:$0xff]  ;;  %vm3192_vm2 = vcmp.eq.s32.totalorder %v687_v40, 1 }
 0x1e5   :  { %vm2212_vm10 = vmpackc.low %vm3192_vm2, %vm3192_vm2 }
 0x1e7   :  { %1253 = vperm.xlu0 %2379, %v1250_v7   ;;  %1239 = vperm.xlu1 %2525, %v1236_v4  }
 0x1eb   :  { %1548 = vperm.xlu0 %2379, %v1538_v33   ;;  %1543 = vperm.xlu1 %2525, %v1537_v35  }
 0x1ef   :  { %1604 = vperm.xlu0 %2379, %v1594_v22   ;;  %1599 = vperm.xlu1 %2525, %v1593_v6   ;;  %v683_v22 = vrot.slane %v3185_v5, %v2867_v32 }
 0x1f1   :  { %vm3217_vm4 = vcmp.eq.s32.totalorder %v683_v22, 1 }
 0x1f2   :  { %vm2215_vm0 = vmpackc.low %vm3217_vm4, %vm3217_vm4 }
 0x1f3   :  { %1558 = vperm.xlu0 %2379, %v1540_v27   ;;  %1553 = vperm.xlu1 %2525, %v1539_v47  }
 0x1f7   :  { %1614 = vperm.xlu0 %2379, %v1596_v21   ;;  %1609 = vperm.xlu1 %2525, %v1595_v26  }
 0x21d   :  { %v3189_v3 = vpop.permute.xlu0 %2416 }
 0x21e   :  { %v4032_v27 = vunpack.i.h.bf16 %v3189_v3  ;;  %v4031_v21 = vunpack.i.l.bf16 %v3189_v3 }
 0x225   :  { %v2427_v7 = vpop.permute.xlu1 %2426 }
 0x226   :  { %v2429_v4 = vunpack.i.h.bf16 %v2427_v7  ;;  %v2428_v35 = vunpack.i.l.bf16 %v2427_v7 }
 0x228   :  { %v674_v47 = vsel %vm654_vm9, %v2429_v4, %v4032_v27  ;;  %v673_v26 = vsel %vm654_vm9, %v2428_v35, %v4031_v21 }
 0x229   :  { %v3200_v6 = vpop.permute.xlu0 %2421  ;;  %v2213_v7 = vpack.c.bf16 %v674_v47, %v673_v26  ;;  %v3215_v59 = vpop.permute.xlu1 %2431 }
 0x22a   :  { %v4035_v40 = vunpack.i.h.bf16 %v3200_v6  ;;  %v2423_v24 = vunpack.i.l.bf16 %v3200_v6  ;;  %v4044_v27 = vunpack.i.h.bf16 %v3215_v59  ;;  %v4042_v36 = vunpack.i.l.bf16 %v3215_v59 }
 0x22b   :  { %2214 = vmatprep.subr.msk.bf16.mxu1 %vm2212_vm10, %v2213_v7  ;;  %vm2218_vm10 = vmpackc.low %vm2858_vm3, %vm3192_vm2 }
 0x22c   :  { %v675_v21 = vsel %vm654_vm9, %v2423_v24, %v4035_v40  ;;  %v676_v22 = vsel %vm654_vm9, %v4042_v36, %v2428_v35  ;;  %v677_v40 = vsel %vm654_vm9, %v4044_v27, %v2429_v4  ;;  %v2225_v4 = vpack.c.bf16 %v2940_v2, %v2819_v53  ;;  %vm2221_vm2 = vmpackc.low %vm2886_vm5, %vm3217_vm4 }
 0x22d   :  { %v2442_v47 = vpop.permute.xlu0 %2441  ;;  %v2219_v26 = vpack.c.bf16 %v2864_v31, %v675_v21  ;;  %v2216_v13 = vpack.c.bf16 %v677_v40, %v676_v22  ;;  %v3242_v14 = vpop.permute.xlu1 %2436  ;;  %v849_v31 = vrot.slane %v3228_v10, %v2848_v23 }
 0x22e   :  { %v4041_v21 = vunpack.i.l.bf16 %v3242_v14  ;;  %v2444_v23 = vunpack.i.h.bf16 %v2442_v47  ;;  %v2443_v30 = vunpack.i.l.bf16 %v2442_v47 }
 0x22f   :  { %2217 = vmatpush1.bf16.msk.msra.mxu1 %vm2215_vm0, %v2216_v13  ;;  %v845_v13 = vrot.slane %v3228_v10, %v2867_v32  ;;  %vm2659_vm0 = vmmov 1  }
 0x230   :  { %v678_v33 = vsel %vm654_vm9, %v4041_v21, %v2423_v24  ;;  %2220 = vmatprep.subr.msk.bf16.mxu1 %vm2218_vm10, %v2219_v26  ;;  %vm2224_vm3 = vmpackc.low %vm2913_vm8, %vm2659_vm0  ;;  %vm3272_vm10 = vcmp.eq.s32.totalorder %v849_v31, 1  ;;  %v2228_v26 = vpack.c.bf16 %v2927_v61, %v2817_v52 }
 0x231   :  { %v3251_v35 = vpop.permute.xlu0 %2456  ;;  %v2222_v40 = vpack.c.bf16 %v2902_v49, %v678_v33  ;;  %v3267_v7 = vpop.permute.xlu1 %2446  ;;  %vm2227_vm5 = vmpackc.low %vm2904_vm7, %vm2659_vm0  ;;  %vm3301_vm4 = vcmp.eq.s32.totalorder %v845_v13, 1 }
 0x232   :  { %v4040_v12 = vunpack.i.h.bf16 %v3251_v35  ;;  %v4039_v41 = vunpack.i.l.bf16 %v3251_v35  ;;  %v4048_v32 = vunpack.i.h.bf16 %v3267_v7  ;;  %v2448_v2 = vunpack.i.l.bf16 %v3267_v7  ;;  %vm2230_vm8 = vmpackc.low %vm3272_vm10, %vm3272_vm10 }
 0x233   :  { %2223 = vmatpush1.bf16.msk.msra.mxu1 %vm2221_vm2, %v2222_v40  ;;  %v691_v40 = vrot.slane %v3185_v5, %v2897_v48  ;;  %vm2233_vm7 = vmpackc.low %vm3301_vm4, %vm3301_vm4  ;;  %vm4050_vm2 = vcmask 1043456  }
 0x234   :  { %v833_v56 = vsel %vm816_vm6, %v2444_v23, %v4048_v32  ;;  %v832_v24 = vsel %vm816_vm6, %v2443_v30, %v2448_v2  ;;  %2226 = vmatprep.subr.msk.bf16.mxu1 %vm2224_vm3, %v2225_v4  ;;  %v695_v4 = vrot.slane %v3185_v5, %v2965_v15  ;;  %v835_v50 = vsel %vm816_vm6, %v4039_v41, %v2443_v30 }
 0x235   :  { %v3280_v49 = vpop.permute.xlu0 %2461  ;;  %v2231_v22 = vpack.c.bf16 %v833_v56, %v832_v24  ;;  %v3296_v31 = vpop.permute.xlu1 %2451  ;;  %v836_v52 = vsel %vm816_vm6, %v4040_v12, %v2444_v23 }
 0x236   :  { %v4047_v47 = vunpack.i.l.bf16 %v3280_v49  ;;  %v2454_v61 = vunpack.i.h.bf16 %v3296_v31  ;;  %v4043_v13 = vunpack.i.l.bf16 %v3296_v31  ;;  %vm3339_vm3 = vcmp.eq.s32.totalorder %v695_v4, 1 }
 0x237   :  { %2229 = vmatpush1.bf16.msk.msra.mxu1 %vm2227_vm5, %v2228_v26  ;;  %v2234_v26 = vpack.c.bf16 %v836_v52, %v835_v50  ;;  %vm2236_vm5 = vmpackc.low %vm3339_vm3, %vm3339_vm3 }
 0x238   :  { %v834_v30 = vsel %vm816_vm6, %v2454_v61, %v4047_v47  ;;  %v837_v23 = vsel %vm816_vm6, %v4043_v13, %v2454_v61  ;;  %2232 = vmatprep.subr.msk.bf16.mxu1 %vm2230_vm8, %v2231_v22  ;;  %v2439_v22 = vunpack.i.h.bf16 %v3242_v14  ;;  %vm4049_vm8 = vcmask 588800  }
 0x239   :  { %v3319_v56 = vpop.permute.xlu0 %2471  ;;  %v899_v41 = vsel %vm3272_vm10, %v834_v30, 0.0  ;;  %v3335_v12 = vpop.permute.xlu1 %2466  ;;  %v898_v21 = vsel %vm3301_vm4, %v837_v23, 0.0  ;;  %vm3357_vm10 = vcmp.eq.s32.totalorder %v691_v40, 1  ;;  %v4104_v23 = vunpack.i.h.bf16 %v3189_v3 }
 0x23a   :  { %v4046_v24 = vunpack.i.l.bf16 %v3319_v56  ;;  %v1036_v61 = vpack.c.bf16 %v899_v41, %v899_v41  ;;  %v4045_v13 = vunpack.i.h.bf16 %v3335_v12  ;;  %v2468_v27 = vunpack.i.l.bf16 %v3335_v12  ;;  %vm2239_vm4 = vmpackc.low %vm3357_vm10, %vm3357_vm10 }
 0x23b   :  { %2235 = vmatpush1.bf16.msk.msra.mxu1 %vm2233_vm7, %v2234_v26  ;;  %v1035_v53 = vpack.c.bf16 %v898_v21, %v898_v21  ;;  %v2474_v52 = vunpack.i.h.bf16 %v3319_v56  ;;  %vm2242_vm7 = vmpackc.low %vm3012_vm13, %vm3339_vm3 }
 0x23c   :  { %v667_v33 = vsel %vm654_vm9, %v2439_v22, %v4045_v13  ;;  %v668_v4 = vsel %vm654_vm9, %v2468_v27, %v4046_v24  ;;  %2186 = vmatprep.subr.msk.bf16.mxu1 %vm4050_vm2, %v1036_v61  ;;  %v671_v26 = vsel %vm654_vm9, %v4104_v23, %v2468_v27  ;;  %v703_v23 = vrot.slane %v3185_v5, %v3028_v60  ;;  %vm3456_vm13 = vmpackc.low %vm3059_vm15, %vm2659_vm0 }
 0x23d   :  { %v3346_v50 = vpop.permute.xlu0 %2476  ;;  %v2237_v30 = vpack.c.bf16 %v668_v4, %v667_v33  ;;  %v3362_v21 = vpop.permute.xlu1 %628  ;;  %v1049_v61 = vsel %vm4050_vm2, %v1035_v53, 0  ;;  %v3380_v33 = vld [vmem:[%s4010_s7] sm:$0xf]  ;;  %v4105_v4 = vunpack.i.l.bf16 %v3189_v3  ;;  %v857_v53 = vrot.slane %v3228_v10, %v2965_v15 }
 0x23e   :  { %v669_v40 = vsel %vm654_vm9, %v2474_v52, %v3362_v21  ;;  %v699_v15 = vrot.slane %v3185_v5, %v3005_v42  ;;  %v2464_v3 = vunpack.i.h.bf16 %v3280_v49  ;;  %v2478_v32 = vunpack.i.l.bf16 %v3346_v50 }
 0x23f   :  { %1081 = vmatpush1.bf16.msra.mxu1 %v1049_v61  ;;  %v670_v27 = vsel %vm654_vm9, %v4105_v4, %v2439_v22  ;;  %v853_v61 = vrot.slane %v3228_v10, %v2897_v48  ;;  %v2252_v22 = vpack.c.bf16 %v2998_v38, %v2823_v8 }
 0x240   :  { %2238 = vmatprep.subr.msk.bf16.mxu1 %vm2236_vm5, %v2237_v30  ;;  %v2240_v24 = vpack.c.bf16 %v671_v26, %v670_v27  ;;  %v4106_v30 = vunpack.i.h.bf16 %v3200_v6  ;;  %v2243_v26 = vpack.c.bf16 %v3010_v43, %v669_v40  ;;  %v2249_v27 = vpack.c.bf16 %v3057_v44, %v2827_v11  ;;  %vm2245_vm5 = vmpackc.low %vm2967_vm11, %vm3357_vm10 }
 0x241   :  { %v3375_v13 = vpop.permute.xlu0 %796  ;;  %v3397_v47 = vpop.permute.xlu1 %2481  ;;  %vm3446_vm2 = vcmp.eq.s32.totalorder %v853_v61, 1  ;;  %vm3460_vm3 = vcmp.eq.s32.totalorder %v699_v15, 1  ;;  %v829_v15 = vsel %vm816_vm6, %v2448_v2, %v2464_v3  ;;  %v4121_v2 = vunpack.i.l.bf16 %v3319_v56 }
 0x242   :  { %v672_v48 = vsel %vm654_vm9, %v4106_v30, %v2474_v52  ;;  %v2484_v4 = vunpack.i.h.bf16 %v3397_v47  ;;  %2187 = vmatmul.mubr.msk.bf16.vlgmr.msra.gmra.mrb[8].mxu1 %vm4049_vm8, %v3380_v33  ;;  %v2483_v8 = vunpack.i.l.bf16 %v3397_v47  ;;  %vm3432_vm8 = vcmp.eq.s32.totalorder %v857_v53, 1  ;;  %vm2263_vm15 = vmpackc.low %vm3460_vm3, %vm3460_vm3 }
 0x243   :  { %2241 = vmatpush1.bf16.msk.msra.mxu1 %vm2239_vm4, %v2240_v24  ;;  %1145 = vmatprep.mubr.bf16.mxu1 %v4091_v29  ;;  %vm3442_vm4 = vcmp.eq.s32.totalorder %v703_v23, 1  ;;  %v2246_v24 = vpack.c.bf16 %v2973_v19, %v672_v48  ;;  %v2479_v52 = vunpack.i.h.bf16 %v3346_v50  ;;  %v4119_v48 = vunpack.i.h.bf16 %v3267_v7  ;;  %vm2254_vm11 = vmpackc.low %vm3432_vm8, %vm3432_vm8 }
 0x244   :  { %2244 = vmatprep.subr.msk.bf16.mxu1 %vm2242_vm7, %v2243_v26  ;;  %v828_v19 = vsel %vm816_vm6, %v2484_v4, %v3375_v13  ;;  %vm3470_vm7 = vmpackc.low %vm3000_vm12, %vm2659_vm0  ;;  %v827_v60 = vsel %vm816_vm6, %v2478_v32, %v2483_v8  ;;  %v2276_v53 = vpack.c.bf16 %v3074_v58, %v2825_v9 }
 0x245   :  { %v3425_v38 = vpop.permute.xlu0 %2491  ;;  %v2487_v40 = vpop.permute.xlu1 %2486  ;;  %v830_v26 = vsel %vm816_vm6, %v4119_v48, %v2478_v32  ;;  %vm2260_vm12 = vmpackc.low %vm3442_vm4, %vm3442_vm4  ;;  %v901_v56 = vsel %vm3432_vm8, %v828_v19, 0.0 }
 0x246   :  { %v2494_v43 = vunpack.i.h.bf16 %v3425_v38  ;;  %v2493_v34 = vunpack.i.l.bf16 %v3425_v38  ;;  %v2489_v23 = vunpack.i.h.bf16 %v2487_v40  ;;  %v2488_v61 = vunpack.i.l.bf16 %v2487_v40  ;;  %vm2257_vm10 = vmpackc.low %vm3446_vm2, %vm3446_vm2 }
 0x247   :  { %v4120_v40 = vunpack.i.l.bf16 %v3280_v49  ;;  %2247 = vmatpush1.bf16.msk.msra.mxu1 %vm2245_vm5, %v2246_v24  ;;  %v1038_v30 = vpack.c.bf16 %v901_v56, %v901_v56  ;;  %vm2266_vm5 = vmpackc.low %vm3063_vm1, %vm3442_vm4  ;;  %vm4123_vm1 = vnez %v4082_v0  ;;  %v4158_v0 = vunpack.i.l.bf16 %v3296_v31 }
 0x248   :  { %v665_v49 = vsel %vm654_vm9, %v4121_v2, %v2489_v23  ;;  %v662_v32 = vsel %vm654_vm9, %v2489_v23, %v2494_v43  ;;  %v661_v41 = vsel %vm654_vm9, %v2488_v61, %v2493_v34  ;;  %2250 = vmatprep.subr.msk.bf16.mxu1 %vm3456_vm13, %v2249_v27  ;;  %vm2269_vm8 = vmpackc.low %vm3035_vm14, %vm3460_vm3  ;;  %vm3607_vm13 = vcmp.eq.s32.totalorder %v865_v45, 1 }
 0x249   :  { %v831_v39 = vsel %vm816_vm6, %v4120_v40, %v2484_v4  ;;  %v3497_v7 = vpop.permute.xlu0 %2501  ;;  %v4122_v4 = vunpack.i.h.bf16 %v3335_v12  ;;  %v826_v12 = vsel %vm816_vm6, %v2464_v3, %v2479_v52  ;;  %v2261_v23 = vpack.c.bf16 %v662_v32, %v661_v41  ;;  %v3529_v48 = vpop.permute.xlu1 %2496  ;;  %vm3592_vm4 = vmpackc.low %vm4123_vm1, %vm2659_vm0 }
 0x24a   :  { %v2255_v27 = vpack.c.bf16 %v827_v60, %v826_v12  ;;  %v2499_v36 = vunpack.i.h.bf16 %v3529_v48  ;;  %v900_v40 = vsel %vm3446_vm2, %v831_v39, 0.0  ;;  %v2258_v3 = vpack.c.bf16 %v830_v26, %v829_v15 }
 0x24b   :  { %v664_v16 = vsel %vm654_vm9, %v4122_v4, %v2488_v61  ;;  %v2498_v61 = vunpack.i.l.bf16 %v3529_v48  ;;  %2253 = vmatpush1.bf16.msk.msra.mxu1 %vm3470_vm7, %v2252_v22  ;;  %2262 = vmatprep.subr.msk.bf16.mxu0 %vm2260_vm12, %v2261_v23  ;;  %v711_v60 = vrot.slane %v3185_v5, %v2879_v37  ;;  %v861_v15 = vrot.slane %v3228_v10, %v3005_v42 }
 0x24c   :  { %v2264_v24 = vpack.c.bf16 %v665_v49, %v664_v16  ;;  %2256 = vmatprep.subr.msk.bf16.mxu1 %vm2254_vm11, %v2255_v27  ;;  %v1037_v49 = vpack.c.bf16 %v900_v40, %v900_v40  ;;  %v2504_v4 = vunpack.i.h.bf16 %v3497_v7  ;;  %v2503_v44 = vunpack.i.l.bf16 %v3497_v7 }
 0x24d   :  { %v3545_v19 = vpop.permute.xlu0 %2511  ;;  %v663_v22 = vsel %vm654_vm9, %v2498_v61, %v2499_v36  ;;  %v666_v26 = vsel %vm654_vm9, %v3362_v21, %v2498_v61  ;;  %v3579_v2 = vpop.permute.xlu1 %2506  ;;  %v2273_v16 = vpack.c.bf16 %v3109_v46, %v2838_v17  ;;  %vm4128_vm2 = vcmask 1043456  }
 0x24e   :  { %2265 = vmatpush1.bf16.msk.msra.mxu0 %vm2263_vm15, %v2264_v24  ;;  %v2514_v42 = vunpack.i.h.bf16 %v3545_v19  ;;  %v2267_v21 = vpack.c.bf16 %v3069_v51, %v663_v22  ;;  %v2270_v39 = vpack.c.bf16 %v3033_v63, %v666_v26  ;;  %v2513_v11 = vunpack.i.l.bf16 %v3545_v19  ;;  %vm4139_vm3 = vmmov %vm4128_vm2 }
 0x24f   :  { %v2509_v55 = vunpack.i.h.bf16 %v3579_v2  ;;  %v2508_v51 = vunpack.i.l.bf16 %v3579_v2  ;;  %2259 = vmatpush1.bf16.msk.msra.mxu1 %vm2257_vm10, %v2258_v3  ;;  %vm3628_vm7 = vcmp.eq.s32.totalorder %v861_v15, 1  ;;  %v4131_v45 = vrot.slane %v3185_v5, %v3084_v18  ;;  %vm2278_vm10 = vmpackc.low %vm3607_vm13, %vm3607_vm13 }
 0x250   :  { %v822_v32 = vsel %vm816_vm6, %v2513_v11, %v2514_v42  ;;  %2268 = vmatprep.subr.msk.bf16.mxu0 %vm2266_vm5, %v2267_v21  ;;  %v825_v17 = vsel %vm816_vm6, %v3375_v13, %v2513_v11  ;;  %2188 = vmatprep.subr.msk.bf16.mxu1 %vm4128_vm2, %v1038_v30  ;;  %vm4134_vm11 = vnez %v4080_v20  ;;  %vm3650_vm14 = vcmp.eq.s32.totalorder %v711_v60, 1 }
 0x251   :  { %v821_v46 = vsel %vm816_vm6, %v2504_v4, %v2509_v55  ;;  %v820_v6 = vsel %vm816_vm6, %v2503_v44, %v2508_v51  ;;  %vm3635_vm12 = vcmp.eq.s32.totalorder %v4131_v45, 1  ;;  %vm3642_vm15 = vmpackc.low %vm4134_vm11, %vm2659_vm0  ;;  %v2517_v41 = vpop.permute.xlu1 %2516  ;;  %v824_v20 = vsel %vm816_vm6, %v2483_v8, %v2504_v4  ;;  %v647_v12 = vpop.permute.xlu0 %646  ;;  %v4150_v4 = vld [vmem:[#allocation17_spill] sm:$0xff] }
 0x252   :  { %2271 = vmatpush1.bf16.msk.msra.mxu0 %vm2269_vm8, %v2270_v39  ;;  %v2519_v56 = vunpack.i.h.bf16 %v2517_v41  ;;  %v2518_v24 = vunpack.i.l.bf16 %v2517_v41  ;;  %v1055_v23 = vsel %vm4139_vm3, %v1037_v49, 0  ;;  %v823_v9 = vsel %vm816_vm6, %v2479_v52, %v2503_v44  ;;  %vm2284_vm5 = vmpackc.low %vm3650_vm14, %vm3650_vm14  ;;  %v4148_v49 = vld [vmem:[#allocation19_spill] sm:$0xff]  ;;  %v4151_v44 = vld [vmem:[#allocation18_spill] sm:$0xff] }
 0x253   :  { %2274 = vmatprep.subr.msk.bf16.mxu0 %vm3592_vm4, %v2273_v16  ;;  %v2279_v58 = vpack.c.bf16 %v821_v46, %v820_v6  ;;  %1122 = vmatpush1.bf16.msra.mxu1 %v1055_v23  ;;  %v903_v47 = vsel %vm3607_vm13, %v822_v32, 0.0  ;;  %v902_v8 = vsel %vm3628_vm7, %v825_v17, 0.0  ;;  %v4140_v27 = vunpack.i.h.bf16 %v3215_v59  ;;  %vm2281_vm8 = vmpackc.low %vm3628_vm7, %vm3628_vm7  ;;  %v4159_v17 = vld [vmem:[#allocation21_spill] sm:$0xff]  ;;  %v4161_v46 = vld [vmem:[#allocation16_spill] sm:$0xff] }
 0x254   :  { %v659_v50 = vsel %vm654_vm9, %v2494_v43, %v2519_v56  ;;  %v4141_v52 = vunpack.i.l.bf16 %v3215_v59  ;;  %v658_v3 = vsel %vm654_vm9, %v2493_v34, %v2518_v24  ;;  %v4142_v60 = vunpack.i.l.bf16 %v3242_v14  ;;  %vm2287_vm4 = vmpackc.low %vm3635_vm12, %vm3635_vm12  ;;  %v4162_v6 = vld [vmem:[#allocation20_spill] sm:$0xff] }
 0x255   :  { %v656_v61 = vsel %vm654_vm9, %v2519_v56, %v4140_v27  ;;  %v2288_v15 = vpack.c.bf16 %v659_v50, %v658_v3  ;;  %v2282_v38 = vpack.c.bf16 %v824_v20, %v823_v9  ;;  %v2522_v34 = vpop.permute.xlu1 %2521  ;;  %vm4143_vm1 = vcmask 588800   ;;  %vm4145_vm7 = vmmov %vm4139_vm3  ;;  %v2527_v50 = vld [vmem:[%s4013_s10 + $0x8] sm:$0xff]  }
 0x256   :  { %v655_v40 = vsel %vm654_vm9, %v2518_v24, %v4141_v52  ;;  %2277 = vmatpush1.bf16.msk.msra.mxu0 %vm3642_vm15, %v2276_v53  ;;  %v657_v59 = vsel %vm654_vm9, %v647_v12, %v4142_v60  ;;  %2189 = vmatmul.mubr.msk.bf16.vlgmr.msra.gmra.mrb[12].mxu1 %vm4143_vm1, %v3380_v33  ;;  %v1040_v14 = vpack.c.bf16 %v903_v47, %v903_v47  ;;  %v2524_v21 = vunpack.i.h.bf16 %v2522_v34 }
 0x257   :  { %v2285_v43 = vpack.c.bf16 %v656_v61, %v655_v40  ;;  %2280 = vmatprep.subr.msk.bf16.mxu0 %vm2278_vm10, %v2279_v58  ;;  %vm4144_vm13 = vnez %v4062_v57  ;;  %v1039_v30 = vpack.c.bf16 %v902_v8, %v902_v8  ;;  %1227 = vmatprep.mubr.bf16.mxu1 %v4091_v29  ;;  %v660_v22 = vsel %vm654_vm9, %v2499_v36, %v647_v12  ;;  %v815_v36 = vpop.permute.xlu0 %814  ;;  %vm4147_vm9 = vmmov %vm4139_vm3  ;;  %v2526_v61 = vld [vmem:[%s4013_s10] sm:$0xff]  }
 0x258   :  { %vm2290_vm2 = vmpackc.low %vm4144_vm13, %vm3650_vm14  ;;  %v2291_v26 = vpack.c.bf16 %v2933_v62, %v657_v59  ;;  %v2523_v39 = vunpack.i.l.bf16 %v2522_v34  ;;  %vm4146_vm11 = vnez %v4088_v28  ;;  %v869_v57 = vrot.slane %v3228_v10, %v3084_v18 }
 0x259   :  { %2286 = vmatprep.subr.msk.bf16.mxu1 %vm2284_vm5, %v2285_v43  ;;  %vm2293_vm15 = vmpackc.low %vm4146_vm11, %vm3635_vm12  ;;  %v873_v48 = vrot.slane %v3228_v10, %v2879_v37  ;;  %v2294_v62 = vpack.c.bf16 %v3134_v54, %v660_v22  ;;  %v1061_v11 = vsel %vm4147_vm9, %v1039_v30, 0  ;;  %vm4149_vm14 = vnez %v4148_v49 }
 0x25a   :  { %2283 = vmatpush1.bf16.msk.msra.mxu0 %vm2281_vm8, %v2282_v38  ;;  %2289 = vmatpush1.bf16.msk.msra.mxu1 %vm2287_vm4, %v2288_v15  ;;  %vm2296_vm3 = vmpackc.low %vm4149_vm14, %vm2659_vm0  ;;  %v2297_v28 = vpack.c.bf16 %v4151_v44, %v4150_v4  ;;  %v4152_v63 = vunpack.i.h.bf16 %v3251_v35  ;;  %v4153_v37 = vunpack.i.l.bf16 %v3251_v35  ;;  %vm3737_vm12 = vcmp.eq.s32.totalorder %v869_v57, 1 }
 0x25b   :  { %2190 = vmatprep.subr.msk.bf16.mxu0 %vm4145_vm7, %v1040_v14  ;;  %2292 = vmatprep.subr.msk.bf16.mxu1 %vm2290_vm2, %v2291_v26  ;;  %vm3741_vm10 = vcmp.eq.s32.totalorder %v873_v48, 1  ;;  %v819_v32 = vsel %vm816_vm6, %v2514_v42, %v815_v36  ;;  %v840_v35 = vsel %vm816_vm6, %v815_v36, %v4158_v0  ;;  %vm4160_vm5 = vnez %v4159_v17  ;;  %vm4165_vm2 = vmmov %vm4143_vm1 }
 0x25c   :  { %v839_v18 = vsel %vm816_vm6, %v2524_v21, %v4152_v63  ;;  %v838_v10 = vsel %vm816_vm6, %v2523_v39, %v4153_v37  ;;  %vm2299_vm8 = vmpackc.low %vm4160_vm5, %vm2659_vm0  ;;  %v2300_v13 = vpack.c.bf16 %v4162_v6, %v4161_v46  ;;  %v817_v31 = vsel %vm816_vm6, %v2508_v51, %v2523_v39 }
 0x25d   :  { %vm2302_vm4 = vmpackc.low %vm3741_vm10, %vm3741_vm10  ;;  %v818_v19 = vsel %vm816_vm6, %v2509_v55, %v2524_v21  ;;  %v2303_v42 = vpack.c.bf16 %v839_v18, %v838_v10  ;;  %v904_v45 = vsel %vm3737_vm12, %v819_v32, 0.0  ;;  %v905_v7 = vsel %vm3741_vm10, %v840_v35, 0.0 }
 0x25e   :  { %1163 = vmatpush1.bf16.msra.mxu0 %v1061_v11  ;;  %2295 = vmatpush1.bf16.msk.msra.mxu1 %vm2293_vm15, %v2294_v62  ;;  %vm2305_vm0 = vmpackc.low %vm3737_vm12, %vm3737_vm12  ;;  %v2306_v51 = vpack.c.bf16 %v818_v19, %v817_v31  ;;  %v1041_v2 = vpack.c.bf16 %v904_v45, %v904_v45  ;;  %v1042_v1 = vpack.c.bf16 %v905_v7, %v905_v7  ;;  %vm1294_vm15 = vcmask 64512   ;;  %v2528_v45 = vld [vmem:[%s4016_s13] sm:$0xff]  }
 0x25f   :  { %2298 = vmatprep.subr.msk.bf16.mxu1 %vm2296_vm3, %v2297_v28  ;;  %vm4163_vm6 = vmmov %vm4145_vm7  ;;  %v2660_v7 = vmov 0.0  }
 0x260   :  { %vm4164_vm13 = vmmov %vm4163_vm6 }
 0x261   :  { %2191 = vmatmul.mubr.msk.bf16.vlgmr.msra.gmra.mrb[8].mxu0 %vm4143_vm1, %v3380_v33  ;;  %v1067_v25 = vsel %vm4164_vm13, %v1041_v2, 0  ;;  %vm4166_vm7 = vmmov %vm4163_vm6  ;;  %vm4174_vm1 = vcmask 261120  }
 0x262   :  { %1357 = vmatprep.mubr.bf16.mxu0 %v4091_v29  ;;  %2301 = vmatpush1.bf16.msk.msra.mxu1 %vm2299_vm8, %v2300_v13  ;;  %vm4167_vm11 = vmmov %vm4163_vm6  ;;  %vm2661_vm8 = vmmov 0  }
 0x263   :  { %2304 = vmatprep.subr.msk.bf16.mxu1 %vm2302_vm4, %v2303_v42  ;;  %vm4168_vm9 = vmmov %vm4163_vm6  ;;  %v1762_v42 = vld [vmem:[%s4006_s3 + $0x8] sm:$0xff] }
 0x264   :  { %vm4169_vm14 = vmmov %vm4163_vm6 }
 0x265   :  { %vm4170_vm3 = vmmov %vm4163_vm6 }
 0x266   :  { %2307 = vmatpush1.bf16.msk.msra.mxu1 %vm2305_vm0, %v2306_v51  ;;  %v1240_v55 = vpop.permute.xlu1 %1239  ;;  %v3784_v20 = vpop.permute.xlu0 %1253  ;;  %vm4171_vm12 = vmmov %vm4170_vm3 }
 0x267   :  { %2192 = vmatprep.subr.msk.bf16.mxu1 %vm4163_vm6, %v1042_v1  ;;  %vm4172_vm10 = vmmov %vm4170_vm3  ;;  %v1649_v1 = vld [vmem:[#allocation3] sm:$0xff] }
 0x268   :  { %vm4173_vm5 = vmmov %vm4170_vm3 }
 0x26a   :  { %1204 = vmatpush1.bf16.msra.mxu1 %v1067_v25  ;;  %v3830_v51 = vpop.permute.xlu1 %1543 }
 0x26d   :  { %2193 = vmatmul.mubr.msk.bf16.vlgmr.msra.gmra.mrb[16].mxu1 %vm4165_vm2, %v3380_v33 }
 0x26e   :  { %1410 = vmatprep.mubr.bf16.mxu1 %v4091_v29  ;;  %v3834_v2 = vpop.permute.xlu1 %1599 }
 0x315   :  { %v1106_v53 = vpop.f32.mrb[8].mxu1 }
 0x316   :  { %v1242_v41 = vmul.f32 %v1240_v55, %v1106_v53  ;;  %v1108_v5 = vpop.f32.mrb[9].mxu1  ;;  %v1653_v53 = vld [vmem:[#allocation3 + $0x20] sm:$0xff] }
 0x317   :  { %v1243_v12 = vmul.f32 %v1240_v55, %v1108_v5  ;;  %v1110_v56 = vpop.f32.mrb[10].mxu1  ;;  %v1665_v5 = vunpack.c.l.bf16 %v1649_v1 }
 0x318   :  { %v1256_v24 = vadd.f32 %v3784_v20, %v1242_v41  ;;  %v1111_v23 = vpop.f32.mrb[11].mxu1  ;;  %v1666_v56 = vunpack.c.h.bf16 %v1649_v1 }
 0x319   :  { %v1257_v9 = vadd.f32 %v3784_v20, %v1243_v12 }
 0x31a   :  { %v1264_v58 = vmax.f32 %v1256_v24, 0.0 }
 0x31b   :  { %v1265_v47 = vmax.f32 %v1257_v9, 0.0 }
 0x31c   :  { %v1276_v8 = vpack.c.bf16 %v1264_v58, %v1264_v58  ;;  %v1673_v58 = vunpack.c.l.bf16 %v1653_v53 }
 0x31d   :  { %v1277_v27 = vpack.c.bf16 %v1265_v47, %v1265_v47 }
 0x31e   :  { %v1302_v33 = vsel %vm4166_vm7, %v1276_v8, 0  ;;  %v3842_v8 = vpop.permute.xlu1 %1553 }
 0x31f   :  { %2196 = vmatprep.subr.msk.bf16.mxu0 %vm4167_vm11, %v1277_v27 }
 0x320   :  { %1326 = vmatpush1.bf16.msra.mxu0 %v1302_v33 }
 0x323   :  { %2197 = vmatmul.mubr.msk.bf16.vlgmr.msra.gmra.mrb[12].mxu0 %vm1294_vm15, %v2526_v61 }
 0x324   :  { %1367 = vmatprep.mubr.bf16.mxu0 %v4091_v29 }
 0x329   :  { %v1147_v52 = vpop.f32.mrb[12].mxu1 }
 0x32a   :  { %v1244_v40 = vmul.f32 %v1240_v55, %v1147_v52  ;;  %v1149_v3 = vpop.f32.mrb[13].mxu1 }
 0x32b   :  { %v1245_v60 = vmul.f32 %v1240_v55, %v1149_v3  ;;  %v1151_v59 = vpop.f32.mrb[14].mxu1  ;;  %2198 = vmatmul.mubr.msk.bf16.gmra.mrb[16].mxu0 %vm1294_vm15, %v2527_v50 }
 0x32c   :  { %v1258_v43 = vadd.f32 %v3784_v20, %v1244_v40  ;;  %v1152_v15 = vpop.f32.mrb[15].mxu1  ;;  %1463 = vmatprep.mubr.bf16.mxu0 %v4091_v29  ;;  %v1657_v59 = vld [vmem:[#allocation3 + $0x40] sm:$0xff] }
 0x32d   :  { %v1259_v38 = vadd.f32 %v3784_v20, %v1245_v60 }
 0x32e   :  { %v1266_v34 = vmax.f32 %v1258_v43, 0.0 }
 0x32f   :  { %v1267_v14 = vmax.f32 %v1259_v38, 0.0 }
 0x330   :  { %v1278_v30 = vpack.c.bf16 %v1266_v34, %v1266_v34  ;;  %v1661_v34 = vld [vmem:[#allocation3 + $0x60] sm:$0xff] }
 0x331   :  { %v1279_v22 = vpack.c.bf16 %v1267_v14, %v1267_v14 }
 0x332   :  { %v1308_v21 = vsel %vm4168_vm9, %v1278_v30, 0 }
 0x333   :  { %2199 = vmatprep.subr.msk.bf16.mxu1 %vm4169_vm14, %v1279_v22 }
 0x334   :  { %v1188_v26 = vpop.f32.mrb[8].mxu0  ;;  %1379 = vmatpush1.bf16.msra.mxu1 %v1308_v21 }
 0x335   :  { %v1246_v39 = vmul.f32 %v1240_v55, %v1188_v26  ;;  %v1190_v57 = vpop.f32.mrb[9].mxu0  ;;  %v1681_v26 = vunpack.c.l.bf16 %v1657_v59 }
 0x336   :  { %v1247_v48 = vmul.f32 %v1240_v55, %v1190_v57  ;;  %v1192_v62 = vpop.f32.mrb[10].mxu0 }
 0x337   :  { %v1260_v36 = vadd.f32 %v3784_v20, %v1246_v39  ;;  %v1193_v11 = vpop.f32.mrb[11].mxu0  ;;  %2200 = vmatmul.mubr.msk.bf16.vlgmr.msra.gmra.mrb[20].mxu1 %vm1294_vm15, %v2526_v61  ;;  %v3851_v39 = vpop.permute.xlu1 %1609 }
 0x338   :  { %v1261_v49 = vadd.f32 %v3784_v20, %v1247_v48  ;;  %1420 = vmatprep.mubr.bf16.mxu1 %v4091_v29 }
 0x339   :  { %v1268_v4 = vmax.f32 %v1260_v36, 0.0  ;;  %v1682_v36 = vunpack.c.h.bf16 %v1657_v59 }
 0x33a   :  { %v1269_v44 = vmax.f32 %v1261_v49, 0.0 }
 0x33b   :  { %v1280_v28 = vpack.c.bf16 %v1268_v4, %v1268_v4 }
 0x33c   :  { %v1281_v63 = vpack.c.bf16 %v1269_v44, %v1269_v44 }
 0x33d   :  { %v1314_v18 = vsel %vm4170_vm3, %v1280_v28, 0  ;;  %v1689_v28 = vunpack.c.l.bf16 %v1661_v34 }
 0x33e   :  { %2202 = vmatprep.subr.msk.bf16.mxu0 %vm4171_vm12, %v1281_v63 }
 0x33f   :  { %1432 = vmatpush1.bf16.msra.mxu0 %v1314_v18  ;;  %2201 = vmatmul.mubr.msk.bf16.gmra.mrb[24].mxu1 %vm1294_vm15, %v2527_v50 }
 0x340   :  { %v1229_v37 = vpop.f32.mrb[16].mxu1  ;;  %1516 = vmatprep.mubr.bf16.mxu1 %v4091_v29 }
 0x341   :  { %v1248_v10 = vmul.f32 %v1240_v55, %v1229_v37  ;;  %v1231_v54 = vpop.f32.mrb[17].mxu1 }
 0x342   :  { %2203 = vmatmul.mubr.msk.bf16.vlgmr.msra.gmra.mrb[20].mxu0 %vm1294_vm15, %v2526_v61  ;;  %v1249_v16 = vmul.f32 %v1240_v55, %v1231_v54  ;;  %v1233_v32 = vpop.f32.mrb[18].mxu1  ;;  %v1690_v54 = vunpack.c.h.bf16 %v1661_v34 }
 0x343   :  { %1473 = vmatprep.mubr.bf16.mxu0 %v4091_v29  ;;  %v1262_v0 = vadd.f32 %v3784_v20, %v1248_v10  ;;  %v1234_v35 = vpop.f32.mrb[19].mxu1 }
 0x344   :  { %v1263_v17 = vadd.f32 %v3784_v20, %v1249_v16 }
 0x345   :  { %v1270_v46 = vmax.f32 %v1262_v0, 0.0 }
 0x346   :  { %v1271_v6 = vmax.f32 %v1263_v17, 0.0 }
 0x347   :  { %v1282_v13 = vpack.c.bf16 %v1270_v46, %v1270_v46 }
 0x348   :  { %v1283_v31 = vpack.c.bf16 %v1271_v6, %v1271_v6 }
 0x349   :  { %v1320_v19 = vsel %vm4172_vm10, %v1282_v13, 0 }
 0x34a   :  { %2204 = vmatmul.mubr.msk.bf16.gmra.mrb[24].mxu0 %vm1294_vm15, %v2527_v50  ;;  %2205 = vmatprep.subr.msk.bf16.mxu1 %vm4173_vm5, %v1283_v31 }
 0x34b   :  { %1485 = vmatpush1.bf16.msra.mxu1 %v1320_v19  ;;  %1841 = vmatprep.mubr.f32.mxu0 %v1762_v42 }
 0x34c   :  { %2311 = vmatprep.subr.bf16.mxu1 %v2660_v7 }
 0x34e   :  { %2206 = vmatmul.mubr.msk.bf16.vlgmr.msra.gmra.mrb[28].mxu1 %vm1294_vm15, %v2526_v61  ;;  %v1674_v61 = vunpack.c.h.bf16 %v1653_v53  ;;  %v1654_v53 = vld [vmem:[#allocation3 + $0x28] sm:$0xff] }
 0x34f   :  { %1526 = vmatprep.mubr.bf16.mxu1 %v4091_v29  ;;  %2312 = vmatpush3.bf16.msra.mxu1 %v2528_v45  ;;  %v3832_v29 = vpop.permute.xlu0 %1548  ;;  %v1650_v45 = vld [vmem:[#allocation3 + $0x8] sm:$0xff] }
 0x350   :  { %2313 = vmatprep.subr.bf16.mxu1 %v2660_v7 }
 0x353   :  { %v3836_v25 = vpop.permute.xlu0 %1604 }
 0x356   :  { %2207 = vmatmul.mubr.msk.bf16.gmra.mrb[32].mxu1 %vm1294_vm15, %v2527_v50 }
 0x357   :  { %v3847_v40 = vpop.permute.xlu0 %1558  ;;  %2315 = vmatprep.mubr.msk.bf16.mxu1 %vm2661_vm8, %v2660_v7 }
 0x35b   :  { %v3856_v18 = vpop.permute.xlu0 %1614 }
 0x3f6   :  { %v1359_v55 = vpop.f32.mrb[12].mxu0 }
 0x3f7   :  { %v1561_v41 = vmul.f32 %v3830_v51, %v1359_v55  ;;  %v1361_v20 = vpop.f32.mrb[13].mxu0 }
 0x3f8   :  { %v1562_v12 = vmul.f32 %v3830_v51, %v1361_v20  ;;  %v1363_v24 = vpop.f32.mrb[14].mxu0  ;;  %v1667_v20 = vunpack.c.l.bf16 %v1650_v45 }
 0x3f9   :  { %v1617_v23 = vadd.f32 %v3834_v2, %v1561_v41  ;;  %v1569_v9 = vmul.f32 %v3832_v29, %v1363_v24  ;;  %v1365_v47 = vpop.f32.mrb[15].mxu0 }
 0x3fa   :  { %v1618_v27 = vadd.f32 %v3834_v2, %v1562_v12  ;;  %v1570_v33 = vmul.f32 %v3832_v29, %v1365_v47  ;;  %v1675_v47 = vunpack.c.l.bf16 %v1654_v53 }
 0x3fb   :  { %v1697_v50 = vadd.f32 %v1665_v5, %v1617_v23  ;;  %v1625_v52 = vadd.f32 %v3836_v25, %v1569_v9  ;;  %v3864_v23 = vld [vmem:[#allocation3 + $0x48] sm:$0xff] }
 0x3fc   :  { %v1698_v3 = vadd.f32 %v1666_v56, %v1618_v27  ;;  %v1626_v60 = vadd.f32 %v3836_v25, %v1570_v33  ;;  %v3868_v33 = vld [vmem:[#allocation3 + $0x10] sm:$0xff] }
 0x3fd   :  { %v1705_v43 = vadd.f32 %v1673_v58, %v1625_v52  ;;  %v1729_v14 = vmax.f32 %v1697_v50, 0.0  ;;  %v1676_v50 = vunpack.c.h.bf16 %v1654_v53  ;;  %v3871_v52 = vld [vmem:[#allocation3 + $0x68] sm:$0xff]  ;;  %v1769_v53 = vld [vmem:[%s4006_s3 + $0x40] sm:$0xff] }
 0x3fe   :  { %v1706_v15 = vadd.f32 %v1674_v61, %v1626_v60  ;;  %v1369_v38 = vpop.f32.mrb[16].mxu0  ;;  %v1730_v57 = vmax.f32 %v1698_v3, 0.0  ;;  %v1668_v60 = vunpack.c.h.bf16 %v1650_v45 }
 0x3ff   :  { %v1737_v30 = vmax.f32 %v1705_v43, 0.0  ;;  %v1577_v22 = vmul.f32 %v3842_v8, %v1369_v38  ;;  %v1371_v21 = vpop.f32.mrb[17].mxu0  ;;  %v1683_v43 = vunpack.c.l.bf16 %v3864_v23  ;;  %v3877_v38 = vld [vmem:[#allocation3 + $0x50] sm:$0xff] }
 0x400   :  { %v1738_v48 = vmax.f32 %v1706_v15, 0.0  ;;  %v1578_v62 = vmul.f32 %v3842_v8, %v1371_v21  ;;  %v1373_v11 = vpop.f32.mrb[18].mxu0  ;;  %v3875_v15 = vld [vmem:[#allocation3 + $0x30] sm:$0xff]  ;;  %v1691_v21 = vunpack.c.l.bf16 %v3871_v52 }
 0x401   :  { %v2321_v49 = vpack.c.bf16 %v1737_v30, %v1729_v14  ;;  %v1633_v4 = vadd.f32 %v3851_v39, %v1577_v22  ;;  %v1585_v44 = vmul.f32 %v3847_v40, %v1373_v11  ;;  %v1375_v63 = vpop.f32.mrb[19].mxu0  ;;  %v1684_v30 = vunpack.c.h.bf16 %v3864_v23 }
 0x402   :  { %v1634_v37 = vadd.f32 %v3851_v39, %v1578_v62  ;;  %v1586_v10 = vmul.f32 %v3847_v40, %v1375_v63  ;;  %v2319_v16 = vpack.c.bf16 %v1738_v48, %v1730_v57  ;;  %v1669_v22 = vunpack.c.l.bf16 %v3868_v33  ;;  %v1761_v62 = vld [vmem:[%s4006_s3] sm:$0xff] }
 0x403   :  { %v1713_v32 = vadd.f32 %v1681_v26, %v1633_v4  ;;  %v1641_v0 = vadd.f32 %v3856_v18, %v1585_v44  ;;  %v1670_v57 = vunpack.c.h.bf16 %v3868_v33  ;;  %v1692_v48 = vunpack.c.h.bf16 %v3871_v52 }
 0x404   :  { %v1714_v35 = vadd.f32 %v1682_v36, %v1634_v37  ;;  %v1642_v17 = vadd.f32 %v3856_v18, %v1586_v10  ;;  %2320 = vmatprep.subr.bf16.mxu0 %v2319_v16  ;;  %v1678_v4 = vunpack.c.h.bf16 %v3875_v15  ;;  %v1685_v44 = vunpack.c.l.bf16 %v3877_v38 }
 0x405   :  { %v1721_v46 = vadd.f32 %v1689_v28, %v1641_v0  ;;  %2322 = vmatpush1.bf16.xpose.msra.mxu0 %v2321_v49  ;;  %v1745_v13 = vmax.f32 %v1713_v32, 0.0  ;;  %v1677_v49 = vunpack.c.l.bf16 %v3875_v15  ;;  %v1770_v28 = vld [vmem:[%s4006_s3 + $0x48] sm:$0xff]  ;;  %v1686_v32 = vunpack.c.h.bf16 %v3877_v38 }
 0x406   :  { %v1722_v6 = vadd.f32 %v1690_v54, %v1642_v17  ;;  %v1746_v19 = vmax.f32 %v1714_v35, 0.0 }
 0x407   :  { %v1753_v31 = vmax.f32 %v1721_v46, 0.0 }
 0x408   :  { %v1754_v42 = vmax.f32 %v1722_v6, 0.0 }
 0x409   :  { %v2325_v1 = vpack.c.bf16 %v1753_v31, %v1745_v13 }
 0x40a   :  { %v1412_v55 = vpop.f32.mrb[20].mxu1  ;;  %v2323_v41 = vpack.c.bf16 %v1754_v42, %v1746_v19 }
 0x40b   :  { %v1563_v5 = vmul.f32 %v3830_v51, %v1412_v55  ;;  %v1414_v12 = vpop.f32.mrb[21].mxu1 }
 0x40c   :  { %v1564_v56 = vmul.f32 %v3830_v51, %v1414_v12  ;;  %v1416_v24 = vpop.f32.mrb[22].mxu1  ;;  %2324 = vmatprep.subr.bf16.mxu0 %v2323_v41 }
 0x40d   :  { %v1619_v9 = vadd.f32 %v3834_v2, %v1563_v5  ;;  %v1571_v58 = vmul.f32 %v3832_v29, %v1416_v24  ;;  %v1418_v27 = vpop.f32.mrb[23].mxu1  ;;  %2326 = vmatpush1.bf16.xpose.msra.mxu0 %v2325_v1  ;;  %v1764_v24 = vld [vmem:[%s4006_s3 + $0x18] sm:$0xff] }
 0x40e   :  { %v1572_v61 = vmul.f32 %v3832_v29, %v1418_v27  ;;  %v1620_v34 = vadd.f32 %v3834_v2, %v1564_v56  ;;  %v1663_v27 = vld [vmem:[#allocation3 + $0x70] sm:$0xff] }
 0x40f   :  { %v1699_v3 = vadd.f32 %v1667_v20, %v1619_v9  ;;  %v1627_v59 = vadd.f32 %v3836_v25, %v1571_v58 }
 0x410   :  { %v1628_v14 = vadd.f32 %v3836_v25, %v1572_v61  ;;  %v1700_v0 = vadd.f32 %v1668_v60, %v1620_v34 }
 0x411   :  { %v1707_v26 = vadd.f32 %v1675_v47, %v1627_v59  ;;  %v1731_v63 = vmax.f32 %v1699_v3, 0.0 }
 0x412   :  { %v1708_v36 = vadd.f32 %v1676_v50, %v1628_v14  ;;  %v1422_v11 = vpop.f32.mrb[24].mxu1  ;;  %v1732_v3 = vmax.f32 %v1700_v0, 0.0 }
 0x413   :  { %v1739_v37 = vmax.f32 %v1707_v26, 0.0  ;;  %v1579_v10 = vmul.f32 %v3842_v8, %v1422_v11  ;;  %v1424_v54 = vpop.f32.mrb[25].mxu1  ;;  %v1693_v26 = vunpack.c.l.bf16 %v1663_v27 }
 0x414   :  { %v1740_v35 = vmax.f32 %v1708_v36, 0.0  ;;  %v1580_v17 = vmul.f32 %v3842_v8, %v1424_v54  ;;  %v1426_v6 = vpop.f32.mrb[26].mxu1  ;;  %1842 = vmatmul.mubr.f32.vlgmr.msra.gmra.mrb[28].mxu0 %v1761_v62 }
 0x415   :  { %v1465_v16 = vpop.f32.mrb[20].mxu0  ;;  %v2329_v31 = vpack.c.bf16 %v1739_v37, %v1731_v63  ;;  %v1635_v19 = vadd.f32 %v3851_v39, %v1579_v10  ;;  %v1587_v42 = vmul.f32 %v3847_v40, %v1426_v6  ;;  %v1428_v1 = vpop.f32.mrb[27].mxu1  ;;  %1846 = vmatprep.mubr.f32.mxu0 %v1770_v28 }
 0x416   :  { %v1565_v46 = vmul.f32 %v3830_v51, %v1465_v16  ;;  %v1467_v13 = vpop.f32.mrb[21].mxu0  ;;  %v1636_v41 = vadd.f32 %v3851_v39, %v1580_v17  ;;  %v1588_v20 = vmul.f32 %v3847_v40, %v1428_v1 }
 0x417   :  { %v1566_v45 = vmul.f32 %v3830_v51, %v1467_v13  ;;  %v1469_v55 = vpop.f32.mrb[22].mxu0  ;;  %v1715_v23 = vadd.f32 %v1683_v43, %v1635_v19  ;;  %v1643_v9 = vadd.f32 %v3856_v18, %v1587_v42  ;;  %v1694_v42 = vunpack.c.h.bf16 %v1663_v27 }
 0x418   :  { %v1621_v5 = vadd.f32 %v3834_v2, %v1565_v46  ;;  %v1573_v12 = vmul.f32 %v3832_v29, %v1469_v55  ;;  %v1471_v56 = vpop.f32.mrb[23].mxu0  ;;  %v1716_v33 = vadd.f32 %v1684_v30, %v1636_v41  ;;  %v1644_v50 = vadd.f32 %v3856_v18, %v1588_v20  ;;  %1847 = vmatmul.mubr.f32.gmra.mrb[30].mxu0 %v1769_v53  ;;  %v1652_v46 = vld [vmem:[#allocation3 + $0x18] sm:$0xff] }
 0x419   :  { %v1622_v58 = vadd.f32 %v3834_v2, %v1566_v45  ;;  %v1574_v47 = vmul.f32 %v3832_v29, %v1471_v56  ;;  %v1723_v60 = vadd.f32 %v1691_v21, %v1643_v9  ;;  %1916 = vmatprep.mubr.f32.mxu0 %v1764_v24  ;;  %v1747_v43 = vmax.f32 %v1715_v23, 0.0  ;;  %v1656_v45 = vld [vmem:[#allocation3 + $0x38] sm:$0xff] }
 0x41a   :  { %v1701_v61 = vadd.f32 %v1669_v22, %v1621_v5  ;;  %v1629_v52 = vadd.f32 %v3836_v25, %v1573_v12  ;;  %v1724_v34 = vadd.f32 %v1692_v48, %v1644_v50  ;;  %v1748_v62 = vmax.f32 %v1716_v33, 0.0 }
 0x41b   :  { %v1702_v59 = vadd.f32 %v1670_v57, %v1622_v58  ;;  %v1630_v15 = vadd.f32 %v3836_v25, %v1574_v47  ;;  %v1755_v36 = vmax.f32 %v1723_v60, 0.0  ;;  %v2327_v30 = vpack.c.bf16 %v1740_v35, %v1732_v3 }
 0x41c   :  { %v1709_v14 = vadd.f32 %v1677_v49, %v1629_v52  ;;  %v1733_v28 = vmax.f32 %v1701_v61, 0.0  ;;  %v1756_v63 = vmax.f32 %v1724_v34, 0.0  ;;  %v1671_v12 = vunpack.c.l.bf16 %v1652_v46 }
 0x41d   :  { %v1710_v11 = vadd.f32 %v1678_v4, %v1630_v15  ;;  %v1475_v22 = vpop.f32.mrb[24].mxu0  ;;  %v2333_v21 = vpack.c.bf16 %v1755_v36, %v1747_v43  ;;  %v1734_v57 = vmax.f32 %v1702_v59, 0.0  ;;  %2328 = vmatprep.subr.bf16.mxu0 %v2327_v30  ;;  %v1672_v9 = vunpack.c.h.bf16 %v1652_v46  ;;  %v1772_v46 = vld [vmem:[%s4006_s3 + $0x58] sm:$0xff] }
 0x41e   :  { %v1741_v37 = vmax.f32 %v1709_v14, 0.0  ;;  %v1581_v10 = vmul.f32 %v3842_v8, %v1475_v22  ;;  %v1477_v54 = vpop.f32.mrb[25].mxu0  ;;  %2330 = vmatpush1.bf16.xpose.msra.mxu0 %v2329_v31  ;;  %v2331_v6 = vpack.c.bf16 %v1756_v63, %v1748_v62  ;;  %v1679_v47 = vunpack.c.l.bf16 %v1656_v45  ;;  %v1664_v22 = vld [vmem:[#allocation3 + $0x78] sm:$0xff] }
 0x41f   :  { %v1742_v16 = vmax.f32 %v1710_v11, 0.0  ;;  %v1582_v0 = vmul.f32 %v3842_v8, %v1477_v54  ;;  %v1479_v48 = vpop.f32.mrb[26].mxu0  ;;  %v1680_v38 = vunpack.c.h.bf16 %v1656_v45 }
 0x420   :  { %v3920_v49 = vpack.c.bf16 %v1741_v37, %v1733_v28  ;;  %v1637_v4 = vadd.f32 %v3851_v39, %v1581_v10  ;;  %v1589_v35 = vmul.f32 %v3847_v40, %v1479_v48  ;;  %v1481_v17 = vpop.f32.mrb[27].mxu0  ;;  %2332 = vmatprep.subr.bf16.mxu0 %v2331_v6 }
 0x421   :  { %v1638_v13 = vadd.f32 %v3851_v39, %v1582_v0  ;;  %v1590_v19 = vmul.f32 %v3847_v40, %v1481_v17  ;;  %v2335_v1 = vpack.c.bf16 %v1742_v16, %v1734_v57  ;;  %v1518_v31 = vpop.f32.mrb[28].mxu1 }
 0x422   :  { %v1717_v55 = vadd.f32 %v1685_v44, %v1637_v4  ;;  %v1645_v53 = vadd.f32 %v3856_v18, %v1589_v35  ;;  %v1567_v20 = vmul.f32 %v3830_v51, %v1518_v31  ;;  %v1520_v56 = vpop.f32.mrb[29].mxu1  ;;  %v1695_v35 = vunpack.c.l.bf16 %v1664_v22 }
 0x423   :  { %v1718_v41 = vadd.f32 %v1686_v32, %v1638_v13  ;;  %v1646_v5 = vadd.f32 %v3856_v18, %v1590_v19  ;;  %v1568_v23 = vmul.f32 %v3830_v51, %v1520_v56  ;;  %v1522_v58 = vpop.f32.mrb[30].mxu1  ;;  %v1696_v13 = vunpack.c.h.bf16 %v1664_v22  ;;  %v1765_v56 = vld [vmem:[%s4006_s3 + $0x20] sm:$0xff] }
 0x424   :  { %v1725_v24 = vadd.f32 %v1693_v26, %v1645_v53  ;;  %v1623_v27 = vadd.f32 %v3834_v2, %v1567_v20  ;;  %v1575_v33 = vmul.f32 %v3832_v29, %v1522_v58  ;;  %v1524_v61 = vpop.f32.mrb[31].mxu1  ;;  %v1749_v32 = vmax.f32 %v1717_v55, 0.0  ;;  %v1660_v26 = vld [vmem:[#allocation3 + $0x58] sm:$0xff]  ;;  %v1771_v53 = vld [vmem:[%s4006_s3 + $0x50] sm:$0xff] }
 0x425   :  { %v1726_v44 = vadd.f32 %v1694_v42, %v1646_v5  ;;  %v1624_v52 = vadd.f32 %v3834_v2, %v1568_v23  ;;  %v1576_v3 = vmul.f32 %v3832_v29, %v1524_v61  ;;  %v1750_v60 = vmax.f32 %v1718_v41, 0.0  ;;  %v1773_v23 = vld [vmem:[%s4006_s3 + $0x60] sm:$0xff]  ;;  %v1767_v58 = vld [vmem:[%s4006_s3 + $0x30] sm:$0xff] }
 0x426   :  { %v1757_v50 = vmax.f32 %v1725_v24, 0.0  ;;  %v1703_v15 = vadd.f32 %v1671_v12, %v1623_v27  ;;  %v1631_v51 = vadd.f32 %v3836_v25, %v1575_v33  ;;  %2334 = vmatpush1.bf16.xpose.msra.mxu0 %v2333_v21  ;;  %v1687_v63 = vunpack.c.l.bf16 %v1660_v26  ;;  %v1774_v24 = vld [vmem:[%s4006_s3 + $0x68] sm:$0xff] }
 0x427   :  { %v1758_v59 = vmax.f32 %v1726_v44, 0.0  ;;  %v1704_v34 = vadd.f32 %v1672_v9, %v1624_v52  ;;  %v1632_v14 = vadd.f32 %v3836_v25, %v1576_v3  ;;  %2336 = vmatprep.subr.bf16.mxu0 %v2335_v1  ;;  %v1688_v21 = vunpack.c.h.bf16 %v1660_v26  ;;  %v1763_v25 = vld [vmem:[%s4006_s3 + $0x10] sm:$0xff]  ;;  %v1768_v9 = vld [vmem:[%s4006_s3 + $0x38] sm:$0xff]  ;;  %v2529_v27 = vld [vmem:[%s4016_s13 + $0x8] sm:$0xff]  }
 0x428   :  { %v2341_v43 = vpack.c.bf16 %v1757_v50, %v1749_v32  ;;  %v1711_v62 = vadd.f32 %v1679_v47, %v1631_v51  ;;  %v1735_v2 = vmax.f32 %v1703_v15, 0.0  ;;  %v1776_v47 = vld [vmem:[%s4006_s3 + $0x78] sm:$0xff]  ;;  %v1775_v44 = vld [vmem:[%s4006_s3 + $0x70] sm:$0xff]  ;;  %2314 = vmatpush3.bf16.msra.mxu1 %v2529_v27  ;;  %v2208_v52 = vld [vmem:[%s4017_s14] ss:$0 sm:$0xff] }
 0x429   :  { %v2339_v36 = vpack.c.bf16 %v1758_v59, %v1750_v60  ;;  %v1712_v11 = vadd.f32 %v1680_v38, %v1632_v14  ;;  %v1528_v30 = vpop.f32.mrb[32].mxu1  ;;  %v1736_v10 = vmax.f32 %v1704_v34, 0.0 }
 0x42a   :  { %v1743_v28 = vmax.f32 %v1711_v62, 0.0  ;;  %v1583_v29 = vmul.f32 %v3842_v8, %v1528_v30  ;;  %v1530_v37 = vpop.f32.mrb[33].mxu1 }
 0x42b   :  { %v1744_v54 = vmax.f32 %v1712_v11, 0.0  ;;  %v1584_v57 = vmul.f32 %v3842_v8, %v1530_v37  ;;  %v1532_v16 = vpop.f32.mrb[34].mxu1 }
 0x42c   :  { %v2345_v0 = vpack.c.bf16 %v1743_v28, %v1735_v2  ;;  %v1639_v48 = vadd.f32 %v3851_v39, %v1583_v29  ;;  %v1591_v4 = vmul.f32 %v3847_v40, %v1532_v16  ;;  %v1534_v17 = vpop.f32.mrb[35].mxu1 }
 0x42d   :  { %v1640_v6 = vadd.f32 %v3851_v39, %v1584_v57  ;;  %v1592_v8 = vmul.f32 %v3847_v40, %v1534_v17  ;;  %v2343_v19 = vpack.c.bf16 %v1744_v54, %v1736_v10  ;;  %1917 = vmatmul.mubr.f32.vlgmr.msra.gmra.mrb[28].mxu0 %v1763_v25  ;;  %v1766_v40 = vld [vmem:[%s4006_s3 + $0x28] sm:$0xff]  ;;  %s2662_s3 = smov [#allocation11]  }
 0x42e   :  { %v1719_v42 = vadd.f32 %v1687_v63, %v1639_v48  ;;  %v1647_v45 = vadd.f32 %v3856_v18, %v1591_v4  ;;  %2338 = vmatpush1.bf16.xpose.msra.mxu0 %v3920_v49  ;;  %1921 = vmatprep.mubr.f32.mxu0 %v1772_v46  ;;  %s2152_s2 = sshll.u32 %s2662_s3, 4  ;;  %s2153_s2 = int_to_ptr.vmem [resolvable:$true] %s2152_s2 }
 0x42f   :  { %v1720_v1 = vadd.f32 %v1688_v21, %v1640_v6  ;;  %v1648_v55 = vadd.f32 %v3856_v18, %v1592_v8  ;;  %2340 = vmatprep.subr.bf16.mxu0 %v2339_v36  ;;  %s2618_s13 = scalar_lea.vmem %s2153_s2, 256  ;;  %p2623_p5 = scmp.lt.s32.totalorder %s2153_s2, %s2153_s2 }
 0x430   :  { %v1727_v31 = vadd.f32 %v1695_v35, %v1647_v45  ;;  %v1751_v41 = vmax.f32 %v1719_v42, 0.0  ;;  %p2619_p4 = scmp.ne.s32.totalorder %s2153_s2, %s2618_s13  ;;  %p2624_p6 = scmp.lt.s32.totalorder %s2618_s13, %s2618_s13 }
 0x431   :  { %v1728_v39 = vadd.f32 %v1696_v13, %v1648_v55  ;;  %1922 = vmatmul.mubr.f32.gmra.mrb[30].mxu0 %v1771_v53  ;;  %v1752_v20 = vmax.f32 %v1720_v1, 0.0 }
 0x432   :  { %v1759_v5 = vmax.f32 %v1727_v31, 0.0  ;;  %1991 = vmatprep.mubr.f32.mxu0 %v1766_v40  ;;  %p2625_p7 = por %p2624_p6, %p2623_p5 }
 0x433   :  { %v1760_v12 = vmax.f32 %v1728_v39, 0.0 }
 0x434   :  { %v2349_v49 = vpack.c.bf16 %v1759_v5, %v1751_v41  ;;  %p2626_p8 = pnand %p2625_p7, %p2619_p4 }
 0x435   :  { %v2347_v18 = vpack.c.bf16 %v1760_v12, %v1752_v20 }
 0x436   :  { %2342 = vmatpush1.bf16.xpose.msra.mxu0 %v2341_v43 }
 0x437   :  { %2344 = vmatprep.subr.bf16.mxu0 %v2343_v19 }
 0x43d   :  { %1992 = vmatmul.mubr.f32.vlgmr.msra.gmra.mrb[28].mxu0 %v1765_v56 }
 0x43e   :  { %2346 = vmatpush1.bf16.xpose.msra.mxu0 %v2345_v0  ;;  %1996 = vmatprep.mubr.f32.mxu0 %v1774_v24 }
 0x43f   :  { %2348 = vmatprep.subr.bf16.mxu0 %v2347_v18 }
 0x441   :  { %1997 = vmatmul.mubr.f32.gmra.mrb[30].mxu0 %v1773_v23 }
 0x442   :  { %2066 = vmatprep.mubr.f32.mxu0 %v1768_v9 }
 0x446   :  { %2350 = vmatpush1.bf16.xpose.msra.mxu0 %v2349_v49 }
 0x44d   :  { %2067 = vmatmul.mubr.f32.vlgmr.msra.gmra.mrb[28].mxu0 %v1767_v58 }
 0x44e   :  { %2071 = vmatprep.mubr.f32.mxu0 %v1776_v47 }
 0x451   :  { %2072 = vmatmul.mubr.f32.gmra.mrb[30].mxu0 %v1775_v44 }
 0x520   :  { %v2068_v33 = vpop.f32.mrb[28].mxu0 }
 0x521   :  { %v2070_v61 = vpop.f32.mrb[29].mxu0 }
 0x524   :  { %v2073_v38 = vpop.f32.mrb[30].mxu0 }
 0x525   :  { %v2077_v32 = vpack.c.bf16 %v2073_v38, %v2068_v33  ;;  %v2075_v50 = vpop.f32.mrb[31].mxu0 }
 0x527   :  { %2316 = vmatmul.mubr.msk.bf16.vlgmr.msra.gmra.mrb[36].mxu1 %vm4174_vm1, %v2077_v32 }
 0x5fa   :  { %v2138_v3 = vpop.f32.mrb[36].mxu1 }
 0x5fb   :  { %v2139_v60 = vadd.f32 %v2208_v52, %v2138_v3  ;;  %v2317_v59 = vpop.f32.mrb[37].mxu1 }
 0x5fc   :  { %v2141_v15 = vpop.f32.mrb[38].mxu1 }
 0x5fd   :  { %2145 = vst [vmem:[#allocation11] sm:$0xff] %v2139_v60  ;;  %v2142_v51 = vadd.f32 %v2208_v52, %v2141_v15  ;;  %v2318_v7 = vpop.f32.mrb[39].mxu1 }
 0x5ff   :  { %2146 = vst [vmem:[#allocation11 + $0x8] sm:$0xff] %v2142_v51 }
 0x600   :  { %2629 = shalt.err (!%p2626_p8)
}
 0x601   :  { %s2630_s4 = scalar_lea.hbm %s4018_s15, 256 }
 0x602   :  { %p2631_p9 = scmp.ne.s32.totalorder %s4018_s15, %s2630_s4  ;;  %p2634_p10 = scmp.lt.u32.totalorder %s2630_s4, %s4018_s15 }
 0x604   :  { %p2636_p11 = pnand %p2634_p10, %p2631_p9 }
 0x606   :  { %2639 = shalt.err (!%p2636_p11)
}
 0x607   :  { %s2663_s6 = smov 128  }
 0x608   :  { %2158 = dma.vmem_to_hbm [thread:$0]  %s2153_s2, 256, %s4018_s15, [#allocation5], %s2663_s6, %s2663_s6, %s2657_s25  }
 0x609   :  { %2646 = dma.done.wait [#allocation5], 256  }
 0x60a   :  { %2647 = vsyncadd [#allocation5], 4294967040 }
 0x60b   :  { %2162 = vsyncpa [#allocation4], 1 }
 0x60c   :  { %2163 = vsyncpa [#allocation7], 1 }
 0x60d   :  { %2164 = vsyncpa [#allocation10], 1 }
 0x60e   :  { %2165 = vsyncpa [#allocation5], 1 }

</bundles_post_ra>
